<compile_context>
chip_gen: v6e
topology: v6e:2x2x1
jax: 0.10.0
libtpu: 0.0.40
codegen_flags: <defaults>
</compile_context>

<pallas_src>
import math

import jax
import jax.numpy as jnp
from jax import lax
from jax.experimental import pallas as pl
from jax.experimental.pallas import tpu as pltpu

_LANE = 128


def _round_up(x, m):
    return (x + m - 1) // m * m


def _vmem_limit_bytes():
    """Generation-aware scoped-VMEM limit (~85% of physical, 48 MiB fallback)."""
    try:
        cap = int(getattr(pltpu.get_tpu_info(), "vmem_capacity_bytes", 0))
    except Exception:
        cap = 0
    if cap <= 0:
        return 48 * 1024 * 1024
    return int(min(cap * 0.85, 112 * 1024 * 1024))


def _make_kernel(tile_h, Wout, Cin_p, Cout_p, K, compute_dtype):
    KK = K * K
    M = tile_h * Wout

    def kernel(x_ref, sm_ref, dm_ref, w_ref, o_ref):
        # x_ref : (1, 1, tile_h+K-1, Wp, Cin_p)  bf16 input row-tile incl. halo
        # sm_ref: (1, Cin_p, 1)                  f32 style modulation (per batch)
        # dm_ref: (1, 1, Cout_p)                 f32 demod * ema scaling (per batch)
        # w_ref : (K*K, Cin_p, Cout_p)           f32 pre-scaled weight (batch invariant)
        # o_ref : (1, 1, tile_h*Wout, Cout_p)    lane-dense output tile

        # Modulate + demodulate the weight: two broadcast multiplies (VPU), bf16 cast.
        w = w_ref[...] * sm_ref[0][None, :, :] * dm_ref[0][None, :, :]
        w_c = w.astype(compute_dtype)                         # (KK, Cin_p, Cout_p)

        x = x_ref[0, 0]                                       # (tile_h+K-1, Wp, Cin_p)
        acc = jnp.zeros((M, Cout_p), jnp.float32)
        # K*K accumulated per-tap matmuls: contraction = Cin_p (>=128), N = Cout_p.
        for kh in range(K):
            for kw in range(K):
                xs = x[kh:kh + tile_h, kw:kw + Wout, :].reshape(M, Cin_p)
                acc = acc + jnp.dot(xs, w_c[kh * K + kw],
                                    preferred_element_type=jnp.float32)
        o_ref[0, 0] = acc.astype(o_ref.dtype)

    return kernel


def modulated_conv2d(x_nchw, style, base_weight, mod_weight, mod_bias,
                     *, kernel_size, demodulate=True, padding=True,
                     ema_var=1.0, eps=1e-8, tile_h=None,
                     compute_dtype=jnp.bfloat16, out_dtype=jnp.float32):
    """Pallas implementation of ModulatedConv2d.forward (eval mode).

    x_nchw      : (B, Cin, H, W)      float32
    style       : (B, style_dim)      float32
    base_weight : (Cout, Cin, K, K)   float32  (torch param with leading 1 squeezed)
    mod_weight  : (Cin, style_dim)    float32  (EqualLinear raw weight)
    mod_bias    : (Cin,)              float32
    ema_var     : python float        (scalar buffer registered by the module)
    returns     : (B, Cout, Hout, Wout) out_dtype (NCHW, matching torch)
    """
    B, Cin, H, W = x_nchw.shape
    Cout = base_weight.shape[0]
    K = kernel_size
    style_dim = style.shape[1]
    pad = K // 2 if padding else 0
    Hp, Wp = H + 2 * pad, W + 2 * pad
    Hout, Wout = Hp - K + 1, Wp - K + 1          # handles padding=False correctly

    Cin_p = _round_up(Cin, _LANE)
    Cout_p = _round_up(Cout, _LANE)
    KK = K * K

    conv_scale = 1.0 / math.sqrt(Cin * K * K)                 # self.scale
    lin_scale = 1.0 / math.sqrt(style_dim)                    # EqualLinear scale (lr_mul=1)
    post_scale = 1.0 / (math.sqrt(float(ema_var)) + eps)      # ema_var buffer folding

    vmem_limit = _vmem_limit_bytes()

    # ---- spatial tile size over output rows (must divide Hout) ----
    if tile_h is None:
        out_bytes = jnp.dtype(out_dtype).itemsize
        w_bytes = KK * Cin_p * Cout_p * 4
        budget = 0.70 * vmem_limit
        tile_h = 1
        for th in range(1, Hout + 1):
            if Hout % th:
                continue
            per_step = (2 * (th + K - 1) * Wp * Cin_p * 2     # x tile (bf16, double-buffered)
                        + 2 * th * Wout * Cout_p * out_bytes  # out tile (double-buffered)
                        + th * Wout * Cout_p * 4              # f32 accumulator
                        + int(2.5 * w_bytes))                 # weight block + modulated copies
            if per_step <= budget:
                tile_h = th
    assert Hout % tile_h == 0, f"tile_h={tile_h} must divide output height {Hout}"
    n_tiles = Hout // tile_h
    th_in = tile_h + K - 1

    # ---- hoisted modulation + demodulation (tiny XLA matmuls, once per call) ----
    style_f = style.astype(jnp.float32)
    style_mod = style_f @ (mod_weight.astype(jnp.float32) * lin_scale).T \
        + mod_bias.astype(jnp.float32)                                    # (B, Cin)
    w_f = base_weight.astype(jnp.float32) * conv_scale                    # (Cout, Cin, K, K)
    if demodulate:
        sum_kk = jnp.sum(w_f * w_f, axis=(2, 3))                          # (Cout, Cin)
        demod = lax.rsqrt((style_mod * style_mod) @ sum_kk.T + eps)       # (B, Cout)
    else:
        demod = jnp.ones((B, Cout), jnp.float32)
    demod_scale = demod * post_scale                                      # (B, Cout)

    sm_p = jnp.pad(style_mod, ((0, 0), (0, Cin_p - Cin)))[:, :, None]     # (B, Cin_p, 1)
    dm_p = jnp.pad(demod_scale, ((0, 0), (0, Cout_p - Cout)))[:, None, :] # (B, 1, Cout_p)

    # ---- pre-scaled, channel-padded conv weight (batch invariant) ----
    w_taps = jnp.transpose(w_f, (2, 3, 1, 0))                             # (K, K, Cin, Cout)
    w_taps = jnp.pad(w_taps, ((0, 0), (0, 0), (0, Cin_p - Cin), (0, Cout_p - Cout)))
    w_taps = w_taps.reshape(KK, Cin_p, Cout_p)

    # ---- activation: NHWC, zero-pad channels + spatial, halo'd row tiles ----
    x_nhwc = jnp.transpose(x_nchw, (0, 2, 3, 1)).astype(jnp.float32)
    x_pad = jnp.pad(x_nhwc, ((0, 0), (pad, pad), (pad, pad), (0, Cin_p - Cin)))
    x_tiles = jnp.stack(
        [x_pad[:, t * tile_h: t * tile_h + th_in] for t in range(n_tiles)], axis=1
    ).astype(compute_dtype)                       # (B, n_tiles, th_in, Wp, Cin_p)

    kernel = _make_kernel(tile_h, Wout, Cin_p, Cout_p, K, compute_dtype)

    def build(single_buffer_weight):
        w_kwargs = dict(pipeline_mode=pl.Buffered(1)) if single_buffer_weight else {}
        grid_spec = pltpu.PrefetchScalarGridSpec(
            num_scalar_prefetch=0,
            grid=(B, n_tiles),
            in_specs=[
                pl.BlockSpec((1, 1, th_in, Wp, Cin_p), lambda b, t: (b, t, 0, 0, 0)),
                pl.BlockSpec((1, Cin_p, 1), lambda b, t: (b, 0, 0)),
                pl.BlockSpec((1, 1, Cout_p), lambda b, t: (b, 0, 0)),
                pl.BlockSpec((KK, Cin_p, Cout_p), lambda b, t: (0, 0, 0), **w_kwargs),
            ],
            out_specs=pl.BlockSpec((1, 1, tile_h * Wout, Cout_p),
                                   lambda b, t: (b, t, 0, 0)),
        )
        return pl.pallas_call(
            kernel,
            out_shape=jax.ShapeDtypeStruct((B, n_tiles, tile_h * Wout, Cout_p), out_dtype),
            grid_spec=grid_spec,
            compiler_params=pltpu.CompilerParams(
                dimension_semantics=("parallel", "parallel"),
                vmem_limit_bytes=vmem_limit,
            ),
        )

    args = (x_tiles, sm_p, dm_p, w_taps)
    try:
        out = jax.block_until_ready(build(True)(*args))
    except Exception:
        # pipeline_mode / Buffered(1) not supported on this jax build: fall back.
        out = build(False)(*args)

    # lane-dense slab -> NCHW, drop channel padding
    out = out.reshape(B, Hout, Wout, Cout_p)[..., :Cout]
    return jnp.transpose(out, (0, 3, 1, 2))


def reference_modulated_conv2d(x_nchw, style, base_weight, mod_weight, mod_bias,
                               *, kernel_size, demodulate=True, padding=True,
                               ema_var=1.0, eps=1e-8):
    """Pure-JAX f32 reference replicating the PyTorch forward exactly (eval mode)."""
    B, Cin, H, W = x_nchw.shape
    K = kernel_size
    style_dim = style.shape[1]
    pad = K // 2 if padding else 0
    conv_scale = 1.0 / math.sqrt(Cin * K * K)
    lin_scale = 1.0 / math.sqrt(style_dim)

    style_mod = style @ (mod_weight * lin_scale).T + mod_bias              # (B, Cin)
    weight = conv_scale * base_weight[None] * style_mod[:, None, :, None, None]
    if demodulate:
        demod = lax.rsqrt(jnp.sum(weight ** 2, axis=(2, 3, 4)) + eps)       # (B, Cout)
        weight = weight * demod[:, :, None, None, None]
    weight = weight / (math.sqrt(float(ema_var)) + eps)

    outs = []
    for b in range(B):
        out_b = lax.conv_general_dilated(
            x_nchw[b:b + 1], weight[b],
            window_strides=(1, 1), padding=[(pad, pad), (pad, pad)],
            dimension_numbers=("NCHW", "OIHW", "NCHW"),
        )
        outs.append(out_b)
    return jnp.concatenate(outs, axis=0)


if __name__ == "__main__":
    # Small deterministic problem consistent with the module's forward.
    B, Cin, Cout, K, style_dim, H, W = 2, 4, 8, 3, 32, 16, 16

    key = jax.random.PRNGKey(0)
    k_x, k_s, k_w, k_m = jax.random.split(key, 4)

    x = jax.random.normal(k_x, (B, Cin, H, W), dtype=jnp.float32)          # NCHW input
    style = jax.random.normal(k_s, (B, style_dim), dtype=jnp.float32)
    # nn.Parameter(torch.randn(1, out_channel, in_channel, k, k)) -> squeeze leading 1
    base_weight = jax.random.normal(k_w, (Cout, Cin, K, K), dtype=jnp.float32)
    # EqualLinear(style_dim, in_channel, bias_init=1): weight randn(out, in), bias = ones
    mod_weight = jax.random.normal(k_m, (Cin, style_dim), dtype=jnp.float32)
    mod_bias = jnp.ones((Cin,), dtype=jnp.float32)

    out = modulated_conv2d(
        x, style, base_weight, mod_weight, mod_bias,
        kernel_size=K, demodulate=True, padding=True, ema_var=1.0,
        tile_h=8,                       # exercise the spatial-tile grid (2 tiles)
    )
    out = jax.block_until_ready(out)

    ref = reference_modulated_conv2d(
        x, style, base_weight, mod_weight, mod_bias,
        kernel_size=K, demodulate=True, padding=True, ema_var=1.0,
    )
    ref = jax.block_until_ready(ref)

    assert out.shape == (B, Cout, H, W), out.shape
    # bf16 MXU inputs (f32 accumulation) -> loosened tolerance vs. the f32 reference.
    max_abs = float(jnp.max(jnp.abs(out - ref)))
    assert jnp.allclose(out, ref, atol=5e-2, rtol=5e-2), max_abs
    rel = float(jnp.linalg.norm(out - ref) / (jnp.linalg.norm(ref) + 1e-12))
    assert rel < 1e-2, rel

    print("KERNEL_OK")
</pallas_src>

<mosaic_0001>
module attributes {stable_mosaic.version = 11 : i64} {
  func.func @kernel(%arg0: i32, %arg1: i32, %arg2: memref<1x1x10x18x128xbf16, #tpu.memory_space<vmem>>, %arg3: memref<1x128x1xf32, #tpu.memory_space<vmem>>, %arg4: memref<1x1x128xf32, #tpu.memory_space<vmem>>, %arg5: memref<9x128x128xf32, #tpu.memory_space<vmem>>, %arg6: memref<1x1x128x128xf32, #tpu.memory_space<vmem>>) attributes {dimension_semantics = [#tpu.dimension_semantics<parallel>, #tpu.dimension_semantics<parallel>], iteration_bounds = array<i64: 2, 2>, scalar_prefetch = 0 : i64, scratch_operands = 0 : i64, tpu.core_type = #tpu.core_type<tc>, window_params = [{transform_indices = @transform_0, window_bounds = array<i64: 1, 1, 10, 18, 128>}, {transform_indices = @transform_1, window_bounds = array<i64: 1, 128, 1>}, {transform_indices = @transform_2, window_bounds = array<i64: 1, 1, 128>}, {pipeline_mode = #tpu.pipeline_mode<synchronous>, transform_indices = @transform_3, window_bounds = array<i64: 9, 128, 128>}, {transform_indices = @transform_4, window_bounds = array<i64: 1, 1, 128, 128>}]} {
    %c0 = arith.constant 0 : index
    %c0_0 = arith.constant 0 : index
    %c0_1 = arith.constant 0 : index
    %0 = vector.load %arg5[%c0, %c0_0, %c0_1] : memref<9x128x128xf32, #tpu.memory_space<vmem>>, vector<9x128x128xf32>
    %c0_2 = arith.constant 0 : index
    %c0_3 = arith.constant 0 : index
    %c0_4 = arith.constant 0 : index
    %1 = vector.load %arg3[%c0_2, %c0_3, %c0_4] : memref<1x128x1xf32, #tpu.memory_space<vmem>>, vector<1x128x1xf32>
    %2 = vector.shape_cast %1 : vector<1x128x1xf32> to vector<128x1xf32>
    %3 = vector.shape_cast %2 : vector<128x1xf32> to vector<1x128x1xf32>
    %4 = vector.broadcast %3 : vector<1x128x1xf32> to vector<9x128x128xf32>
    %5 = arith.mulf %0, %4 : vector<9x128x128xf32>
    %c0_5 = arith.constant 0 : index
    %c0_6 = arith.constant 0 : index
    %c0_7 = arith.constant 0 : index
    %6 = vector.load %arg4[%c0_5, %c0_6, %c0_7] : memref<1x1x128xf32, #tpu.memory_space<vmem>>, vector<1x1x128xf32>
    %7 = vector.shape_cast %6 : vector<1x1x128xf32> to vector<1x128xf32>
    %8 = vector.shape_cast %7 : vector<1x128xf32> to vector<1x1x128xf32>
    %9 = vector.broadcast %8 : vector<1x1x128xf32> to vector<9x128x128xf32>
    %10 = arith.mulf %5, %9 : vector<9x128x128xf32>
    %11 = arith.truncf %10 : vector<9x128x128xf32> to vector<9x128x128xbf16>
    %c0_8 = arith.constant 0 : index
    %c0_9 = arith.constant 0 : index
    %c0_10 = arith.constant 0 : index
    %c0_11 = arith.constant 0 : index
    %c0_12 = arith.constant 0 : index
    %12 = vector.load %arg2[%c0_8, %c0_9, %c0_10, %c0_11, %c0_12] : memref<1x1x10x18x128xbf16, #tpu.memory_space<vmem>>, vector<1x1x10x18x128xbf16>
    %13 = vector.shape_cast %12 : vector<1x1x10x18x128xbf16> to vector<10x18x128xbf16>
    %cst = arith.constant 0.000000e+00 : f32
    %14 = vector.broadcast %cst : f32 to vector<128x128xf32>
    %15 = vector.extract_strided_slice %13 {offsets = [0, 0, 0], sizes = [8, 16, 128], strides = [1, 1, 1]} : vector<10x18x128xbf16> to vector<8x16x128xbf16>
    %16 = vector.shape_cast %15 : vector<8x16x128xbf16> to vector<128x128xbf16>
    %17 = vector.extract_strided_slice %11 {offsets = [0, 0, 0], sizes = [1, 128, 128], strides = [1, 1, 1]} : vector<9x128x128xbf16> to vector<1x128x128xbf16>
    %18 = vector.shape_cast %17 : vector<1x128x128xbf16> to vector<128x128xbf16>
    %cst_13 = arith.constant dense<0.000000e+00> : vector<128x128xf32>
    %19 = tpu.matmul %16, %18, %cst_13 {dimension_numbers = #tpu.dot_dimension_numbers<[1], [0], [0], [1], [0, 0, 1, 1], [], []>} : vector<128x128xbf16>, vector<128x128xbf16>, vector<128x128xf32> -> vector<128x128xf32>
    %20 = arith.addf %14, %19 : vector<128x128xf32>
    %21 = vector.extract_strided_slice %13 {offsets = [0, 1, 0], sizes = [8, 16, 128], strides = [1, 1, 1]} : vector<10x18x128xbf16> to vector<8x16x128xbf16>
    %22 = vector.shape_cast %21 : vector<8x16x128xbf16> to vector<128x128xbf16>
    %23 = vector.extract_strided_slice %11 {offsets = [1, 0, 0], sizes = [1, 128, 128], strides = [1, 1, 1]} : vector<9x128x128xbf16> to vector<1x128x128xbf16>
    %24 = vector.shape_cast %23 : vector<1x128x128xbf16> to vector<128x128xbf16>
    %cst_14 = arith.constant dense<0.000000e+00> : vector<128x128xf32>
    %25 = tpu.matmul %22, %24, %cst_14 {dimension_numbers = #tpu.dot_dimension_numbers<[1], [0], [0], [1], [0, 0, 1, 1], [], []>} : vector<128x128xbf16>, vector<128x128xbf16>, vector<128x128xf32> -> vector<128x128xf32>
    %26 = arith.addf %20, %25 : vector<128x128xf32>
    %27 = vector.extract_strided_slice %13 {offsets = [0, 2, 0], sizes = [8, 16, 128], strides = [1, 1, 1]} : vector<10x18x128xbf16> to vector<8x16x128xbf16>
    %28 = vector.shape_cast %27 : vector<8x16x128xbf16> to vector<128x128xbf16>
    %29 = vector.extract_strided_slice %11 {offsets = [2, 0, 0], sizes = [1, 128, 128], strides = [1, 1, 1]} : vector<9x128x128xbf16> to vector<1x128x128xbf16>
    %30 = vector.shape_cast %29 : vector<1x128x128xbf16> to vector<128x128xbf16>
    %cst_15 = arith.constant dense<0.000000e+00> : vector<128x128xf32>
    %31 = tpu.matmul %28, %30, %cst_15 {dimension_numbers = #tpu.dot_dimension_numbers<[1], [0], [0], [1], [0, 0, 1, 1], [], []>} : vector<128x128xbf16>, vector<128x128xbf16>, vector<128x128xf32> -> vector<128x128xf32>
    %32 = arith.addf %26, %31 : vector<128x128xf32>
    %33 = vector.extract_strided_slice %13 {offsets = [1, 0, 0], sizes = [8, 16, 128], strides = [1, 1, 1]} : vector<10x18x128xbf16> to vector<8x16x128xbf16>
    %34 = vector.shape_cast %33 : vector<8x16x128xbf16> to vector<128x128xbf16>
    %35 = vector.extract_strided_slice %11 {offsets = [3, 0, 0], sizes = [1, 128, 128], strides = [1, 1, 1]} : vector<9x128x128xbf16> to vector<1x128x128xbf16>
    %36 = vector.shape_cast %35 : vector<1x128x128xbf16> to vector<128x128xbf16>
    %cst_16 = arith.constant dense<0.000000e+00> : vector<128x128xf32>
    %37 = tpu.matmul %34, %36, %cst_16 {dimension_numbers = #tpu.dot_dimension_numbers<[1], [0], [0], [1], [0, 0, 1, 1], [], []>} : vector<128x128xbf16>, vector<128x128xbf16>, vector<128x128xf32> -> vector<128x128xf32>
    %38 = arith.addf %32, %37 : vector<128x128xf32>
    %39 = vector.extract_strided_slice %13 {offsets = [1, 1, 0], sizes = [8, 16, 128], strides = [1, 1, 1]} : vector<10x18x128xbf16> to vector<8x16x128xbf16>
    %40 = vector.shape_cast %39 : vector<8x16x128xbf16> to vector<128x128xbf16>
    %41 = vector.extract_strided_slice %11 {offsets = [4, 0, 0], sizes = [1, 128, 128], strides = [1, 1, 1]} : vector<9x128x128xbf16> to vector<1x128x128xbf16>
    %42 = vector.shape_cast %41 : vector<1x128x128xbf16> to vector<128x128xbf16>
    %cst_17 = arith.constant dense<0.000000e+00> : vector<128x128xf32>
    %43 = tpu.matmul %40, %42, %cst_17 {dimension_numbers = #tpu.dot_dimension_numbers<[1], [0], [0], [1], [0, 0, 1, 1], [], []>} : vector<128x128xbf16>, vector<128x128xbf16>, vector<128x128xf32> -> vector<128x128xf32>
    %44 = arith.addf %38, %43 : vector<128x128xf32>
    %45 = vector.extract_strided_slice %13 {offsets = [1, 2, 0], sizes = [8, 16, 128], strides = [1, 1, 1]} : vector<10x18x128xbf16> to vector<8x16x128xbf16>
    %46 = vector.shape_cast %45 : vector<8x16x128xbf16> to vector<128x128xbf16>
    %47 = vector.extract_strided_slice %11 {offsets = [5, 0, 0], sizes = [1, 128, 128], strides = [1, 1, 1]} : vector<9x128x128xbf16> to vector<1x128x128xbf16>
    %48 = vector.shape_cast %47 : vector<1x128x128xbf16> to vector<128x128xbf16>
    %cst_18 = arith.constant dense<0.000000e+00> : vector<128x128xf32>
    %49 = tpu.matmul %46, %48, %cst_18 {dimension_numbers = #tpu.dot_dimension_numbers<[1], [0], [0], [1], [0, 0, 1, 1], [], []>} : vector<128x128xbf16>, vector<128x128xbf16>, vector<128x128xf32> -> vector<128x128xf32>
    %50 = arith.addf %44, %49 : vector<128x128xf32>
    %51 = vector.extract_strided_slice %13 {offsets = [2, 0, 0], sizes = [8, 16, 128], strides = [1, 1, 1]} : vector<10x18x128xbf16> to vector<8x16x128xbf16>
    %52 = vector.shape_cast %51 : vector<8x16x128xbf16> to vector<128x128xbf16>
    %53 = vector.extract_strided_slice %11 {offsets = [6, 0, 0], sizes = [1, 128, 128], strides = [1, 1, 1]} : vector<9x128x128xbf16> to vector<1x128x128xbf16>
    %54 = vector.shape_cast %53 : vector<1x128x128xbf16> to vector<128x128xbf16>
    %cst_19 = arith.constant dense<0.000000e+00> : vector<128x128xf32>
    %55 = tpu.matmul %52, %54, %cst_19 {dimension_numbers = #tpu.dot_dimension_numbers<[1], [0], [0], [1], [0, 0, 1, 1], [], []>} : vector<128x128xbf16>, vector<128x128xbf16>, vector<128x128xf32> -> vector<128x128xf32>
    %56 = arith.addf %50, %55 : vector<128x128xf32>
    %57 = vector.extract_strided_slice %13 {offsets = [2, 1, 0], sizes = [8, 16, 128], strides = [1, 1, 1]} : vector<10x18x128xbf16> to vector<8x16x128xbf16>
    %58 = vector.shape_cast %57 : vector<8x16x128xbf16> to vector<128x128xbf16>
    %59 = vector.extract_strided_slice %11 {offsets = [7, 0, 0], sizes = [1, 128, 128], strides = [1, 1, 1]} : vector<9x128x128xbf16> to vector<1x128x128xbf16>
    %60 = vector.shape_cast %59 : vector<1x128x128xbf16> to vector<128x128xbf16>
    %cst_20 = arith.constant dense<0.000000e+00> : vector<128x128xf32>
    %61 = tpu.matmul %58, %60, %cst_20 {dimension_numbers = #tpu.dot_dimension_numbers<[1], [0], [0], [1], [0, 0, 1, 1], [], []>} : vector<128x128xbf16>, vector<128x128xbf16>, vector<128x128xf32> -> vector<128x128xf32>
    %62 = arith.addf %56, %61 : vector<128x128xf32>
    %63 = vector.extract_strided_slice %13 {offsets = [2, 2, 0], sizes = [8, 16, 128], strides = [1, 1, 1]} : vector<10x18x128xbf16> to vector<8x16x128xbf16>
    %64 = vector.shape_cast %63 : vector<8x16x128xbf16> to vector<128x128xbf16>
    %65 = vector.extract_strided_slice %11 {offsets = [8, 0, 0], sizes = [1, 128, 128], strides = [1, 1, 1]} : vector<9x128x128xbf16> to vector<1x128x128xbf16>
    %66 = vector.shape_cast %65 : vector<1x128x128xbf16> to vector<128x128xbf16>
    %cst_21 = arith.constant dense<0.000000e+00> : vector<128x128xf32>
    %67 = tpu.matmul %64, %66, %cst_21 {dimension_numbers = #tpu.dot_dimension_numbers<[1], [0], [0], [1], [0, 0, 1, 1], [], []>} : vector<128x128xbf16>, vector<128x128xbf16>, vector<128x128xf32> -> vector<128x128xf32>
    %68 = arith.addf %62, %67 : vector<128x128xf32>
    %c0_22 = arith.constant 0 : index
    %c0_23 = arith.constant 0 : index
    %c0_24 = arith.constant 0 : index
    %c0_25 = arith.constant 0 : index
    %69 = vector.load %arg6[%c0_22, %c0_23, %c0_24, %c0_25] : memref<1x1x128x128xf32, #tpu.memory_space<vmem>>, vector<1x1x128x128xf32>
    %70 = vector.shape_cast %69 : vector<1x1x128x128xf32> to vector<128x128xf32>
    %71 = vector.shape_cast %68 : vector<128x128xf32> to vector<1x1x128x128xf32>
    tpu.vector_store %arg6[%c0_22, %c0_23, %c0_24, %c0_25], %71 {strides = array<i32>} : memref<1x1x128x128xf32, #tpu.memory_space<vmem>>, vector<1x1x128x128xf32>,
    return
  }
  func.func @transform_0(%arg0: i32, %arg1: i32) -> (i32, i32, i32, i32, i32) {
    %c0_i32 = arith.constant 0 : i32
    %c0_i32_0 = arith.constant 0 : i32
    %c0_i32_1 = arith.constant 0 : i32
    %c0_i32_2 = arith.constant 0 : i32
    return %arg0, %arg1, %c0_i32, %c0_i32_0, %c0_i32_1 : i32, i32, i32, i32, i32
  }
  func.func @transform_1(%arg0: i32, %arg1: i32) -> (i32, i32, i32) {
    %c0_i32 = arith.constant 0 : i32
    %c0_i32_0 = arith.constant 0 : i32
    %c0_i32_1 = arith.constant 0 : i32
    return %arg0, %c0_i32, %c0_i32_0 : i32, i32, i32
  }
  func.func @transform_2(%arg0: i32, %arg1: i32) -> (i32, i32, i32) {
    %c0_i32 = arith.constant 0 : i32
    %c0_i32_0 = arith.constant 0 : i32
    %c0_i32_1 = arith.constant 0 : i32
    return %arg0, %c0_i32, %c0_i32_0 : i32, i32, i32
  }
  func.func @transform_3(%arg0: i32, %arg1: i32) -> (i32, i32, i32) {
    %c0_i32 = arith.constant 0 : i32
    %c0_i32_0 = arith.constant 0 : i32
    %c0_i32_1 = arith.constant 0 : i32
    %c0_i32_2 = arith.constant 0 : i32
    return %c0_i32, %c0_i32_0, %c0_i32_1 : i32, i32, i32
  }
  func.func @transform_4(%arg0: i32, %arg1: i32) -> (i32, i32, i32, i32) {
    %c0_i32 = arith.constant 0 : i32
    %c0_i32_0 = arith.constant 0 : i32
    %c0_i32_1 = arith.constant 0 : i32
    return %arg0, %arg1, %c0_i32, %c0_i32_0 : i32, i32, i32, i32
  }
}

module attributes {stable_mosaic.version = 11 : i64} {
  func.func @kernel(%arg0: i32, %arg1: i32, %arg2: memref<1x1x10x18x128xbf16, #tpu.memory_space<vmem>>, %arg3: memref<1x128x1xf32, #tpu.memory_space<vmem>>, %arg4: memref<1x1x128xf32, #tpu.memory_space<vmem>>, %arg5: memref<9x128x128xf32, #tpu.memory_space<vmem>>, %arg6: memref<1x1x128x128xf32, #tpu.memory_space<vmem>>) attributes {dimension_semantics = [#tpu.dimension_semantics<parallel>, #tpu.dimension_semantics<parallel>], iteration_bounds = array<i64: 2, 2>, scalar_prefetch = 0 : i64, scratch_operands = 0 : i64, tpu.core_type = #tpu.core_type<tc>, window_params = [{transform_indices = @transform_0, window_bounds = array<i64: 1, 1, 10, 18, 128>}, {transform_indices = @transform_1, window_bounds = array<i64: 1, 128, 1>}, {transform_indices = @transform_2, window_bounds = array<i64: 1, 1, 128>}, {pipeline_mode = #tpu.pipeline_mode<synchronous>, transform_indices = @transform_3, window_bounds = array<i64: 9, 128, 128>}, {transform_indices = @transform_4, window_bounds = array<i64: 1, 1, 128, 128>}]} {
    %c0 = arith.constant 0 : index
    %c0_0 = arith.constant 0 : index
    %c0_1 = arith.constant 0 : index
    %0 = vector.load %arg5[%c0, %c0_0, %c0_1] : memref<9x128x128xf32, #tpu.memory_space<vmem>>, vector<9x128x128xf32>
    %c0_2 = arith.constant 0 : index
    %c0_3 = arith.constant 0 : index
    %c0_4 = arith.constant 0 : index
    %1 = vector.load %arg3[%c0_2, %c0_3, %c0_4] : memref<1x128x1xf32, #tpu.memory_space<vmem>>, vector<1x128x1xf32>
    %2 = vector.shape_cast %1 : vector<1x128x1xf32> to vector<128x1xf32>
    %3 = vector.shape_cast %2 : vector<128x1xf32> to vector<1x128x1xf32>
    %4 = vector.broadcast %3 : vector<1x128x1xf32> to vector<9x128x128xf32>
    %5 = arith.mulf %0, %4 : vector<9x128x128xf32>
    %c0_5 = arith.constant 0 : index
    %c0_6 = arith.constant 0 : index
    %c0_7 = arith.constant 0 : index
    %6 = vector.load %arg4[%c0_5, %c0_6, %c0_7] : memref<1x1x128xf32, #tpu.memory_space<vmem>>, vector<1x1x128xf32>
    %7 = vector.shape_cast %6 : vector<1x1x128xf32> to vector<1x128xf32>
    %8 = vector.shape_cast %7 : vector<1x128xf32> to vector<1x1x128xf32>
    %9 = vector.broadcast %8 : vector<1x1x128xf32> to vector<9x128x128xf32>
    %10 = arith.mulf %5, %9 : vector<9x128x128xf32>
    %11 = arith.truncf %10 : vector<9x128x128xf32> to vector<9x128x128xbf16>
    %c0_8 = arith.constant 0 : index
    %c0_9 = arith.constant 0 : index
    %c0_10 = arith.constant 0 : index
    %c0_11 = arith.constant 0 : index
    %c0_12 = arith.constant 0 : index
    %12 = vector.load %arg2[%c0_8, %c0_9, %c0_10, %c0_11, %c0_12] : memref<1x1x10x18x128xbf16, #tpu.memory_space<vmem>>, vector<1x1x10x18x128xbf16>
    %13 = vector.shape_cast %12 : vector<1x1x10x18x128xbf16> to vector<10x18x128xbf16>
    %cst = arith.constant 0.000000e+00 : f32
    %14 = vector.broadcast %cst : f32 to vector<128x128xf32>
    %15 = vector.extract_strided_slice %13 {offsets = [0, 0, 0], sizes = [8, 16, 128], strides = [1, 1, 1]} : vector<10x18x128xbf16> to vector<8x16x128xbf16>
    %16 = vector.shape_cast %15 : vector<8x16x128xbf16> to vector<128x128xbf16>
    %17 = vector.extract_strided_slice %11 {offsets = [0, 0, 0], sizes = [1, 128, 128], strides = [1, 1, 1]} : vector<9x128x128xbf16> to vector<1x128x128xbf16>
    %18 = vector.shape_cast %17 : vector<1x128x128xbf16> to vector<128x128xbf16>
    %cst_13 = arith.constant dense<0.000000e+00> : vector<128x128xf32>
    %19 = tpu.matmul %16, %18, %cst_13 {dimension_numbers = #tpu.dot_dimension_numbers<[1], [0], [0], [1], [0, 0, 1, 1], [], []>} : vector<128x128xbf16>, vector<128x128xbf16>, vector<128x128xf32> -> vector<128x128xf32>
    %20 = arith.addf %14, %19 : vector<128x128xf32>
    %21 = vector.extract_strided_slice %13 {offsets = [0, 1, 0], sizes = [8, 16, 128], strides = [1, 1, 1]} : vector<10x18x128xbf16> to vector<8x16x128xbf16>
    %22 = vector.shape_cast %21 : vector<8x16x128xbf16> to vector<128x128xbf16>
    %23 = vector.extract_strided_slice %11 {offsets = [1, 0, 0], sizes = [1, 128, 128], strides = [1, 1, 1]} : vector<9x128x128xbf16> to vector<1x128x128xbf16>
    %24 = vector.shape_cast %23 : vector<1x128x128xbf16> to vector<128x128xbf16>
    %cst_14 = arith.constant dense<0.000000e+00> : vector<128x128xf32>
    %25 = tpu.matmul %22, %24, %cst_14 {dimension_numbers = #tpu.dot_dimension_numbers<[1], [0], [0], [1], [0, 0, 1, 1], [], []>} : vector<128x128xbf16>, vector<128x128xbf16>, vector<128x128xf32> -> vector<128x128xf32>
    %26 = arith.addf %20, %25 : vector<128x128xf32>
    %27 = vector.extract_strided_slice %13 {offsets = [0, 2, 0], sizes = [8, 16, 128], strides = [1, 1, 1]} : vector<10x18x128xbf16> to vector<8x16x128xbf16>
    %28 = vector.shape_cast %27 : vector<8x16x128xbf16> to vector<128x128xbf16>
    %29 = vector.extract_strided_slice %11 {offsets = [2, 0, 0], sizes = [1, 128, 128], strides = [1, 1, 1]} : vector<9x128x128xbf16> to vector<1x128x128xbf16>
    %30 = vector.shape_cast %29 : vector<1x128x128xbf16> to vector<128x128xbf16>
    %cst_15 = arith.constant dense<0.000000e+00> : vector<128x128xf32>
    %31 = tpu.matmul %28, %30, %cst_15 {dimension_numbers = #tpu.dot_dimension_numbers<[1], [0], [0], [1], [0, 0, 1, 1], [], []>} : vector<128x128xbf16>, vector<128x128xbf16>, vector<128x128xf32> -> vector<128x128xf32>
    %32 = arith.addf %26, %31 : vector<128x128xf32>
    %33 = vector.extract_strided_slice %13 {offsets = [1, 0, 0], sizes = [8, 16, 128], strides = [1, 1, 1]} : vector<10x18x128xbf16> to vector<8x16x128xbf16>
    %34 = vector.shape_cast %33 : vector<8x16x128xbf16> to vector<128x128xbf16>
    %35 = vector.extract_strided_slice %11 {offsets = [3, 0, 0], sizes = [1, 128, 128], strides = [1, 1, 1]} : vector<9x128x128xbf16> to vector<1x128x128xbf16>
    %36 = vector.shape_cast %35 : vector<1x128x128xbf16> to vector<128x128xbf16>
    %cst_16 = arith.constant dense<0.000000e+00> : vector<128x128xf32>
    %37 = tpu.matmul %34, %36, %cst_16 {dimension_numbers = #tpu.dot_dimension_numbers<[1], [0], [0], [1], [0, 0, 1, 1], [], []>} : vector<128x128xbf16>, vector<128x128xbf16>, vector<128x128xf32> -> vector<128x128xf32>
    %38 = arith.addf %32, %37 : vector<128x128xf32>
    %39 = vector.extract_strided_slice %13 {offsets = [1, 1, 0], sizes = [8, 16, 128], strides = [1, 1, 1]} : vector<10x18x128xbf16> to vector<8x16x128xbf16>
    %40 = vector.shape_cast %39 : vector<8x16x128xbf16> to vector<128x128xbf16>
    %41 = vector.extract_strided_slice %11 {offsets = [4, 0, 0], sizes = [1, 128, 128], strides = [1, 1, 1]} : vector<9x128x128xbf16> to vector<1x128x128xbf16>
    %42 = vector.shape_cast %41 : vector<1x128x128xbf16> to vector<128x128xbf16>
    %cst_17 = arith.constant dense<0.000000e+00> : vector<128x128xf32>
    %43 = tpu.matmul %40, %42, %cst_17 {dimension_numbers = #tpu.dot_dimension_numbers<[1], [0], [0], [1], [0, 0, 1, 1], [], []>} : vector<128x128xbf16>, vector<128x128xbf16>, vector<128x128xf32> -> vector<128x128xf32>
    %44 = arith.addf %38, %43 : vector<128x128xf32>
    %45 = vector.extract_strided_slice %13 {offsets = [1, 2, 0], sizes = [8, 16, 128], strides = [1, 1, 1]} : vector<10x18x128xbf16> to vector<8x16x128xbf16>
    %46 = vector.shape_cast %45 : vector<8x16x128xbf16> to vector<128x128xbf16>
    %47 = vector.extract_strided_slice %11 {offsets = [5, 0, 0], sizes = [1, 128, 128], strides = [1, 1, 1]} : vector<9x128x128xbf16> to vector<1x128x128xbf16>
    %48 = vector.shape_cast %47 : vector<1x128x128xbf16> to vector<128x128xbf16>
    %cst_18 = arith.constant dense<0.000000e+00> : vector<128x128xf32>
    %49 = tpu.matmul %46, %48, %cst_18 {dimension_numbers = #tpu.dot_dimension_numbers<[1], [0], [0], [1], [0, 0, 1, 1], [], []>} : vector<128x128xbf16>, vector<128x128xbf16>, vector<128x128xf32> -> vector<128x128xf32>
    %50 = arith.addf %44, %49 : vector<128x128xf32>
    %51 = vector.extract_strided_slice %13 {offsets = [2, 0, 0], sizes = [8, 16, 128], strides = [1, 1, 1]} : vector<10x18x128xbf16> to vector<8x16x128xbf16>
    %52 = vector.shape_cast %51 : vector<8x16x128xbf16> to vector<128x128xbf16>
    %53 = vector.extract_strided_slice %11 {offsets = [6, 0, 0], sizes = [1, 128, 128], strides = [1, 1, 1]} : vector<9x128x128xbf16> to vector<1x128x128xbf16>
    %54 = vector.shape_cast %53 : vector<1x128x128xbf16> to vector<128x128xbf16>
    %cst_19 = arith.constant dense<0.000000e+00> : vector<128x128xf32>
    %55 = tpu.matmul %52, %54, %cst_19 {dimension_numbers = #tpu.dot_dimension_numbers<[1], [0], [0], [1], [0, 0, 1, 1], [], []>} : vector<128x128xbf16>, vector<128x128xbf16>, vector<128x128xf32> -> vector<128x128xf32>
    %56 = arith.addf %50, %55 : vector<128x128xf32>
    %57 = vector.extract_strided_slice %13 {offsets = [2, 1, 0], sizes = [8, 16, 128], strides = [1, 1, 1]} : vector<10x18x128xbf16> to vector<8x16x128xbf16>
    %58 = vector.shape_cast %57 : vector<8x16x128xbf16> to vector<128x128xbf16>
    %59 = vector.extract_strided_slice %11 {offsets = [7, 0, 0], sizes = [1, 128, 128], strides = [1, 1, 1]} : vector<9x128x128xbf16> to vector<1x128x128xbf16>
    %60 = vector.shape_cast %59 : vector<1x128x128xbf16> to vector<128x128xbf16>
    %cst_20 = arith.constant dense<0.000000e+00> : vector<128x128xf32>
    %61 = tpu.matmul %58, %60, %cst_20 {dimension_numbers = #tpu.dot_dimension_numbers<[1], [0], [0], [1], [0, 0, 1, 1], [], []>} : vector<128x128xbf16>, vector<128x128xbf16>, vector<128x128xf32> -> vector<128x128xf32>
    %62 = arith.addf %56, %61 : vector<128x128xf32>
    %63 = vector.extract_strided_slice %13 {offsets = [2, 2, 0], sizes = [8, 16, 128], strides = [1, 1, 1]} : vector<10x18x128xbf16> to vector<8x16x128xbf16>
    %64 = vector.shape_cast %63 : vector<8x16x128xbf16> to vector<128x128xbf16>
    %65 = vector.extract_strided_slice %11 {offsets = [8, 0, 0], sizes = [1, 128, 128], strides = [1, 1, 1]} : vector<9x128x128xbf16> to vector<1x128x128xbf16>
    %66 = vector.shape_cast %65 : vector<1x128x128xbf16> to vector<128x128xbf16>
    %cst_21 = arith.constant dense<0.000000e+00> : vector<128x128xf32>
    %67 = tpu.matmul %64, %66, %cst_21 {dimension_numbers = #tpu.dot_dimension_numbers<[1], [0], [0], [1], [0, 0, 1, 1], [], []>} : vector<128x128xbf16>, vector<128x128xbf16>, vector<128x128xf32> -> vector<128x128xf32>
    %68 = arith.addf %62, %67 : vector<128x128xf32>
    %c0_22 = arith.constant 0 : index
    %c0_23 = arith.constant 0 : index
    %c0_24 = arith.constant 0 : index
    %c0_25 = arith.constant 0 : index
    %69 = vector.load %arg6[%c0_22, %c0_23, %c0_24, %c0_25] : memref<1x1x128x128xf32, #tpu.memory_space<vmem>>, vector<1x1x128x128xf32>
    %70 = vector.shape_cast %69 : vector<1x1x128x128xf32> to vector<128x128xf32>
    %71 = vector.shape_cast %68 : vector<128x128xf32> to vector<1x1x128x128xf32>
    tpu.vector_store %arg6[%c0_22, %c0_23, %c0_24, %c0_25], %71 {strides = array<i32>} : memref<1x1x128x128xf32, #tpu.memory_space<vmem>>, vector<1x1x128x128xf32>,
    return
  }
  func.func @transform_0(%arg0: i32, %arg1: i32) -> (i32, i32, i32, i32, i32) {
    %c0_i32 = arith.constant 0 : i32
    %c0_i32_0 = arith.constant 0 : i32
    %c0_i32_1 = arith.constant 0 : i32
    %c0_i32_2 = arith.constant 0 : i32
    return %arg0, %arg1, %c0_i32, %c0_i32_0, %c0_i32_1 : i32, i32, i32, i32, i32
  }
  func.func @transform_1(%arg0: i32, %arg1: i32) -> (i32, i32, i32) {
    %c0_i32 = arith.constant 0 : i32
    %c0_i32_0 = arith.constant 0 : i32
    %c0_i32_1 = arith.constant 0 : i32
    return %arg0, %c0_i32, %c0_i32_0 : i32, i32, i32
  }
  func.func @transform_2(%arg0: i32, %arg1: i32) -> (i32, i32, i32) {
    %c0_i32 = arith.constant 0 : i32
    %c0_i32_0 = arith.constant 0 : i32
    %c0_i32_1 = arith.constant 0 : i32
    return %arg0, %c0_i32, %c0_i32_0 : i32, i32, i32
  }
  func.func @transform_3(%arg0: i32, %arg1: i32) -> (i32, i32, i32) {
    %c0_i32 = arith.constant 0 : i32
    %c0_i32_0 = arith.constant 0 : i32
    %c0_i32_1 = arith.constant 0 : i32
    %c0_i32_2 = arith.constant 0 : i32
    return %c0_i32, %c0_i32_0, %c0_i32_1 : i32, i32, i32
  }
  func.func @transform_4(%arg0: i32, %arg1: i32) -> (i32, i32, i32, i32) {
    %c0_i32 = arith.constant 0 : i32
    %c0_i32_0 = arith.constant 0 : i32
    %c0_i32_1 = arith.constant 0 : i32
    return %arg0, %arg1, %c0_i32, %c0_i32_0 : i32, i32, i32, i32
  }
}

</mosaic_0001>

<bundles_post_ra>
// kernel: tpu_custom_call.1
= control target key start
LH: loop header
LB: loop body
LE: loop exit
PB: predicated region body
PF: predicated region fallthrough
CT: control target
= control target key end

     0   :  { %9 = vsyncpa [#allocation3], 0  ;;  %s4455_s0 = inlined_call_operand.vmem [shape: bf16[2,2,10,18,128], index: 0, kind: input, shape index: {}]   ;;  %s4456_s1 = inlined_call_operand.vmem [shape: f32[2,128,1], index: 1, kind: input, shape index: {}]   ;;  %s4457_s2 = inlined_call_operand.vmem [shape: f32[2,1,128], index: 2, kind: input, shape index: {}]   ;;  %s4458_s3 = inlined_call_operand.hbm [shape: f32[9,128,128], index: 3, kind: input, shape index: {}]   ;;  %s4459_s4 = inlined_call_operand.hbm [shape: f32[2,2,128,128], index: 4, kind: output, shape index: {}]  }
   0x1   :  { %10 = vsyncpa [#allocation4], 0 }
   0x2   :  { %12 = vsyncpa [#allocation4 + $0x1], 0  ;;  %s3277_s15 = smov 0   ;;  %s3279_s16 = smov 0  }
   0x3   :  { %s3281_s17 = smov 0   ;;  %s3283_s18 = smov 0  }
   0x4   :  { %s3285_s19 = smov 0   ;;  %s3287_s20 = smov 0  }
   0x5   :  { %s3289_s21 = smov 0   ;;  %s3291_s22 = smov 0  }
   0x6 LB: > { %s2512_s23 = sadd.s32 4294967295, %s3243_s22   ;;  %s2513_s24 = sadd.s32 4294967294, %s3243_s22   ;;  %s3243_s22 = sphi %s3291_s22, %s18_s22   ;;  %s3239_s21 = sphi %s3289_s21, %s4625_s21   ;;  %s3235_s20 = sphi %s3287_s20, %s4624_s20   ;;  %s3231_s19 = sphi %s3285_s19, %s4623_s19   ;;  %s3227_s18 = sphi %s3283_s18, %s4622_s18   ;;  %s3223_s17 = sphi %s3281_s17, %s4621_s17   ;;  %s3219_s16 = sphi %s3279_s16, %s4620_s16   ;;  %s3215_s15 = sphi %s3277_s15, %s4619_s15  }
   0x7   : > { %s27_s25 = sadd.s32 1, %s3235_s20  ;;  %s30_s26 = sadd.s32 1, %s3239_s21 }
   0x8   : > { %p28_p0 = scmp.ge.s32.totalorder %s27_s25, 2  ;;  %s140_s27 = sadd.s32 1, %s3223_s17 }
   0x9   : > { %p150_p1 = scmp.ne.s32.totalorder %s3223_s17, %s3219_s16  ;;  %p151_p2 = scmp.eq.s32.totalorder %s2512_s23, 3 }
   0xa   : > { %s4627_s25 = smov (%p28_p0, %s27_s25), 0  ;;  %s4629_s26 = smov (!%p28_p0, %s30_s26), %s3239_s21 }
   0xb   : > { %s136_s28 = ssub.s32 %s3235_s20, %s4627_s25  ;;  %p3329_p3 = por %p151_p2, %p150_p1 }
   0xc   : > { %p32_p4 = scmp.ge.s32.totalorder %s4629_s26, 2  ;;  %p156_p5 = scmp.ne.s32.totalorder %s3219_s16, %s3215_s15 }
   0xd   : > { %p157_p6 = scmp.eq.s32.totalorder %s2513_s24, 3  ;;  %p2514_p7 = scmp.ge.s32.totalorder %s3243_s22, 1 }
   0xe   : > { %s4631_s26 = smov (%p32_p4, %s4629_s26), 0  ;;  %p164_p9 = scmp.lt.s32.totalorder %s3243_s22, 5 }
   0xf   : > { %p3338_p8 = por %p157_p6, %p156_p5  ;;  %s135_s5 = ssub.s32 %s3239_s21, %s4631_s26 }
  0x10   : > { %s137_s6 = sor.u32 %s136_s28, %s135_s5  ;;  %p3345_p10 = pnand %p2514_p7, %p164_p9 }
  0x11   : > { %p138_p11 = scmp.eq.s32.totalorder %s137_s6, 0  ;;  %p3349_p12 = scmp.eq.s32.totalorder %s2512_s23, 0 }
  0x12   : > { %p3027_p13 = pneg %p3345_p10  ;;  %s3245_s10 = smov [#allocation2]  }
  0x13   : > { %s3356_s9 = scalar_select %p138_p11, %s3223_s17, %s140_s27  }
  0x14   : > { %s176_s11 = sshll.u32 %s3245_s10, 4  ;;  %p3360_p0 = pnand %p3349_p12, %p3027_p13  ;;  %s177_s11 = int_to_ptr.vmem [resolvable:$true] %s176_s11 }
  0x15   : > { %s3132_s13 = scalar_lea.vmem %s177_s11, 18432  ;;  %p3140_p6 = scmp.lt.s32.totalorder %s177_s11, %s177_s11 }
  0x16   : > { %p3123_p1 = pneg %p3360_p0  ;;  %p3133_p2 = scmp.ne.s32.totalorder %s177_s11, %s3132_s13 }
  0x17   : > { %p3141_p7 = scmp.lt.s32.totalorder %s3132_s13, %s3132_s13 }
  0x18   : > { %p3135_p4 = pnand %p3133_p2, %p3123_p1 }
  0x19   : > { %p3142_p9 = por %p3141_p7, %p3140_p6 }
  0x1a   : > { %p3136_p5 = pneg %p3135_p4 }
  0x1c   : > { %p3143_p11 = pnand %p3142_p9, %p3136_p5 }
  0x1e   : > { %3146 = shalt.err (!%p3143_p11)
}
  0x1f   : > { %s3246_s14 = smov 128   ;;  %s3247_s23 = smov 8  }
  0x20   : > { %3030 = dma.hbm_to_vmem [thread:$0]  (!%p3360_p0), %s4458_s3, 18432, %s177_s11, [#allocation3], %s3246_s14, %s3246_s14, %s3247_s23  }
  0x21   : > { %218 = sbr.rel (%p3345_p10) target bundleno = 563 (0x233), region = 36 }
  0x26   : > { %3206 = dma.done.wait (%p3349_p12), [#allocation3], 18432  }
  0x27   : > { %3208 = vsyncadd (%p3349_p12), [#allocation3], 4294948864  ;;  %p256_p13 = scmp.lt.s32.totalorder %s3231_s19, 1  ;;  %v3248_v0 = vmov 0   ;;  %p258_p10 = scmp.lt.s32.totalorder %s3227_s18, 1  ;;  %v4507_v33 = vmov 0 }
  0x28   : > { %3109 = vset.pattern.permute.xlu1 %v3248_v0  ;;  %3108 = vset.pattern.permute.xlu0 %v3248_v0  ;;  %vm911_vm0 = vsmask.f32 3328  ;;  %vm912_vm1 = vsmask.f32 7440  ;;  %vm1388_vm3 = vcmask 1042432   ;;  %vm1389_vm4 = vcmask 1046532  }
  0x29   : > { %s3379_s28 = scalar_select %p256_p13, %s3231_s19, 1  ;;  %vm3414_vm2 = vmor %vm911_vm0, %vm912_vm1  ;;  %v299_v46 = vld [vmem:[#allocation2 + $0xc8] sm:$0xff] }
  0x2a   : > { %s259_s8 = scalar_select %p258_p10, %s3227_s18, 1  ;;  %v4508_v33 = vsel %vm3414_vm2, 4294967295, %v4507_v33  ;;  %vm3422_vm5 = vmor %vm1388_vm3, %vm1389_vm4 }
  0x2b   : > { %s2570_s5 = sshll.u32 %s3379_s28, 7  ;;  %s3020_s11 = smul.u32 60, %s3379_s28  ;;  %4509 = vst [vmem:[#allocation8_spill] sm:$0xff] %v4508_v33  ;;  %v351_v33 = vld [vmem:[#allocation2 + $0x268] sm:$0xff] }
  0x2c   : > { %s3385_s10 = scalar_lea.vmem %s4456_s1, %s2570_s5  ;;  %s3019_s12 = smul.u32 30, %s259_s8 }
  0x2d   : > { %v432_v1 = vld [vmem:[%s3385_s10 + $0x70] sm:$0xff]  ;;  %v430_v2 = vld [vmem:[%s3385_s10 + $0x60] sm:$0xff]  ;;  %v433_v3 = vld [vmem:[%s3385_s10 + $0x78] sm:$0xff]  ;;  %s3512_s7 = scalar_lea.vmem %s4457_s2, %s3379_s28  ;;  %s253_s28 = sand.u32 1, %s3219_s16  }
  0x2e   : > { %506 = vperm.xlu0 %3108, %v432_v1   ;;  %496 = vperm.xlu1 %3109, %v430_v2   ;;  %v431_v4 = vld [vmem:[%s3385_s10 + $0x68] sm:$0xff]  ;;  %v429_v5 = vld [vmem:[%s3385_s10 + $0x58] sm:$0xff]  ;;  %v428_v6 = vld [vmem:[%s3385_s10 + $0x50] sm:$0xff]  ;;  %s262_s13 = sadd.s32 %s3020_s11, %s3019_s12  ;;  %s2565_s11 = sshll.u32 %s3227_s18, 4 }
  0x2f   : > { %v427_v7 = vld [vmem:[%s3385_s10 + $0x48] sm:$0xff]  ;;  %v426_v8 = vld [vmem:[%s3385_s10 + $0x40] sm:$0xff]  ;;  %v425_v9 = vld [vmem:[%s3385_s10 + $0x38] sm:$0xff]  ;;  %s2520_s14 = sshll.u32 %s262_s13, 2  ;;  %s2566_s12 = sshll.u32 %s3231_s19, 5 }
  0x30   : > { %v424_v10 = vld [vmem:[%s3385_s10 + $0x30] sm:$0xff]  ;;  %v423_v11 = vld [vmem:[%s3385_s10 + $0x28] sm:$0xff]  ;;  %v422_v12 = vld [vmem:[%s3385_s10 + $0x20] sm:$0xff]  ;;  %s3407_s27 = scalar_lea.vmem %s4455_s0, %s2520_s14  ;;  %s2391_s18 = sadd.s32 %s2566_s12, %s2565_s11 }
  0x31   : > { %v421_v13 = vld [vmem:[%s3385_s10 + $0x18] sm:$0xff]  ;;  %v420_v14 = vld [vmem:[%s3385_s10 + $0x10] sm:$0xff]  ;;  %v419_v15 = vld [vmem:[%s3385_s10 + $0x8] sm:$0xff]  ;;  %s2567_s19 = sshll.u32 %s2391_s18, 7  ;;  %s3249_s6 = smov [#allocation5]  }
  0x32   : > { %511 = vperm.xlu0 %3108, %v433_v3   ;;  %501 = vperm.xlu1 %3109, %v431_v4   ;;  %v418_v16 = vld [vmem:[%s3385_s10] sm:$0xff]  ;;  %v883_v27 = vld [vmem:[%s3407_s27 + $0x8] sm:$0x1]  ;;  %v3437_v47 = vld [vmem:[%s3407_s27 + $0xc] sm:$0xf]  ;;  %s2519_s10 = sshll.u32 %s253_s28, 7  ;;  %s4394_s24 = scalar_lea.hbm %s4459_s4, %s2567_s19 }
  0x33   : > { %v881_v17 = vld [vmem:[%s3407_s27] sm:$0xf]  ;;  %v882_v18 = vld [vmem:[%s3407_s27 + $0x4] sm:$0xf]  ;;  %v934_v30 = vshll.u32 %v883_v27, 16  ;;  %v1396_v39 = vrot.slane %v883_v27, 5 }
  0x34   : > { %v915_v19 = vshrl.u32 %v881_v17, 16  ;;  %v918_v20 = vshll.u32 %v881_v17, 16  ;;  %v924_v21 = vshll.u32 %v882_v18, 16  ;;  %v928_v22 = vshrl.u32 %v882_v18, 16  ;;  %v3440_v48 = vld [vmem:[%s3407_s27 + $0x10] sm:$0xf] }
  0x35   : > { %v936_v34 = vrot.slane %v934_v30, 5  ;;  %v2532_v36 = vcombine.low %v881_v17, %v882_v18  ;;  %v2540_v41 = vrot.slane %v881_v17, 9  ;;  %v1393_v42 = vrot.slane %v882_v18, 5  ;;  %v3447_v53 = vld [vmem:[%s3407_s27 + $0x18] sm:$0xf]  ;;  %s4357_s8 = scalar_lea.vmem [#allocation5], %s2519_s10 }
  0x36   : > { %491 = vperm.xlu1 %3109, %v429_v5   ;;  %486 = vperm.xlu0 %3108, %v428_v6   ;;  %v917_v23 = vrot.slane %v915_v19, 4  ;;  %v920_v24 = vrot.slane %v918_v20, 5  ;;  %v926_v25 = vrot.slane %v924_v21, 5  ;;  %v930_v26 = vrot.slane %v928_v22, 4  ;;  %4514 = vst [vmem:[#allocation11_spill] sm:$0xff] %v3447_v53  ;;  %s2394_s13 = sshll.u32 %s4357_s8, 4  ;;  %s4396_s13 = int_to_ptr.vmem [resolvable:$true] %s2394_s13 }
  0x37   : > { %2763 = vmatprep.mubr.bf16.mxu1 %v2532_v36  ;;  %v3428_v43 = vsel %vm3422_vm5, %v2540_v41, %v1393_v42  ;;  %v1395_v44 = vrot.slane %v1393_v42, 4  ;;  %v939_v49 = vshrl.u32 %v3437_v47, 16  ;;  %v942_v50 = vshll.u32 %v3437_v47, 16  ;;  %v3450_v54 = vld [vmem:[%s3407_s27 + $0x1c] sm:$0xf]  ;;  %s3147_s5 = scalar_lea.vmem %s4396_s13, 2048 }
  0x38   : > { %v921_v28 = vor.u32 %v920_v24, %v917_v23  ;;  %v931_v29 = vor.u32 %v930_v26, %v926_v25  ;;  %4512 = vst [vmem:[#allocation9_spill] sm:$0xff] %v3428_v43  ;;  %v948_v51 = vshll.u32 %v3440_v48, 16  ;;  %v952_v52 = vshrl.u32 %v3440_v48, 16  ;;  %v3453_v55 = vld [vmem:[%s3407_s27 + $0x24] sm:$0xf]  ;;  %p3148_p12 = scmp.ne.s32.totalorder %s4396_s13, %s3147_s5 }
  0x39   : > { %v3432_v45 = vsel %vm3422_vm5, %v1395_v44, %v1396_v39  ;;  %4515 = vst [vmem:[#allocation12_spill] sm:$0xff] %v3453_v55  ;;  %v941_v56 = vrot.slane %v939_v49, 4  ;;  %v944_v57 = vrot.slane %v942_v50, 5  ;;  %v3456_v58 = vld [vmem:[%s3407_s27 + $0x28] sm:$0xf]  ;;  %v963_v59 = vshrl.u32 %v3447_v53, 16 }
  0x3a   : > { %481 = vperm.xlu1 %3109, %v427_v7   ;;  %476 = vperm.xlu0 %3108, %v426_v8   ;;  %v922_v31 = vrot.slane %v921_v28, 4  ;;  %v932_v32 = vrot.slane %v931_v29, 4  ;;  %4513 = vst [vmem:[#allocation10_spill] sm:$0xff] %v3432_v45  ;;  %4516 = vst [vmem:[#allocation13_spill] sm:$0xff] %v3456_v58  ;;  %v966_v60 = vshll.u32 %v3447_v53, 16  ;;  %v972_v61 = vshll.u32 %v3450_v54, 16  ;;  %p3149_p0 = pnand %p3148_p12, %p3329_p3 }
  0x3b   : > { %v976_v62 = vshrl.u32 %v3450_v54, 16  ;;  %v950_v63 = vrot.slane %v948_v51, 5  ;;  %v954_v0 = vrot.slane %v952_v52, 4  ;;  %v987_v1 = vshrl.u32 %v3453_v55, 16  ;;  %v3465_v3 = vld [vmem:[%s3407_s27 + $0x14] sm:$0x1] }
  0x3c   : > { %v927_v35 = vsel %vm3414_vm2, %v922_v31, %v926_v25  ;;  %v937_v37 = vsel %vm3414_vm2, %v932_v32, %v936_v34  ;;  %v990_v2 = vshll.u32 %v3453_v55, 16  ;;  %v996_v4 = vshll.u32 %v3456_v58, 16  ;;  %v3477_v19 = vld [vmem:[%s3407_s27 + $0x30] sm:$0xf]  ;;  %v3482_v29 = vld [vmem:[%s3407_s27 + $0x34] sm:$0xf]  ;;  %p3150_p1 = pneg %p3149_p0 }
  0x3d   : > { %v2524_v38 = vcombine.low %v927_v35, %v937_v37  ;;  %v1000_v5 = vshrl.u32 %v3456_v58, 16  ;;  %v945_v6 = vor.u32 %v944_v57, %v941_v56  ;;  %v965_v7 = vrot.slane %v963_v59, 4  ;;  %4519 = vst [vmem:[#allocation16_spill] sm:$0xff] %v3477_v19  ;;  %4520 = vst [vmem:[#allocation17_spill] sm:$0xff] %v3482_v29  ;;  %v3492_v44 = vld [vmem:[%s3407_s27 + $0x38] sm:$0x1] }
  0x3e   : > { %471 = vperm.xlu1 %3109, %v425_v9   ;;  %466 = vperm.xlu0 %3108, %v424_v10   ;;  %v968_v8 = vrot.slane %v966_v60, 5  ;;  %v974_v9 = vrot.slane %v972_v61, 5  ;;  %v978_v10 = vrot.slane %v976_v62, 4  ;;  %v998_v17 = vrot.slane %v996_v4, 5  ;;  %4521 = vst [vmem:[#allocation18_spill] sm:$0xff] %v3492_v44  ;;  %v304_v52 = vld [vmem:[#allocation2 + $0xf0] sm:$0xff] }
  0x3f   : > { %2731 = vmatprep.mubr.bf16.mxu0 %v2524_v38  ;;  %v1002_v18 = vrot.slane %v1000_v5, 4  ;;  %v946_v20 = vrot.slane %v945_v6, 4  ;;  %v1011_v30 = vshrl.u32 %v3477_v19, 16  ;;  %v1014_v31 = vshll.u32 %v3477_v19, 16  ;;  %v288_v59 = vld [vmem:[#allocation2 + $0x70] sm:$0xff]  ;;  %v302_v60 = vld [vmem:[#allocation2 + $0xe0] sm:$0xff] }
  0x40   : > { %v969_v21 = vor.u32 %v968_v8, %v965_v7  ;;  %v979_v22 = vor.u32 %v978_v10, %v974_v9  ;;  %v1020_v41 = vshll.u32 %v3482_v29, 16  ;;  %v1024_v51 = vshrl.u32 %v3482_v29, 16  ;;  %v286_v61 = vld [vmem:[#allocation2 + $0x60] sm:$0xff]  ;;  %v305_v10 = vld [vmem:[#allocation2 + $0xf8] sm:$0xff]  ;;  %v3601_v45 = vld [vmem:[%s3407_s27 + $0x48] sm:$0xf] }
  0x41   : > { %v1003_v28 = vor.u32 %v1002_v18, %v998_v17  ;;  %v951_v32 = vsel %vm3414_vm2, %v946_v20, %v950_v63  ;;  %v1013_v49 = vrot.slane %v1011_v30, 4  ;;  %v1016_v50 = vrot.slane %v1014_v31, 5  ;;  %v289_v20 = vld [vmem:[#allocation2 + $0x78] sm:$0xff]  ;;  %4530 = vst [vmem:[#allocation27_spill] sm:$0xff] %v3601_v45 }
  0x42   : > { %461 = vperm.xlu1 %3109, %v423_v11   ;;  %456 = vperm.xlu0 %3108, %v422_v12   ;;  %v955_v11 = vor.u32 %v954_v0, %v950_v63  ;;  %v958_v12 = vshll.u32 %v3465_v3, 16  ;;  %v970_v34 = vrot.slane %v969_v21, 4  ;;  %v980_v35 = vrot.slane %v979_v22, 4  ;;  %v303_v22 = vld [vmem:[#allocation2 + $0xe8] sm:$0xff] }
  0x43   : > { %v1004_v42 = vrot.slane %v1003_v28, 4  ;;  %v3503_v63 = vcombine.low %v3437_v47, %v3440_v48  ;;  %v1017_v6 = vor.u32 %v1016_v50, %v1013_v49  ;;  %v3520_v7 = vrot.slane %v1020_v41, 5  ;;  %v3569_v50 = vld [vmem:[%s3407_s27 + $0x44] sm:$0x1] }
  0x44   : > { %v956_v24 = vrot.slane %v955_v11, 4  ;;  %v960_v25 = vrot.slane %v958_v12, 5  ;;  %v975_v56 = vsel %vm3414_vm2, %v970_v34, %v974_v9  ;;  %v1026_v8 = vrot.slane %v1024_v51, 4  ;;  %v3523_v9 = vld [vmem:[%s3407_s27 + $0x3c] sm:$0xf]  ;;  %4528 = vst [vmem:[#allocation25_spill] sm:$0xff] %v3569_v50 }
  0x45   : > { %4523 = vst [vmem:[#allocation20_spill] sm:$0xff] %v3523_v9  ;;  %v3529_v12 = vcombine.low %v3447_v53, %v3450_v54  ;;  %v1035_v30 = vshrl.u32 %v3523_v9, 16  ;;  %v1038_v31 = vshll.u32 %v3523_v9, 16 }
  0x46   : > { %451 = vperm.xlu1 %3109, %v421_v13   ;;  %446 = vperm.xlu0 %3108, %v420_v14   ;;  %v3471_v13 = vld [vmem:[%s3407_s27 + $0x20] sm:$0x1]  ;;  %v989_v14 = vrot.slane %v987_v1, 4  ;;  %v961_v37 = vsel %vm3414_vm2, %v956_v24, %v960_v25  ;;  %v1030_v1 = vshll.u32 %v3492_v44, 16  ;;  %v287_v24 = vld [vmem:[#allocation2 + $0x68] sm:$0xff] }
  0x47   : > { %4517 = vst [vmem:[#allocation14_spill] sm:$0xff] %v3471_v13  ;;  %v982_v23 = vshll.u32 %v3471_v13, 16  ;;  %v3499_v62 = vcombine.low %v951_v32, %v961_v37 }
  0x48   : > { %v3551_v28 = vrot.slane %v1030_v1, 5 }
  0x49   : > { %v984_v36 = vrot.slane %v982_v23, 5 }
  0x4a   : > { %441 = vperm.xlu1 %3109, %v419_v15   ;;  %436 = vperm.xlu0 %3108, %v418_v16   ;;  %v992_v15 = vrot.slane %v990_v2, 5  ;;  %v3474_v16 = vld [vmem:[%s3407_s27 + $0x2c] sm:$0x1] }
  0x4b   : > { %4518 = vst [vmem:[#allocation15_spill] sm:$0xff] %v3474_v16  ;;  %v1006_v27 = vshll.u32 %v3474_v16, 16  ;;  %v985_v57 = vsel %vm3414_vm2, %v980_v35, %v984_v36  ;;  %v3559_v35 = vrot.slane %v1017_v6, 4  ;;  %v1027_v36 = vor.u32 %v1026_v8, %v3520_v7  ;;  %v284_v6 = vld [vmem:[#allocation2 + $0x50] sm:$0xff]  ;;  %v285_v8 = vld [vmem:[#allocation2 + $0x58] sm:$0xff] }
  0x4c   : > { %v993_v26 = vor.u32 %v992_v15, %v989_v14  ;;  %v3525_v11 = vcombine.low %v975_v56, %v985_v57  ;;  %v3533_v14 = vcombine.low %v3453_v55, %v3456_v58  ;;  %v3537_v15 = vcombine.low %v3477_v19, %v3482_v29  ;;  %v278_v29 = vld [vmem:[#allocation2 + $0x20] sm:$0xff] }
  0x4d   : > { %v1008_v39 = vrot.slane %v1006_v27, 5 }
  0x4e   : > { %v994_v38 = vrot.slane %v993_v26, 4  ;;  %4524 = vst [vmem:[#allocation21_spill] sm:$0xff] %v3533_v14  ;;  %4525 = vst [vmem:[#allocation22_spill] sm:$0xff] %v3537_v15  ;;  %v3547_v26 = vld [vmem:[%s3512_s7] ss:$0 sm:$0xff]  ;;  %v335_v15 = vld [vmem:[#allocation2 + $0x1e8] sm:$0xff] }
  0x4f   : > { %v1009_v5 = vsel %vm3414_vm2, %v1004_v42, %v1008_v39 }
  0x50   : > { %v999_v0 = vsel %vm3414_vm2, %v994_v38, %v998_v17  ;;  %v3540_v17 = vld [vmem:[%s3407_s27 + $0x40] sm:$0xf] }
  0x51   : > { %4526 = vst [vmem:[#allocation23_spill] sm:$0xff] %v3540_v17  ;;  %v3549_v27 = vcombine.low %v999_v0, %v1009_v5  ;;  %v1044_v37 = vshll.u32 %v3540_v17, 16  ;;  %v1048_v38 = vshrl.u32 %v3540_v17, 16  ;;  %v301_v5 = vld [vmem:[#allocation2 + $0xd8] sm:$0xff] }
  0x53   : > { %4527 = vst [vmem:[#allocation24_spill] sm:$0xff] %v3549_v27 }
  0xa9   : > { %v3514_v2 = vpop.permute.xlu0 %506  ;;  %v3516_v4 = vpop.permute.xlu1 %496 }
  0xaa   : > { %4522 = vst [vmem:[#allocation19_spill] sm:$0xff] %v3514_v2  ;;  %v544_v18 = vmul.f32 %v3514_v2, %v304_v52  ;;  %v528_v21 = vmul.f32 %v3514_v2, %v288_v59  ;;  %v542_v23 = vmul.f32 %v3516_v4, %v302_v60  ;;  %v526_v25 = vmul.f32 %v3516_v4, %v286_v61  ;;  %v300_v59 = vld [vmem:[#allocation2 + $0xd0] sm:$0xff] }
  0xac   : > { %v695_v51 = vmul.f32 %v3547_v26, %v544_v18  ;;  %v679_v52 = vmul.f32 %v3547_v26, %v528_v21  ;;  %v693_v56 = vmul.f32 %v3547_v26, %v542_v23  ;;  %v677_v57 = vmul.f32 %v3547_v26, %v526_v25 }
  0xad   : > { %v3555_v32 = vpop.permute.xlu0 %511  ;;  %v3557_v34 = vpop.permute.xlu1 %501  ;;  %v3585_v21 = vrot.slane %v1038_v31, 5  ;;  %v1054_v23 = vshll.u32 %v3569_v50, 16 }
  0xae   : > { %v545_v39 = vmul.f32 %v3555_v32, %v305_v10  ;;  %v529_v41 = vmul.f32 %v3555_v32, %v289_v20  ;;  %v543_v42 = vmul.f32 %v3557_v34, %v303_v22  ;;  %v527_v49 = vmul.f32 %v3557_v34, %v287_v24 }
  0xaf   : > { %v3583_v20 = vrot.slane %v1035_v30, 4  ;;  %v3587_v22 = vrot.slane %v1044_v37, 5  ;;  %v298_v37 = vld [vmem:[#allocation2 + $0xc0] sm:$0xff] }
  0xb0   : > { %v696_v60 = vmul.f32 %v3547_v26, %v545_v39  ;;  %v680_v61 = vmul.f32 %v3547_v26, %v529_v41  ;;  %v694_v0 = vmul.f32 %v3547_v26, %v543_v42  ;;  %v678_v1 = vmul.f32 %v3547_v26, %v527_v49 }
  0xb1   : > { %v3579_v10 = vpop.permute.xlu1 %491  ;;  %v3581_v18 = vpop.permute.xlu0 %486  ;;  %v3590_v39 = vrot.slane %v1027_v36, 4  ;;  %v3594_v41 = vcombine.low %v3523_v9, %v3540_v17  ;;  %v280_v9 = vld [vmem:[#allocation2 + $0x30] sm:$0xff] }
  0xb2   : > { %v824_v24 = vpack.c.bf16 %v696_v60, %v695_v51  ;;  %v816_v25 = vpack.c.bf16 %v680_v61, %v679_v52  ;;  %v540_v42 = vmul.f32 %v3581_v18, %v300_v59  ;;  %v541_v49 = vmul.f32 %v3579_v10, %v301_v5  ;;  %v282_v52 = vld [vmem:[#allocation2 + $0x40] sm:$0xff]  ;;  %v283_v60 = vld [vmem:[#allocation2 + $0x48] sm:$0xff] }
  0xb3   : > { %4529 = vst [vmem:[#allocation26_spill] sm:$0xff] %v3594_v41  ;;  %v524_v30 = vmul.f32 %v3581_v18, %v284_v6  ;;  %v525_v31 = vmul.f32 %v3579_v10, %v285_v8  ;;  %v823_v36 = vpack.c.bf16 %v694_v0, %v693_v56  ;;  %v815_v51 = vpack.c.bf16 %v678_v1, %v677_v57  ;;  %v3622_v1 = vld [vmem:[%s3407_s27 + $0x4c] sm:$0xf] }
  0xb4   : > { %2715 = vmatprep.subr.bf16.mxu0 %v824_v24  ;;  %2747 = vmatprep.subr.bf16.mxu1 %v816_v25  ;;  %v1023_v59 = vsel %vm3414_vm2, %v3559_v35, %v3520_v7  ;;  %v3607_v61 = vrot.slane %v1048_v38, 4  ;;  %v691_v8 = vmul.f32 %v3547_v26, %v540_v42  ;;  %v692_v56 = vmul.f32 %v3547_v26, %v541_v49  ;;  %v296_v49 = vld [vmem:[#allocation2 + $0xb0] sm:$0xff]  ;;  %v275_v41 = vld [vmem:[#allocation2 + $0x8] sm:$0xff] }
  0xb5   : > { %v3609_v5 = vpop.permute.xlu1 %481  ;;  %v3611_v6 = vpop.permute.xlu0 %476  ;;  %2716 = vmatpush3.bf16.msra.mxu0 %v824_v24  ;;  %2748 = vmatpush3.bf16.msra.mxu1 %v816_v25  ;;  %v675_v57 = vmul.f32 %v3547_v26, %v524_v30  ;;  %v3616_v0 = vrot.slane %v1054_v23, 5  ;;  %v676_v7 = vmul.f32 %v3547_v26, %v525_v31  ;;  %4531 = vst [vmem:[#allocation28_spill] sm:$0xff] %v3622_v1  ;;  %v1059_v24 = vshrl.u32 %v3601_v45, 16  ;;  %v297_v30 = vld [vmem:[#allocation2 + $0xb8] sm:$0xff] }
  0xb6   : > { %2717 = vmatprep.subr.bf16.mxu0 %v823_v36  ;;  %2749 = vmatprep.subr.bf16.mxu1 %v815_v51  ;;  %v538_v35 = vmul.f32 %v3611_v6, %v298_v37  ;;  %v539_v38 = vmul.f32 %v3609_v5, %v299_v46  ;;  %v522_v25 = vmul.f32 %v3611_v6, %v282_v52  ;;  %v281_v52 = vld [vmem:[#allocation2 + $0x38] sm:$0xff] }
  0xb7   : > { %v523_v42 = vmul.f32 %v3609_v5, %v283_v60  ;;  %v1033_v23 = vsel %vm3414_vm2, %v3590_v39, %v3551_v28  ;;  %v1041_v31 = vor.u32 %v3585_v21, %v3583_v20  ;;  %v822_v37 = vpack.c.bf16 %v692_v56, %v691_v8 }
  0xb8   : > { %v814_v46 = vpack.c.bf16 %v676_v7, %v675_v57  ;;  %v689_v50 = vmul.f32 %v3547_v26, %v538_v35  ;;  %v690_v17 = vmul.f32 %v3547_v26, %v539_v38  ;;  %v673_v44 = vmul.f32 %v3547_v26, %v522_v25  ;;  %v294_v7 = vld [vmem:[#allocation2 + $0xa0] sm:$0xff]  ;;  %v295_v35 = vld [vmem:[#allocation2 + $0xa8] sm:$0xff] }
  0xb9   : > { %v3635_v43 = vpop.permute.xlu1 %471  ;;  %v3637_v60 = vpop.permute.xlu0 %466  ;;  %2718 = vmatpush3.bf16.msra.mxu0 %v823_v36  ;;  %2750 = vmatpush3.bf16.msra.mxu1 %v815_v51  ;;  %v674_v28 = vmul.f32 %v3547_v26, %v523_v42  ;;  %v1062_v20 = vshll.u32 %v3601_v45, 16  ;;  %v1068_v21 = vshll.u32 %v3622_v1, 16  ;;  %v1051_v56 = vor.u32 %v3607_v61, %v3587_v22  ;;  %v279_v61 = vld [vmem:[#allocation2 + $0x28] sm:$0xff] }
  0xba   : > { %2719 = vmatprep.subr.bf16.mxu0 %v822_v37  ;;  %2751 = vmatprep.subr.bf16.mxu1 %v814_v46  ;;  %v536_v39 = vmul.f32 %v3637_v60, %v296_v49  ;;  %v537_v8 = vmul.f32 %v3635_v43, %v297_v30  ;;  %v3647_v57 = vrot.slane %v1059_v24, 4  ;;  %v520_v36 = vmul.f32 %v3637_v60, %v280_v9 }
  0xbb   : > { %v521_v51 = vmul.f32 %v3635_v43, %v281_v52  ;;  %v3651_v38 = vcombine.low %v1023_v59, %v1033_v23  ;;  %v1072_v25 = vshrl.u32 %v3622_v1, 16  ;;  %v821_v42 = vpack.c.bf16 %v690_v17, %v689_v50 }
  0xbc   : > { %v813_v19 = vpack.c.bf16 %v674_v28, %v673_v44  ;;  %v687_v49 = vmul.f32 %v3547_v26, %v536_v39  ;;  %v688_v30 = vmul.f32 %v3547_v26, %v537_v8  ;;  %v671_v9 = vmul.f32 %v3547_v26, %v520_v36  ;;  %v292_v39 = vld [vmem:[#allocation2 + $0x90] sm:$0xff]  ;;  %v293_v8 = vld [vmem:[#allocation2 + $0x98] sm:$0xff] }
  0xbd   : > { %4532 = vst [vmem:[#allocation29_spill] sm:$0xff] %v3651_v38  ;;  %v3656_v24 = vpop.permute.xlu1 %461  ;;  %v3658_v16 = vpop.permute.xlu0 %456  ;;  %2720 = vmatpush3.bf16.msra.mxu0 %v822_v37  ;;  %2752 = vmatpush3.bf16.msra.mxu1 %v814_v46  ;;  %v672_v59 = vmul.f32 %v3547_v26, %v521_v51  ;;  %v3662_v23 = vrot.slane %v1041_v31, 4  ;;  %v3664_v44 = vrot.slane %v1062_v20, 5  ;;  %v3668_v52 = vrot.slane %v1051_v56, 4  ;;  %v3675_v31 = vld [vmem:[%s3407_s27 + $0x50] sm:$0x1] }
  0xbe   : > { %2721 = vmatprep.subr.bf16.mxu0 %v821_v42  ;;  %2753 = vmatprep.subr.bf16.mxu1 %v813_v19  ;;  %v534_v17 = vmul.f32 %v3658_v16, %v294_v7  ;;  %v535_v50 = vmul.f32 %v3656_v24, %v295_v35  ;;  %v3670_v28 = vrot.slane %v1068_v21, 5  ;;  %v518_v37 = vmul.f32 %v3658_v16, %v278_v29  ;;  %v276_v35 = vld [vmem:[#allocation2 + $0x10] sm:$0xff]  ;;  %v277_v29 = vld [vmem:[#allocation2 + $0x18] sm:$0xff] }
  0xbf   : > { %v519_v46 = vmul.f32 %v3656_v24, %v279_v61  ;;  %4533 = vst [vmem:[#allocation30_spill] sm:$0xff] %v3675_v31  ;;  %v3677_v20 = vrot.slane %v1072_v25, 4  ;;  %v3681_v36 = vcombine.low %v3601_v45, %v3622_v1  ;;  %v820_v51 = vpack.c.bf16 %v688_v30, %v687_v49  ;;  %v290_v49 = vld [vmem:[#allocation2 + $0x80] sm:$0xff]  ;;  %v291_v1 = vld [vmem:[#allocation2 + $0x88] sm:$0xff] }
  0xc0   : > { %v812_v7 = vpack.c.bf16 %v672_v59, %v671_v9  ;;  %v685_v56 = vmul.f32 %v3547_v26, %v534_v17  ;;  %v686_v21 = vmul.f32 %v3547_v26, %v535_v50  ;;  %v669_v25 = vmul.f32 %v3547_v26, %v518_v37  ;;  %v320_v59 = vld [vmem:[#allocation2 + $0x170] sm:$0xff]  ;;  %v321_v17 = vld [vmem:[#allocation2 + $0x178] sm:$0xff] }
  0xc1   : > { %4534 = vst [vmem:[#allocation31_spill] sm:$0xff] %v3681_v36  ;;  %v3685_v61 = vpop.permute.xlu1 %451  ;;  %v3687_v58 = vpop.permute.xlu0 %446  ;;  %2722 = vmatpush3.bf16.msra.mxu0 %v821_v42  ;;  %2754 = vmatpush3.bf16.msra.mxu1 %v813_v19  ;;  %v670_v45 = vmul.f32 %v3547_v26, %v519_v46  ;;  %v1065_v19 = vor.u32 %v3664_v44, %v3647_v57  ;;  %v1078_v42 = vshll.u32 %v3675_v31, 16  ;;  %v3701_v50 = vld [vmem:[%s3407_s27 + $0x54] sm:$0xf] }
  0xc2   : > { %4535 = vst [vmem:[#allocation32_spill] sm:$0xff] %v3685_v61  ;;  %4536 = vst [vmem:[#allocation33_spill] sm:$0xff] %v3687_v58  ;;  %2723 = vmatprep.subr.bf16.mxu0 %v820_v51  ;;  %2755 = vmatprep.subr.bf16.mxu1 %v812_v7  ;;  %v532_v30 = vmul.f32 %v3687_v58, %v292_v39  ;;  %v533_v9 = vmul.f32 %v3685_v61, %v293_v8  ;;  %v336_v36 = vld [vmem:[#allocation2 + $0x1f0] sm:$0xff] }
  0xc3   : > { %v516_v37 = vmul.f32 %v3687_v58, %v276_v35  ;;  %v517_v46 = vmul.f32 %v3685_v61, %v277_v29  ;;  %v1075_v8 = vor.u32 %v3677_v20, %v3670_v28  ;;  %v819_v57 = vpack.c.bf16 %v686_v21, %v685_v56  ;;  %v274_v35 = vld [vmem:[#allocation2] sm:$0xff]  ;;  %v337_v29 = vld [vmem:[#allocation2 + $0x1f8] sm:$0xff] }
  0xc4   : > { %v811_v44 = vpack.c.bf16 %v670_v45, %v669_v25  ;;  %v683_v31 = vmul.f32 %v3547_v26, %v532_v30  ;;  %v684_v55 = vmul.f32 %v3547_v26, %v533_v9  ;;  %v560_v20 = vmul.f32 %v3514_v2, %v320_v59  ;;  %v318_v30 = vld [vmem:[#allocation2 + $0x160] sm:$0xff] }
  0xc5   : > { %v3713_v13 = vpop.permute.xlu1 %441  ;;  %v3715_v53 = vpop.permute.xlu0 %436  ;;  %2724 = vmatpush3.bf16.msra.mxu0 %v820_v51  ;;  %2756 = vmatpush3.bf16.msra.mxu1 %v812_v7  ;;  %v667_v39 = vmul.f32 %v3547_v26, %v516_v37  ;;  %v668_v61 = vmul.f32 %v3547_v26, %v517_v46  ;;  %v1083_v45 = vshrl.u32 %v3701_v50, 16  ;;  %v576_v25 = vmul.f32 %v3514_v2, %v336_v36  ;;  %v319_v46 = vld [vmem:[#allocation2 + $0x168] sm:$0xff]  ;;  %v334_v58 = vld [vmem:[#allocation2 + $0x1e0] sm:$0xff] }
  0xc6   : > { %2725 = vmatprep.subr.bf16.mxu0 %v819_v57  ;;  %2757 = vmatprep.subr.bf16.mxu1 %v811_v44  ;;  %v530_v56 = vmul.f32 %v3715_v53, %v290_v49  ;;  %v531_v21 = vmul.f32 %v3713_v13, %v291_v1  ;;  %v1086_v51 = vshll.u32 %v3701_v50, 16  ;;  %v514_v7 = vmul.f32 %v3715_v53, %v274_v35 }
  0xc7   : > { %v515_v9 = vmul.f32 %v3713_v13, %v275_v41  ;;  %v561_v37 = vmul.f32 %v3555_v32, %v321_v17  ;;  %v577_v59 = vmul.f32 %v3555_v32, %v337_v29  ;;  %v818_v38 = vpack.c.bf16 %v684_v55, %v683_v31 }
  0xc8   : > { %v810_v49 = vpack.c.bf16 %v668_v61, %v667_v39  ;;  %v681_v1 = vmul.f32 %v3547_v26, %v530_v56  ;;  %v682_v36 = vmul.f32 %v3547_v26, %v531_v21  ;;  %v665_v2 = vmul.f32 %v3547_v26, %v514_v7  ;;  %v316_v61 = vld [vmem:[#allocation2 + $0x150] sm:$0xff] }
  0xc9   : > { %2726 = vmatpush3.bf16.msra.mxu0 %v819_v57  ;;  %2758 = vmatpush3.bf16.msra.mxu1 %v811_v44  ;;  %v666_v35 = vmul.f32 %v3547_v26, %v515_v9  ;;  %v558_v41 = vmul.f32 %v3516_v4, %v318_v30  ;;  %v559_v17 = vmul.f32 %v3557_v34, %v319_v46  ;;  %v3737_v39 = vrot.slane %v1065_v19, 4  ;;  %v317_v9 = vld [vmem:[#allocation2 + $0x158] sm:$0xff]  ;;  %v332_v46 = vld [vmem:[#allocation2 + $0x1d0] sm:$0xff] }
  0xca   : > { %2727 = vmatprep.subr.bf16.mxu0 %v818_v38  ;;  %2759 = vmatprep.subr.bf16.mxu1 %v810_v49  ;;  %v574_v55 = vmul.f32 %v3516_v4, %v334_v58  ;;  %v575_v31 = vmul.f32 %v3557_v34, %v335_v15  ;;  %v3739_v57 = vrot.slane %v1078_v42, 5  ;;  %v3741_v44 = vrot.slane %v1083_v45, 4  ;;  %v3748_v58 = vld [vmem:[%s3407_s27 + $0x58] sm:$0xf] }
  0xcb   : > { %v3743_v29 = vrot.slane %v1086_v51, 5  ;;  %v817_v56 = vpack.c.bf16 %v682_v36, %v681_v1  ;;  %v809_v21 = vpack.c.bf16 %v666_v35, %v665_v2  ;;  %v712_v30 = vmul.f32 %v3547_v26, %v561_v37  ;;  %v333_v45 = vld [vmem:[#allocation2 + $0x1d8] sm:$0xff] }
  0xcc   : > { %v728_v7 = vmul.f32 %v3547_v26, %v577_v59  ;;  %v711_v15 = vmul.f32 %v3547_v26, %v560_v20  ;;  %v727_v19 = vmul.f32 %v3547_v26, %v576_v25  ;;  %v709_v42 = vmul.f32 %v3547_v26, %v558_v41  ;;  %v315_v41 = vld [vmem:[#allocation2 + $0x148] sm:$0xff] }
  0xcd   : > { %2728 = vmatpush3.bf16.msra.mxu0 %v818_v38  ;;  %2760 = vmatpush3.bf16.msra.mxu1 %v810_v49  ;;  %v1076_v51 = vrot.slane %v1075_v8, 4  ;;  %v710_v2 = vmul.f32 %v3547_v26, %v559_v17  ;;  %v725_v37 = vmul.f32 %v3547_v26, %v574_v55  ;;  %v726_v59 = vmul.f32 %v3547_v26, %v575_v31  ;;  %v314_v49 = vld [vmem:[#allocation2 + $0x140] sm:$0xff] }
  0xce   : > { %2729 = vmatprep.subr.bf16.mxu0 %v817_v56  ;;  %2761 = vmatprep.subr.bf16.mxu1 %v809_v21  ;;  %v556_v1 = vmul.f32 %v3581_v18, %v316_v61  ;;  %v557_v38 = vmul.f32 %v3579_v10, %v317_v9  ;;  %v572_v20 = vmul.f32 %v3581_v18, %v332_v46  ;;  %v1092_v25 = vshll.u32 %v3748_v58, 16  ;;  %v330_v61 = vld [vmem:[#allocation2 + $0x1c0] sm:$0xff]  ;;  %v312_v9 = vld [vmem:[#allocation2 + $0x130] sm:$0xff] }
  0xcf   : > { %v832_v36 = vpack.c.bf16 %v712_v30, %v711_v15  ;;  %v840_v35 = vpack.c.bf16 %v728_v7, %v727_v19  ;;  %v573_v8 = vmul.f32 %v3579_v10, %v333_v45  ;;  %v4537_v17 = vsel %vm3414_vm2, %v3668_v52, %v3616_v0  ;;  %v331_v30 = vld [vmem:[#allocation2 + $0x1c8] sm:$0xff]  ;;  %v313_v15 = vld [vmem:[#allocation2 + $0x138] sm:$0xff]  ;;  %v328_v45 = vld [vmem:[#allocation2 + $0x1b0] sm:$0xff] }
  0xd0   : > { %v4538_v55 = vsel %vm3414_vm2, %v3662_v23, %v3587_v22  ;;  %v1071_v7 = vsel %vm3414_vm2, %v3737_v39, %v3670_v28  ;;  %v1081_v0 = vsel %vm3414_vm2, %v1076_v51, %v3739_v57  ;;  %v1089_v52 = vor.u32 %v3743_v29, %v3741_v44  ;;  %v3789_v19 = vld [vmem:[%s3407_s27 + $0x5c] sm:$0x1] }
  0xd1   : > { %v3771_v31 = vcombine.low %v4538_v55, %v4537_v17  ;;  %2730 = vmatpush3.bf16.msra.mxu0 %v817_v56  ;;  %2762 = vmatpush3.bf16.msra.mxu1 %v809_v21  ;;  %v1096_v22 = vshrl.u32 %v3748_v58, 16  ;;  %v831_v23 = vpack.c.bf16 %v710_v2, %v709_v42  ;;  %v839_v56 = vpack.c.bf16 %v726_v59, %v725_v37  ;;  %v329_v51 = vld [vmem:[#allocation2 + $0x1b8] sm:$0xff]  ;;  %v311_v17 = vld [vmem:[#allocation2 + $0x128] sm:$0xff] }
  0xd2   : > { %2779 = vmatprep.subr.bf16.mxu0 %v832_v36  ;;  %2811 = vmatprep.subr.bf16.mxu1 %v840_v35  ;;  %v554_v21 = vmul.f32 %v3611_v6, %v314_v49  ;;  %v707_v46 = vmul.f32 %v3547_v26, %v556_v1  ;;  %v708_v28 = vmul.f32 %v3547_v26, %v557_v38  ;;  %v3797_v37 = vrot.slane %v1092_v25, 5 }
  0xd3   : > { %4539 = vst [vmem:[#allocation34_spill] sm:$0xff] %v3771_v31  ;;  %v723_v39 = vmul.f32 %v3547_v26, %v572_v20  ;;  %v555_v57 = vmul.f32 %v3609_v5, %v315_v41  ;;  %v724_v44 = vmul.f32 %v3547_v26, %v573_v8  ;;  %v570_v29 = vmul.f32 %v3611_v6, %v330_v61  ;;  %v310_v41 = vld [vmem:[#allocation2 + $0x120] sm:$0xff] }
  0xd4   : > { %2732 = vmatmul.mubr.bf16.vlgmr.msra.gmra.mxu0 %v3499_v62  ;;  %2764 = vmatmul.mubr.bf16.vlgmr.msra.gmra.mxu1 %v3503_v63  ;;  %v571_v42 = vmul.f32 %v3609_v5, %v331_v30  ;;  %v552_v2 = vmul.f32 %v3637_v60, %v312_v9  ;;  %v1098_v59 = vrot.slane %v1096_v22, 4  ;;  %v3801_v1 = vcombine.low %v3701_v50, %v3748_v58  ;;  %v327_v9 = vld [vmem:[#allocation2 + $0x1a8] sm:$0xff] }
  0xd5   : > { %2780 = vmatpush3.bf16.msra.mxu0 %v832_v36  ;;  %2812 = vmatpush3.bf16.msra.mxu1 %v840_v35  ;;  %v705_v38 = vmul.f32 %v3547_v26, %v554_v21  ;;  %v553_v20 = vmul.f32 %v3635_v43, %v313_v15  ;;  %v3805_v49 = vcombine.low %v1071_v7, %v1081_v0  ;;  %v1102_v36 = vshll.u32 %v3789_v19, 16  ;;  %v326_v21 = vld [vmem:[#allocation2 + $0x1a0] sm:$0xff] }
  0xd6   : > { %4540 = vst [vmem:[#allocation35_spill] sm:$0xff] %v3801_v1  ;;  %2781 = vmatprep.subr.bf16.mxu0 %v831_v23  ;;  %2813 = vmatprep.subr.bf16.mxu1 %v839_v56  ;;  %v706_v25 = vmul.f32 %v3547_v26, %v555_v57  ;;  %v568_v35 = vmul.f32 %v3637_v60, %v328_v45  ;;  %v3813_v55 = vrot.slane %v1089_v52, 4  ;;  %v2541_v15 = vrot.slane %v3437_v47, 9 }
  0xd7   : > { %4541 = vst [vmem:[#allocation36_spill] sm:$0xff] %v3805_v49  ;;  %2735 = vmatprep.mubr.bf16.mxu0 %v3525_v11  ;;  %2767 = vmatprep.mubr.bf16.mxu1 %v3529_v12  ;;  %v569_v8 = vmul.f32 %v3635_v43, %v329_v51  ;;  %v830_v61 = vpack.c.bf16 %v708_v28, %v707_v46  ;;  %v1400_v45 = vrot.slane %v3440_v48, 5  ;;  %v1403_v52 = vrot.slane %v3465_v3, 5  ;;  %v309_v51 = vld [vmem:[#allocation2 + $0x118] sm:$0xff] }
  0xd8   : > { %v838_v30 = vpack.c.bf16 %v724_v44, %v723_v39  ;;  %v721_v7 = vmul.f32 %v3547_v26, %v570_v29  ;;  %v722_v0 = vmul.f32 %v3547_v26, %v571_v42  ;;  %v703_v22 = vmul.f32 %v3547_v26, %v552_v2  ;;  %v308_v42 = vld [vmem:[#allocation2 + $0x110] sm:$0xff] }
  0xd9   : > { %2782 = vmatpush3.bf16.msra.mxu0 %v831_v23  ;;  %2814 = vmatpush3.bf16.msra.mxu1 %v839_v56  ;;  %v1099_v57 = vor.u32 %v1098_v59, %v3797_v37  ;;  %v704_v46 = vmul.f32 %v3547_v26, %v553_v20  ;;  %v550_v28 = vmul.f32 %v3658_v16, %v310_v41  ;;  %v1104_v2 = vrot.slane %v1102_v36, 5  ;;  %v324_v59 = vld [vmem:[#allocation2 + $0x190] sm:$0xff] }
  0xda   : > { %2783 = vmatprep.subr.bf16.mxu0 %v830_v61  ;;  %2815 = vmatprep.subr.bf16.mxu1 %v838_v30  ;;  %v551_v23 = vmul.f32 %v3656_v24, %v311_v17  ;;  %v829_v56 = vpack.c.bf16 %v706_v25, %v705_v38  ;;  %v719_v39 = vmul.f32 %v3547_v26, %v568_v35  ;;  %v325_v38 = vld [vmem:[#allocation2 + $0x198] sm:$0xff]  ;;  %v1402_v25 = vrot.slane %v1400_v45, 4 }
  0xdb   : > { %v720_v44 = vmul.f32 %v3547_v26, %v569_v8  ;;  %v1095_v47 = vsel %vm3414_vm2, %v3813_v55, %v3797_v37  ;;  %v837_v48 = vpack.c.bf16 %v722_v0, %v721_v7  ;;  %v566_v3 = vmul.f32 %v3658_v16, %v326_v21  ;;  %v4542_v55 = vld [vmem:[#allocation29_spill] sm:$0xff]  ;;  %v4545_v0 = vld [vmem:[#allocation32_spill] sm:$0xff] }
  0xdc   : > { %2736 = vmatmul.mubr.bf16.gmra.mxu0 %v3549_v27  ;;  %2768 = vmatmul.mubr.bf16.gmra.mxu1 %v3533_v14  ;;  %v567_v29 = vmul.f32 %v3656_v24, %v327_v9  ;;  %v1100_v20 = vrot.slane %v1099_v57, 4  ;;  %v3837_v37 = vsel %vm3422_vm5, %v2541_v15, %v1400_v45  ;;  %v1407_v35 = vrot.slane %v3450_v54, 5  ;;  %v306_v9 = vld [vmem:[#allocation2 + $0x100] sm:$0xff]  ;;  %v307_v57 = vld [vmem:[#allocation2 + $0x108] sm:$0xff]  ;;  %v4546_v15 = vld [vmem:[#allocation11_spill] sm:$0xff] }
  0xdd   : > { %2784 = vmatpush3.bf16.msra.mxu0 %v830_v61  ;;  %2816 = vmatpush3.bf16.msra.mxu1 %v838_v30  ;;  %v828_v8 = vpack.c.bf16 %v704_v46, %v703_v22  ;;  %v701_v41 = vmul.f32 %v3547_v26, %v550_v28  ;;  %v702_v17 = vmul.f32 %v3547_v26, %v551_v23  ;;  %v4543_v61 = vld [vmem:[#allocation22_spill] sm:$0xff]  ;;  %v4544_v30 = vld [vmem:[#allocation33_spill] sm:$0xff]  ;;  %v2542_v54 = vrot.slane %v4546_v15, 9  ;;  %v322_v23 = vld [vmem:[#allocation2 + $0x180] sm:$0xff] }
  0xde   : > { %2785 = vmatprep.subr.bf16.mxu0 %v829_v56  ;;  %2817 = vmatprep.subr.bf16.mxu1 %v837_v48  ;;  %v836_v36 = vpack.c.bf16 %v720_v44, %v719_v39  ;;  %v548_v7 = vmul.f32 %v4544_v30, %v308_v42  ;;  %v549_v21 = vmul.f32 %v4545_v0, %v309_v51  ;;  %v323_v39 = vld [vmem:[#allocation2 + $0x188] sm:$0xff]  ;;  %v1409_v51 = vrot.slane %v1407_v35, 4  ;;  %v4547_v15 = vld [vmem:[#allocation14_spill] sm:$0xff] }
  0xdf   : > { %2739 = vmatprep.mubr.bf16.mxu0 %v4542_v55  ;;  %2771 = vmatprep.mubr.bf16.mxu1 %v4543_v61  ;;  %v717_v45 = vmul.f32 %v3547_v26, %v566_v3  ;;  %v718_v22 = vmul.f32 %v3547_v26, %v567_v29  ;;  %v564_v46 = vmul.f32 %v4544_v30, %v324_v59  ;;  %v1410_v55 = vrot.slane %v4547_v15, 5 }
  0xe0   : > { %v565_v28 = vmul.f32 %v4545_v0, %v325_v38  ;;  %v1105_v44 = vsel %vm3414_vm2, %v1100_v20, %v1104_v2  ;;  %v1404_v42 = vsel %vm3422_vm5, %v1402_v25, %v1403_v52  ;;  %v827_v3 = vpack.c.bf16 %v702_v17, %v701_v41  ;;  %v353_v20 = vld [vmem:[#allocation2 + $0x278] sm:$0xff]  ;;  %v4548_v52 = vld [vmem:[#allocation26_spill] sm:$0xff] }
  0xe1   : > { %2786 = vmatpush3.bf16.msra.mxu0 %v829_v56  ;;  %2818 = vmatpush3.bf16.msra.mxu1 %v837_v48  ;;  %v546_v29 = vmul.f32 %v3715_v53, %v306_v9  ;;  %v547_v59 = vmul.f32 %v3713_v13, %v307_v57  ;;  %v699_v38 = vmul.f32 %v3547_v26, %v548_v7  ;;  %v369_v9 = vld [vmem:[#allocation2 + $0x2f8] sm:$0xff] }
  0xe2   : > { %2787 = vmatprep.subr.bf16.mxu0 %v828_v8  ;;  %2819 = vmatprep.subr.bf16.mxu1 %v836_v36  ;;  %v700_v56 = vmul.f32 %v3547_v26, %v549_v21  ;;  %v562_v48 = vmul.f32 %v3715_v53, %v322_v23  ;;  %v563_v2 = vmul.f32 %v3713_v13, %v323_v39  ;;  %v352_v21 = vld [vmem:[#allocation2 + $0x270] sm:$0xff]  ;;  %v4550_v39 = vld [vmem:[#allocation12_spill] sm:$0xff] }
  0xe3   : > { %v835_v25 = vpack.c.bf16 %v718_v22, %v717_v45  ;;  %v715_v41 = vmul.f32 %v3547_v26, %v564_v46  ;;  %v716_v17 = vmul.f32 %v3547_v26, %v565_v28  ;;  %v3866_v7 = vcombine.low %v1095_v47, %v1105_v44  ;;  %v4551_v47 = vld [vmem:[#allocation13_spill] sm:$0xff]  ;;  %v4552_v28 = vld [vmem:[#allocation31_spill] sm:$0xff] }
  0xe4   : > { %2740 = vmatmul.mubr.bf16.gmra.mxu0 %v3771_v31  ;;  %2772 = vmatmul.mubr.bf16.gmra.mxu1 %v4548_v52  ;;  %v1408_v57 = vsel %vm3422_vm5, %v2542_v54, %v1407_v35  ;;  %v1411_v23 = vsel %vm3422_vm5, %v1409_v51, %v1410_v55  ;;  %v2543_v15 = vrot.slane %v4550_v39, 9  ;;  %v697_v45 = vmul.f32 %v3547_v26, %v546_v29  ;;  %v4553_v29 = vld [vmem:[#allocation19_spill] sm:$0xff]  ;;  %v367_v31 = vld [vmem:[#allocation2 + $0x2e8] sm:$0xff] }
  0xe5   : > { %2788 = vmatpush3.bf16.msra.mxu0 %v828_v8  ;;  %2820 = vmatpush3.bf16.msra.mxu1 %v836_v36  ;;  %4549 = vst [vmem:[#allocation22_spill] sm:$0xff] %v3866_v7  ;;  %v698_v22 = vmul.f32 %v3547_v26, %v547_v59  ;;  %v593_v8 = vmul.f32 %v3555_v32, %v353_v20  ;;  %v368_v36 = vld [vmem:[#allocation2 + $0x2f0] sm:$0xff]  ;;  %v1414_v46 = vrot.slane %v4551_v47, 5  ;;  %v350_v20 = vld [vmem:[#allocation2 + $0x260] sm:$0xff] }
  0xe6   : > { %2789 = vmatprep.subr.bf16.mxu0 %v827_v3  ;;  %2821 = vmatprep.subr.bf16.mxu1 %v835_v25  ;;  %v713_v35 = vmul.f32 %v3547_v26, %v562_v48  ;;  %v714_v55 = vmul.f32 %v3547_v26, %v563_v2  ;;  %v609_v54 = vmul.f32 %v3555_v32, %v369_v9  ;;  %v4555_v2 = vld [vmem:[#allocation15_spill] sm:$0xff]  ;;  %v4556_v9 = vld [vmem:[#allocation17_spill] sm:$0xff] }
  0xe7   : > { %2743 = vmatprep.mubr.bf16.mxu0 %v3805_v49  ;;  %2775 = vmatprep.mubr.bf16.mxu1 %v4552_v28  ;;  %v826_v44 = vpack.c.bf16 %v700_v56, %v699_v38  ;;  %v834_v51 = vpack.c.bf16 %v716_v17, %v715_v41  ;;  %v592_v39 = vmul.f32 %v4553_v29, %v352_v21  ;;  %v366_v49 = vld [vmem:[#allocation2 + $0x2e0] sm:$0xff]  ;;  %v1417_v27 = vrot.slane %v4555_v2, 5 }
  0xe8   : > { %v3884_v59 = vcombine.low %v3837_v37, %v1404_v42  ;;  %v608_v47 = vmul.f32 %v4553_v29, %v368_v36  ;;  %v3887_v48 = vcombine.low %v1408_v57, %v1411_v23  ;;  %v1421_v38 = vrot.slane %v4556_v9, 5  ;;  %v348_v42 = vld [vmem:[#allocation2 + $0x250] sm:$0xff]  ;;  %v349_v23 = vld [vmem:[#allocation2 + $0x258] sm:$0xff] }
  0xe9   : > { %2790 = vmatpush3.bf16.msra.mxu0 %v827_v3  ;;  %2822 = vmatpush3.bf16.msra.mxu1 %v835_v25  ;;  %v825_v56 = vpack.c.bf16 %v698_v22, %v697_v45  ;;  %v744_v37 = vmul.f32 %v3547_v26, %v593_v8  ;;  %v1415_v3 = vsel %vm3422_vm5, %v2543_v15, %v1414_v46  ;;  %v1416_v25 = vrot.slane %v1414_v46, 4  ;;  %v4557_v15 = vld [vmem:[#allocation16_spill] sm:$0xff] }
  0xea   : > { %4554 = vst [vmem:[#allocation33_spill] sm:$0xff] %v3887_v48  ;;  %2791 = vmatprep.subr.bf16.mxu0 %v826_v44  ;;  %2823 = vmatprep.subr.bf16.mxu1 %v834_v51  ;;  %v833_v41 = vpack.c.bf16 %v714_v55, %v713_v35  ;;  %v760_v17 = vmul.f32 %v3547_v26, %v609_v54  ;;  %v2544_v36 = vrot.slane %v4557_v15, 9  ;;  %v365_v55 = vld [vmem:[#allocation2 + $0x2d8] sm:$0xff]  ;;  %v1423_v54 = vrot.slane %v1421_v38, 4 }
  0xeb   : > { %v590_v21 = vmul.f32 %v3516_v4, %v350_v20  ;;  %v591_v57 = vmul.f32 %v3557_v34, %v351_v33  ;;  %v743_v45 = vmul.f32 %v3547_v26, %v592_v39  ;;  %v606_v22 = vmul.f32 %v3516_v4, %v366_v49  ;;  %v364_v33 = vld [vmem:[#allocation2 + $0x2d0] sm:$0xff] }
  0xec   : > { %2744 = vmatmul.mubr.bf16.gmra.mxu0 %v3866_v7  ;;  %2776 = vmatmul.mubr.bf16.gmra.mxu1 %v3801_v1  ;;  %v607_v8 = vmul.f32 %v3557_v34, %v367_v31  ;;  %v759_v46 = vmul.f32 %v3547_v26, %v608_v47  ;;  %v588_v35 = vmul.f32 %v3581_v18, %v348_v42  ;;  %v4558_v20 = vld [vmem:[#allocation18_spill] sm:$0xff]  ;;  %v347_v7 = vld [vmem:[#allocation2 + $0x248] sm:$0xff] }
  0xed   : > { %2792 = vmatpush3.bf16.msra.mxu0 %v826_v44  ;;  %2824 = vmatpush3.bf16.msra.mxu1 %v834_v51  ;;  %v1424_v2 = vrot.slane %v4558_v20, 5  ;;  %v848_v39 = vpack.c.bf16 %v744_v37, %v743_v45  ;;  %v589_v49 = vmul.f32 %v3579_v10, %v349_v23  ;;  %v1418_v31 = vsel %vm3422_vm5, %v1416_v25, %v1417_v27  ;;  %v4559_v44 = vld [vmem:[#allocation9_spill] sm:$0xff]  ;;  %v4560_v51 = vld [vmem:[#allocation10_spill] sm:$0xff]  ;;  %v346_v20 = vld [vmem:[#allocation2 + $0x240] sm:$0xff] }
  0xee   : > { %2793 = vmatprep.subr.bf16.mxu0 %v825_v56  ;;  %2825 = vmatprep.subr.bf16.mxu1 %v833_v41  ;;  %v856_v9 = vpack.c.bf16 %v760_v17, %v759_v46  ;;  %v4561_v15 = vcombine.low %v4559_v44, %v4560_v51  ;;  %v741_v47 = vmul.f32 %v3547_v26, %v590_v21  ;;  %v362_v25 = vld [vmem:[#allocation2 + $0x2c0] sm:$0xff]  ;;  %v363_v17 = vld [vmem:[#allocation2 + $0x2c8] sm:$0xff]  ;;  %v344_v51 = vld [vmem:[#allocation2 + $0x230] sm:$0xff] }
  0xef   : > { %2827 = vmatprep.mubr.bf16.mxu1 %v3503_v63  ;;  %v742_v42 = vmul.f32 %v3547_v26, %v591_v57  ;;  %v757_v37 = vmul.f32 %v3547_v26, %v606_v22  ;;  %v758_v23 = vmul.f32 %v3547_v26, %v607_v8  ;;  %v604_v45 = vmul.f32 %v3581_v18, %v364_v33  ;;  %v4562_v46 = vld [vmem:[#allocation20_spill] sm:$0xff] }
  0xf0   : > { %2795 = vmatprep.mubr.bf16.mxu0 %v4561_v15  ;;  %v605_v27 = vmul.f32 %v3579_v10, %v365_v55  ;;  %v739_v63 = vmul.f32 %v3547_v26, %v588_v35  ;;  %v1422_v21 = vsel %vm3422_vm5, %v2544_v36, %v1421_v38  ;;  %v1425_v57 = vsel %vm3422_vm5, %v1423_v54, %v1424_v2  ;;  %v360_v15 = vld [vmem:[#allocation2 + $0x2b0] sm:$0xff] }
  0xf1   : > { %2794 = vmatpush3.bf16.msra.mxu0 %v825_v56  ;;  %2826 = vmatpush3.bf16.msra.mxu1 %v833_v41  ;;  %v2545_v22 = vrot.slane %v4562_v46, 9  ;;  %v740_v8 = vmul.f32 %v3547_v26, %v589_v49  ;;  %v586_v33 = vmul.f32 %v3611_v6, %v346_v20  ;;  %v587_v55 = vmul.f32 %v3609_v5, %v347_v7  ;;  %v4563_v56 = vld [vmem:[#allocation23_spill] sm:$0xff]  ;;  %v343_v46 = vld [vmem:[#allocation2 + $0x228] sm:$0xff] }
  0xf2   : > { %2843 = vmatprep.subr.bf16.mxu0 %v848_v39  ;;  %2875 = vmatprep.subr.bf16.mxu1 %v856_v9  ;;  %v1428_v41 = vrot.slane %v4563_v56, 5  ;;  %v847_v44 = vpack.c.bf16 %v742_v42, %v741_v47  ;;  %v3929_v35 = vcombine.low %v1415_v3, %v1418_v31  ;;  %v602_v38 = vmul.f32 %v3611_v6, %v362_v25  ;;  %v345_v7 = vld [vmem:[#allocation2 + $0x238] sm:$0xff]  ;;  %v4565_v42 = vld [vmem:[#allocation25_spill] sm:$0xff]  ;;  %v4566_v25 = vld [vmem:[#allocation28_spill] sm:$0xff] }
  0xf3   : > { %v603_v36 = vmul.f32 %v3609_v5, %v363_v17  ;;  %v855_v54 = vpack.c.bf16 %v758_v23, %v757_v37  ;;  %v755_v2 = vmul.f32 %v3547_v26, %v604_v45  ;;  %v756_v49 = vmul.f32 %v3547_v26, %v605_v27  ;;  %v361_v3 = vld [vmem:[#allocation2 + $0x2b8] sm:$0xff]  ;;  %v342_v27 = vld [vmem:[#allocation2 + $0x220] sm:$0xff] }
  0xf4   : > { %4564 = vst [vmem:[#allocation32_spill] sm:$0xff] %v3929_v35  ;;  %2796 = vmatmul.mubr.bf16.vlgmr.msra.gmra.mxu0 %v3884_v59  ;;  %2828 = vmatmul.mubr.bf16.vlgmr.msra.gmra.mxu1 %v3529_v12  ;;  %v3937_v31 = vcombine.low %v1422_v21, %v1425_v57  ;;  %v3941_v47 = vsel %vm3422_vm5, %v2545_v22, %v1428_v41  ;;  %v1431_v20 = vrot.slane %v4565_v42, 5  ;;  %v1435_v37 = vrot.slane %v4566_v25, 5  ;;  %v358_v22 = vld [vmem:[#allocation2 + $0x2a0] sm:$0xff]  ;;  %v4567_v56 = vld [vmem:[#allocation27_spill] sm:$0xff]  ;;  %v359_v42 = vld [vmem:[#allocation2 + $0x2a8] sm:$0xff] }
  0xf5   : > { %2844 = vmatpush3.bf16.msra.mxu0 %v848_v39  ;;  %2876 = vmatpush3.bf16.msra.mxu1 %v856_v9  ;;  %v846_v23 = vpack.c.bf16 %v740_v8, %v739_v63  ;;  %v737_v45 = vmul.f32 %v3547_v26, %v586_v33  ;;  %v738_v39 = vmul.f32 %v3547_v26, %v587_v55  ;;  %v1430_v9 = vrot.slane %v1428_v41, 4 }
  0xf6   : > { %2845 = vmatprep.subr.bf16.mxu0 %v847_v44  ;;  %2877 = vmatprep.subr.bf16.mxu1 %v855_v54  ;;  %v753_v17 = vmul.f32 %v3547_v26, %v602_v38  ;;  %v754_v21 = vmul.f32 %v3547_v26, %v603_v36  ;;  %v584_v57 = vmul.f32 %v3637_v60, %v344_v51  ;;  %v2546_v63 = vrot.slane %v4567_v56, 9  ;;  %v4568_v36 = vld [vmem:[#allocation30_spill] sm:$0xff] }
  0xf7   : > { %2799 = vmatprep.mubr.bf16.mxu0 %v3887_v48  ;;  %2831 = vmatprep.mubr.bf16.mxu1 %v3533_v14  ;;  %v854_v8 = vpack.c.bf16 %v756_v49, %v755_v2  ;;  %v585_v33 = vmul.f32 %v3635_v43, %v345_v7  ;;  %v600_v55 = vmul.f32 %v3637_v60, %v360_v15  ;;  %v1437_v25 = vrot.slane %v1435_v37, 4  ;;  %v340_v56 = vld [vmem:[#allocation2 + $0x210] sm:$0xff] }
  0xf8   : > { %v601_v41 = vmul.f32 %v3635_v43, %v361_v3  ;;  %v582_v38 = vmul.f32 %v3658_v16, %v342_v27  ;;  %v1438_v14 = vrot.slane %v4568_v36, 5  ;;  %v1442_v51 = vrot.slane %v3748_v58, 5 }
  0xf9   : > { %2846 = vmatpush3.bf16.msra.mxu0 %v847_v44  ;;  %2878 = vmatpush3.bf16.msra.mxu1 %v855_v54  ;;  %v1432_v2 = vsel %vm3422_vm5, %v1430_v9, %v1431_v20  ;;  %v583_v49 = vmul.f32 %v3656_v24, %v343_v46  ;;  %v598_v7 = vmul.f32 %v3658_v16, %v358_v22  ;;  %v2547_v15 = vrot.slane %v3701_v50, 9  ;;  %v341_v46 = vld [vmem:[#allocation2 + $0x218] sm:$0xff]  ;;  %v356_v50 = vld [vmem:[#allocation2 + $0x290] sm:$0xff] }
  0xfa   : > { %2847 = vmatprep.subr.bf16.mxu0 %v846_v23  ;;  %2879 = vmatprep.subr.bf16.mxu1 %v854_v8  ;;  %v845_v44 = vpack.c.bf16 %v738_v39, %v737_v45  ;;  %v853_v54 = vpack.c.bf16 %v754_v21, %v753_v17  ;;  %v735_v3 = vmul.f32 %v3547_v26, %v584_v57  ;;  %v1445_v45 = vrot.slane %v3789_v19, 5  ;;  %v3973_v39 = vld [vmem:[%s3512_s7] ss:$0 sm:$0xff]  ;;  %v357_v21 = vld [vmem:[#allocation2 + $0x298] sm:$0xff]  ;;  %s3151_s7 = sshll.u32 %s3249_s6, 4  ;;  %s3152_s7 = int_to_ptr.vmem [resolvable:$false] %s3151_s7 }
  0xfb   : > { %v599_v27 = vmul.f32 %v3656_v24, %v359_v42  ;;  %v736_v58 = vmul.f32 %v3547_v26, %v585_v33  ;;  %v751_v20 = vmul.f32 %v3547_v26, %v600_v55  ;;  %v752_v9 = vmul.f32 %v3547_v26, %v601_v41  ;;  %s3153_s10 = scalar_lea.vmem %s3152_s7, 4096  ;;  %p3154_p2 = scmp.lt.s32.totalorder %s4396_s13, %s3152_s7 }
  0xfc   : > { %2800 = vmatmul.mubr.bf16.gmra.mxu0 %v3929_v35  ;;  %2832 = vmatmul.mubr.bf16.gmra.mxu1 %v4543_v61  ;;  %v733_v17 = vmul.f32 %v3973_v39, %v582_v38  ;;  %v1436_v57 = vsel %vm3422_vm5, %v2546_v63, %v1435_v37  ;;  %v1439_v22 = vsel %vm3422_vm5, %v1437_v25, %v1438_v14  ;;  %v1444_v33 = vrot.slane %v1442_v51, 4  ;;  %v338_v14 = vld [vmem:[#allocation2 + $0x200] sm:$0xff]  ;;  %v339_v25 = vld [vmem:[#allocation2 + $0x208] sm:$0xff]  ;;  %p3155_p4 = scmp.lt.s32.totalorder %s3153_s10, %s3147_s5 }
  0xfd   : > { %2848 = vmatpush3.bf16.msra.mxu0 %v846_v23  ;;  %2880 = vmatpush3.bf16.msra.mxu1 %v854_v8  ;;  %v734_v26 = vmul.f32 %v3973_v39, %v583_v49  ;;  %v749_v19 = vmul.f32 %v3973_v39, %v598_v7  ;;  %v580_v23 = vmul.f32 %v4544_v30, %v340_v56 }
  0xfe   : > { %2849 = vmatprep.subr.bf16.mxu0 %v845_v44  ;;  %2881 = vmatprep.subr.bf16.mxu1 %v853_v54  ;;  %v750_v8 = vmul.f32 %v3973_v39, %v599_v27  ;;  %v581_v37 = vmul.f32 %v4545_v0, %v341_v46  ;;  %v596_v63 = vmul.f32 %v4544_v30, %v356_v50  ;;  %v355_v27 = vld [vmem:[#allocation2 + $0x288] sm:$0xff]  ;;  %p3156_p5 = por %p3155_p4, %p3154_p2 }
  0xff   : > { %2803 = vmatprep.mubr.bf16.mxu0 %v3937_v31  ;;  %2835 = vmatprep.mubr.bf16.mxu1 %v4548_v52  ;;  %v844_v55 = vpack.c.bf16 %v736_v58, %v735_v3  ;;  %v852_v41 = vpack.c.bf16 %v752_v9, %v751_v20  ;;  %v3989_v42 = vcombine.low %v3941_v47, %v1432_v2  ;;  %v354_v3 = vld [vmem:[#allocation2 + $0x280] sm:$0xff]  ;;  %v385_v9 = vld [vmem:[#allocation2 + $0x378] sm:$0xff] }
 0x100   : > { %v597_v38 = vmul.f32 %v4545_v0, %v357_v21  ;;  %v3992_v36 = vcombine.low %v1436_v57, %v1439_v22  ;;  %v1443_v49 = vsel %vm3422_vm5, %v2547_v15, %v1442_v51  ;;  %v1446_v7 = vsel %vm3422_vm5, %v1444_v33, %v1445_v45  ;;  %v4000_v2 = vld [vmem:[%s3407_s27 + $0x60] sm:$0xf]  ;;  %v4003_v58 = vld [vmem:[%s3407_s27 + $0x64] sm:$0xf]  ;;  %v401_v21 = vld [vmem:[#allocation2 + $0x3f8] sm:$0xff]  ;;  %p3157_p6 = pnand %p3156_p5, %p3150_p1 }
 0x101   : > { %4569 = vst [vmem:[#allocation11_spill] sm:$0xff] %v3989_v42  ;;  %2850 = vmatpush3.bf16.msra.mxu0 %v845_v44  ;;  %2882 = vmatpush3.bf16.msra.mxu1 %v853_v54  ;;  %v843_v56 = vpack.c.bf16 %v734_v26, %v733_v17  ;;  %v731_v47 = vmul.f32 %v3973_v39, %v580_v23  ;;  %v384_v17 = vld [vmem:[#allocation2 + $0x370] sm:$0xff] }
 0x102   : > { %2851 = vmatprep.subr.bf16.mxu0 %v844_v55  ;;  %2883 = vmatprep.subr.bf16.mxu1 %v852_v41  ;;  %v578_v44 = vmul.f32 %v3715_v53, %v338_v14  ;;  %v851_v54 = vpack.c.bf16 %v750_v8, %v749_v19  ;;  %v732_v20 = vmul.f32 %v3973_v39, %v581_v37  ;;  %v400_v19 = vld [vmem:[#allocation2 + $0x3f0] sm:$0xff]  ;;  %v383_v14 = vld [vmem:[#allocation2 + $0x368] sm:$0xff] }
 0x103   : > { %v747_v51 = vmul.f32 %v3973_v39, %v596_v63  ;;  %v579_v15 = vmul.f32 %v3713_v13, %v339_v25  ;;  %v748_v46 = vmul.f32 %v3973_v39, %v597_v38  ;;  %v594_v50 = vmul.f32 %v3715_v53, %v354_v3  ;;  %v382_v63 = vld [vmem:[#allocation2 + $0x360] sm:$0xff]  ;;  %v399_v3 = vld [vmem:[#allocation2 + $0x3e8] sm:$0xff] }
 0x104   : > { %2804 = vmatmul.mubr.bf16.gmra.mxu0 %v3989_v42  ;;  %2836 = vmatmul.mubr.bf16.gmra.mxu1 %v4552_v28  ;;  %v595_v45 = vmul.f32 %v3713_v13, %v355_v27  ;;  %v4016_v57 = vcombine.low %v4000_v2, %v4003_v58  ;;  %v4018_v22 = vcombine.low %v1443_v49, %v1446_v7  ;;  %v398_v7 = vld [vmem:[#allocation2 + $0x3e0] sm:$0xff] }
 0x105   : > { %2852 = vmatpush3.bf16.msra.mxu0 %v844_v55  ;;  %2884 = vmatpush3.bf16.msra.mxu1 %v852_v41  ;;  %v729_v33 = vmul.f32 %v3973_v39, %v578_v44  ;;  %v625_v26 = vmul.f32 %v3555_v32, %v385_v9  ;;  %v730_v23 = vmul.f32 %v3973_v39, %v579_v15 }
 0x106   : > { %4570 = vst [vmem:[#allocation14_spill] sm:$0xff] %v4016_v57  ;;  %2853 = vmatprep.subr.bf16.mxu0 %v843_v56  ;;  %2885 = vmatprep.subr.bf16.mxu1 %v851_v54  ;;  %v624_v8 = vmul.f32 %v4553_v29, %v384_v17  ;;  %v641_v37 = vmul.f32 %v3555_v32, %v401_v21  ;;  %v396_v17 = vld [vmem:[#allocation2 + $0x3d0] sm:$0xff]  ;;  %v397_v21 = vld [vmem:[#allocation2 + $0x3d8] sm:$0xff] }
 0x107   : > { %2807 = vmatprep.mubr.bf16.mxu0 %v3992_v36  ;;  %2839 = vmatprep.mubr.bf16.mxu1 %v3801_v1  ;;  %v842_v55 = vpack.c.bf16 %v732_v20, %v731_v47  ;;  %v850_v41 = vpack.c.bf16 %v748_v46, %v747_v51  ;;  %v745_v38 = vmul.f32 %v3973_v39, %v594_v50  ;;  %v380_v46 = vld [vmem:[#allocation2 + $0x350] sm:$0xff]  ;;  %v381_v50 = vld [vmem:[#allocation2 + $0x358] sm:$0xff] }
 0x108   : > { %v746_v25 = vmul.f32 %v3973_v39, %v595_v45  ;;  %v640_v49 = vmul.f32 %v4553_v29, %v400_v19  ;;  %v776_v27 = vmul.f32 %v3973_v39, %v625_v26  ;;  %v622_v44 = vmul.f32 %v3516_v4, %v382_v63 }
 0x109   : > { %2854 = vmatpush3.bf16.msra.mxu0 %v843_v56  ;;  %2886 = vmatpush3.bf16.msra.mxu1 %v851_v54  ;;  %v623_v15 = vmul.f32 %v3557_v34, %v383_v14  ;;  %v841_v47 = vpack.c.bf16 %v730_v23, %v729_v33  ;;  %v775_v20 = vmul.f32 %v3973_v39, %v624_v8  ;;  %v378_v23 = vld [vmem:[#allocation2 + $0x340] sm:$0xff]  ;;  %v379_v8 = vld [vmem:[#allocation2 + $0x348] sm:$0xff] }
 0x10a   : > { %2855 = vmatprep.subr.bf16.mxu0 %v842_v55  ;;  %2887 = vmatprep.subr.bf16.mxu1 %v850_v41  ;;  %v792_v51 = vmul.f32 %v3973_v39, %v641_v37  ;;  %v849_v56 = vpack.c.bf16 %v746_v25, %v745_v38  ;;  %v638_v54 = vmul.f32 %v3516_v4, %v398_v7 }
 0x10b   : > { %v639_v9 = vmul.f32 %v3557_v34, %v399_v3  ;;  %v791_v45 = vmul.f32 %v3973_v39, %v640_v49  ;;  %v864_v33 = vpack.c.bf16 %v776_v27, %v775_v20  ;;  %v773_v26 = vmul.f32 %v3973_v39, %v622_v44 }
 0x10c   : > { %2808 = vmatmul.mubr.bf16.gmra.mxu0 %v4018_v22  ;;  %2840 = vmatmul.mubr.bf16.gmra.mxu1 %v4016_v57  ;;  %v774_v19 = vmul.f32 %v3973_v39, %v623_v15  ;;  %v620_v63 = vmul.f32 %v3581_v18, %v380_v46  ;;  %v621_v14 = vmul.f32 %v3579_v10, %v381_v50  ;;  %v1712_v44 = vshrl.u32 %v4000_v2, 16  ;;  %v377_v50 = vld [vmem:[#allocation2 + $0x338] sm:$0xff] }
 0x10d   : > { %2856 = vmatpush3.bf16.msra.mxu0 %v842_v55  ;;  %2888 = vmatpush3.bf16.msra.mxu1 %v850_v41  ;;  %v872_v37 = vpack.c.bf16 %v792_v51, %v791_v45  ;;  %v394_v55 = vld [vmem:[#allocation2 + $0x3c0] sm:$0xff]  ;;  %v395_v41 = vld [vmem:[#allocation2 + $0x3c8] sm:$0xff]  ;;  %v789_v38 = vmul.f32 %v3973_v39, %v638_v54  ;;  %v790_v25 = vmul.f32 %v3973_v39, %v639_v9  ;;  %v376_v54 = vld [vmem:[#allocation2 + $0x330] sm:$0xff] }
 0x10e   : > { %2857 = vmatprep.subr.bf16.mxu0 %v841_v47  ;;  %2889 = vmatprep.subr.bf16.mxu1 %v849_v56  ;;  %v636_v49 = vmul.f32 %v3581_v18, %v396_v17  ;;  %v637_v7 = vmul.f32 %v3579_v10, %v397_v21  ;;  %v634_v3 = vmul.f32 %v3611_v6, %v394_v55  ;;  %v392_v45 = vld [vmem:[#allocation2 + $0x3b0] sm:$0xff]  ;;  %v393_v17 = vld [vmem:[#allocation2 + $0x3b8] sm:$0xff]  ;;  %v1725_v21 = vshrl.u32 %v4003_v58, 16 }
 0x10f   : > { %2859 = vmatprep.mubr.bf16.mxu0 %v3499_v62  ;;  %2891 = vmatprep.mubr.bf16.mxu1 %v3884_v59  ;;  %v618_v62 = vmul.f32 %v3611_v6, %v378_v23  ;;  %v619_v59 = vmul.f32 %v3609_v5, %v379_v8  ;;  %v635_v27 = vmul.f32 %v3609_v5, %v395_v41  ;;  %v374_v23 = vld [vmem:[#allocation2 + $0x320] sm:$0xff]  ;;  %v375_v8 = vld [vmem:[#allocation2 + $0x328] sm:$0xff] }
 0x110   : > { %v863_v15 = vpack.c.bf16 %v774_v19, %v773_v26  ;;  %v771_v20 = vmul.f32 %v3973_v39, %v620_v63  ;;  %v772_v51 = vmul.f32 %v3973_v39, %v621_v14  ;;  %v787_v9 = vmul.f32 %v3973_v39, %v636_v49 }
 0x111   : > { %2858 = vmatpush3.bf16.msra.mxu0 %v841_v47  ;;  %2890 = vmatpush3.bf16.msra.mxu1 %v849_v56  ;;  %v1715_v47 = vshll.u32 %v4000_v2, 16  ;;  %v871_v56 = vpack.c.bf16 %v790_v25, %v789_v38  ;;  %v788_v46 = vmul.f32 %v3973_v39, %v637_v7  ;;  %v769_v26 = vmul.f32 %v3973_v39, %v618_v62  ;;  %v4070_v38 = vld [vmem:[%s3407_s27 + $0x68] sm:$0x1] }
 0x112   : > { %2907 = vmatprep.subr.bf16.mxu0 %v864_v33  ;;  %2939 = vmatprep.subr.bf16.mxu1 %v872_v37  ;;  %v770_v19 = vmul.f32 %v3973_v39, %v619_v59  ;;  %v1721_v63 = vshll.u32 %v4003_v58, 16  ;;  %v785_v14 = vmul.f32 %v3973_v39, %v634_v3  ;;  %v786_v55 = vmul.f32 %v3973_v39, %v635_v27 }
 0x113   : > { %v616_v41 = vmul.f32 %v3637_v60, %v376_v54  ;;  %v632_v25 = vmul.f32 %v3637_v60, %v392_v45  ;;  %v633_v49 = vmul.f32 %v3635_v43, %v393_v17  ;;  %v1714_v7 = vrot.slane %v1712_v44, 4  ;;  %v390_v54 = vld [vmem:[#allocation2 + $0x3a0] sm:$0xff]  ;;  %v373_v17 = vld [vmem:[#allocation2 + $0x318] sm:$0xff] }
 0x114   : > { %2860 = vmatmul.mubr.bf16.vlgmr.msra.gmra.mxu0 %v3525_v11  ;;  %2892 = vmatmul.mubr.bf16.vlgmr.msra.gmra.mxu1 %v3887_v48  ;;  %v862_v62 = vpack.c.bf16 %v772_v51, %v771_v20  ;;  %v870_v59 = vpack.c.bf16 %v788_v46, %v787_v9  ;;  %v614_v3 = vmul.f32 %v3658_v16, %v374_v23  ;;  %v391_v48 = vld [vmem:[#allocation2 + $0x3a8] sm:$0xff]  ;;  %v1717_v57 = vrot.slane %v1715_v47, 5  ;;  %v372_v51 = vld [vmem:[#allocation2 + $0x310] sm:$0xff] }
 0x115   : > { %2908 = vmatpush3.bf16.msra.mxu0 %v864_v33  ;;  %2940 = vmatpush3.bf16.msra.mxu1 %v872_v37  ;;  %v4571_v33 = vld [vmem:[#allocation24_spill] sm:$0xff]  ;;  %v617_v37 = vmul.f32 %v3635_v43, %v377_v50  ;;  %v615_v27 = vmul.f32 %v3656_v24, %v375_v8  ;;  %v4079_v1 = vrot.slane %v1721_v63, 5  ;;  %v1731_v50 = vshll.u32 %v4070_v38, 16  ;;  %v4572_v23 = vld [vmem:[#allocation29_spill] sm:$0xff]  ;;  %v389_v8 = vld [vmem:[#allocation2 + $0x398] sm:$0xff] }
 0x116   : > { %2909 = vmatprep.subr.bf16.mxu0 %v863_v15  ;;  %2941 = vmatprep.subr.bf16.mxu1 %v871_v56  ;;  %v861_v45 = vpack.c.bf16 %v770_v19, %v769_v26  ;;  %v869_v44 = vpack.c.bf16 %v786_v55, %v785_v14  ;;  %v767_v20 = vmul.f32 %v3973_v39, %v616_v41  ;;  %v1855_v9 = vrot.slane %v4003_v58, 5 }
 0x117   : > { %2863 = vmatprep.mubr.bf16.mxu0 %v4571_v33  ;;  %2895 = vmatprep.mubr.bf16.mxu1 %v3929_v35  ;;  %v1727_v35 = vrot.slane %v1725_v21, 4  ;;  %v768_v46 = vmul.f32 %v3973_v39, %v617_v37  ;;  %v784_v47 = vmul.f32 %v3973_v39, %v633_v49  ;;  %v388_v21 = vld [vmem:[#allocation2 + $0x390] sm:$0xff]  ;;  %v765_v26 = vmul.f32 %v3973_v39, %v614_v3 }
 0x118   : > { %v766_v19 = vmul.f32 %v3973_v39, %v615_v27  ;;  %v631_v58 = vmul.f32 %v3656_v24, %v391_v48  ;;  %v612_v63 = vmul.f32 %v4544_v30, %v372_v51  ;;  %v1718_v14 = vor.u32 %v1717_v57, %v1714_v7  ;;  %v4573_v49 = vld [vmem:[#allocation34_spill] sm:$0xff]  ;;  %v371_v51 = vld [vmem:[#allocation2 + $0x308] sm:$0xff] }
 0x119   : > { %2910 = vmatpush3.bf16.msra.mxu0 %v863_v15  ;;  %2942 = vmatpush3.bf16.msra.mxu1 %v871_v56  ;;  %v783_v15 = vmul.f32 %v3973_v39, %v632_v25  ;;  %v630_v56 = vmul.f32 %v3658_v16, %v390_v54  ;;  %v1728_v55 = vor.u32 %v1727_v35, %v4079_v1  ;;  %v2558_v25 = vrot.slane %v4000_v2, 9  ;;  %v370_v54 = vld [vmem:[#allocation2 + $0x300] sm:$0xff] }
 0x11a   : > { %2911 = vmatprep.subr.bf16.mxu0 %v862_v62  ;;  %2943 = vmatprep.subr.bf16.mxu1 %v870_v59  ;;  %v613_v41 = vmul.f32 %v4545_v0, %v373_v17  ;;  %v628_v37 = vmul.f32 %v4544_v30, %v388_v21  ;;  %v629_v48 = vmul.f32 %v4545_v0, %v389_v8  ;;  %v1858_v57 = vrot.slane %v4070_v38, 5  ;;  %v386_v8 = vld [vmem:[#allocation2 + $0x380] sm:$0xff] }
 0x11b   : > { %v860_v7 = vpack.c.bf16 %v768_v46, %v767_v20  ;;  %v868_v35 = vpack.c.bf16 %v784_v47, %v783_v15  ;;  %v781_v3 = vmul.f32 %v3973_v39, %v630_v56  ;;  %v782_v27 = vmul.f32 %v3973_v39, %v631_v58  ;;  %v4574_v56 = vld [vmem:[#allocation36_spill] sm:$0xff] }
 0x11c   : > { %2864 = vmatmul.mubr.bf16.gmra.mxu0 %v4572_v23  ;;  %2896 = vmatmul.mubr.bf16.gmra.mxu1 %v3937_v31  ;;  %v859_v2 = vpack.c.bf16 %v766_v19, %v765_v26  ;;  %v763_v17 = vmul.f32 %v3973_v39, %v612_v63  ;;  %v1719_v21 = vrot.slane %v1718_v14, 4  ;;  %v764_v38 = vmul.f32 %v3973_v39, %v613_v41 }
 0x11d   : > { %2912 = vmatpush3.bf16.msra.mxu0 %v862_v62  ;;  %2944 = vmatpush3.bf16.msra.mxu1 %v870_v59  ;;  %v1733_v62 = vrot.slane %v1731_v50, 5  ;;  %v1857_v59 = vrot.slane %v1855_v9, 4  ;;  %v387_v50 = vld [vmem:[#allocation2 + $0x388] sm:$0xff]  ;;  %v779_v20 = vmul.f32 %v3973_v39, %v628_v37  ;;  %v1856_v46 = vsel %vm3422_vm5, %v2558_v25, %v1855_v9 }
 0x11e   : > { %2913 = vmatprep.subr.bf16.mxu0 %v861_v45  ;;  %2945 = vmatprep.subr.bf16.mxu1 %v869_v44  ;;  %v780_v15 = vmul.f32 %v3973_v39, %v629_v48  ;;  %v611_v47 = vmul.f32 %v3713_v13, %v371_v51  ;;  %v867_v26 = vpack.c.bf16 %v782_v27, %v781_v3  ;;  %v4576_v48 = vld [vmem:[#allocation22_spill] sm:$0xff]  ;;  %v414_v3 = vld [vmem:[#allocation2 + $0x460] sm:$0xff]  ;;  %v415_v27 = vld [vmem:[#allocation2 + $0x468] sm:$0xff] }
 0x11f   : > { %2867 = vmatprep.mubr.bf16.mxu0 %v4573_v49  ;;  %2899 = vmatprep.mubr.bf16.mxu1 %v3989_v42  ;;  %v1729_v42 = vrot.slane %v1728_v55, 4  ;;  %v626_v19 = vmul.f32 %v3715_v53, %v386_v8  ;;  %v627_v58 = vmul.f32 %v3713_v13, %v387_v50  ;;  %v1724_v63 = vsel %vm3414_vm2, %v1719_v21, %v4079_v1  ;;  %v417_v55 = vld [vmem:[#allocation2 + $0x478] sm:$0xff]  ;;  %v412_v50 = vld [vmem:[#allocation2 + $0x450] sm:$0xff] }
 0x120   : > { %v858_v41 = vpack.c.bf16 %v764_v38, %v763_v17  ;;  %v866_v25 = vpack.c.bf16 %v780_v15, %v779_v20  ;;  %v654_v17 = vmul.f32 %v3516_v4, %v414_v3  ;;  %v652_v4 = vmul.f32 %v3581_v18, %v412_v50  ;;  %v410_v15 = vld [vmem:[#allocation2 + $0x440] sm:$0xff] }
 0x121   : > { %2914 = vmatpush3.bf16.msra.mxu0 %v861_v45  ;;  %2946 = vmatpush3.bf16.msra.mxu1 %v869_v44  ;;  %v1859_v45 = vsel %vm3422_vm5, %v1857_v59, %v1858_v57  ;;  %v610_v44 = vmul.f32 %v3715_v53, %v370_v54  ;;  %v1734_v14 = vsel %vm3414_vm2, %v1729_v42, %v1733_v62 }
 0x122   : > { %2915 = vmatprep.subr.bf16.mxu0 %v860_v7  ;;  %2947 = vmatprep.subr.bf16.mxu1 %v868_v35  ;;  %v4123_v37 = vcombine.low %v1856_v46, %v1859_v45  ;;  %v762_v57 = vmul.f32 %v3973_v39, %v611_v47  ;;  %v4129_v1 = vcombine.low %v1724_v63, %v1734_v14  ;;  %v411_v45 = vld [vmem:[#allocation2 + $0x448] sm:$0xff]  ;;  %v409_v63 = vld [vmem:[#allocation2 + $0x438] sm:$0xff] }
 0x123   : > { %v761_v59 = vmul.f32 %v3973_v39, %v610_v44  ;;  %v777_v42 = vmul.f32 %v3973_v39, %v626_v19  ;;  %v778_v62 = vmul.f32 %v3973_v39, %v627_v58  ;;  %v4148_v44 = vld [vmem:[%s3407_s27 + $0x6c] sm:$0xf]  ;;  %v651_v19 = vmul.f32 %v3609_v5, %v411_v45  ;;  %v408_v58 = vld [vmem:[#allocation2 + $0x430] sm:$0xff] }
 0x124   : > { %2868 = vmatmul.mubr.bf16.gmra.mxu0 %v4574_v56  ;;  %2900 = vmatmul.mubr.bf16.gmra.mxu1 %v3992_v36  ;;  %v2097_v14 = vshrl.u32 %v4148_v44, 16  ;;  %v648_v5 = vmul.f32 %v3637_v60, %v408_v58 }
 0x125   : > { %2916 = vmatpush3.bf16.msra.mxu0 %v860_v7  ;;  %2948 = vmatpush3.bf16.msra.mxu1 %v868_v35  ;;  %v416_v7 = vld [vmem:[#allocation2 + $0x470] sm:$0xff]  ;;  %v657_v35 = vmul.f32 %v3555_v32, %v417_v55  ;;  %v857_v51 = vpack.c.bf16 %v762_v57, %v761_v59  ;;  %v865_v21 = vpack.c.bf16 %v778_v62, %v777_v42  ;;  %v2100_v55 = vshll.u32 %v4148_v44, 16  ;;  %v407_v42 = vld [vmem:[#allocation2 + $0x428] sm:$0xff] }
 0x126   : > { %2917 = vmatprep.subr.bf16.mxu0 %v859_v2  ;;  %2949 = vmatprep.subr.bf16.mxu1 %v867_v26  ;;  %v656_v54 = vmul.f32 %v4553_v29, %v416_v7  ;;  %v655_v32 = vmul.f32 %v3557_v34, %v415_v27  ;;  %v805_v34 = vmul.f32 %v3973_v39, %v654_v17  ;;  %v406_v7 = vld [vmem:[#allocation2 + $0x420] sm:$0xff]  ;;  %v2099_v62 = vrot.slane %v2097_v14, 4  ;;  %v404_v17 = vld [vmem:[#allocation2 + $0x410] sm:$0xff] }
 0x127   : > { %2871 = vmatprep.mubr.bf16.mxu0 %v4576_v48  ;;  %2903 = vmatprep.mubr.bf16.mxu1 %v4018_v22  ;;  %v808_v8 = vmul.f32 %v3973_v39, %v657_v35  ;;  %v802_v59 = vmul.f32 %v3973_v39, %v651_v19  ;;  %v649_v57 = vmul.f32 %v3635_v43, %v409_v63  ;;  %v2102_v35 = vrot.slane %v2100_v55, 5  ;;  %v4581_v63 = vld [vmem:[#allocation32_spill] sm:$0xff]  ;;  %v4582_v55 = vld [vmem:[#allocation11_spill] sm:$0xff] }
 0x128   : > { %v807_v29 = vmul.f32 %v3973_v39, %v656_v54  ;;  %v806_v46 = vmul.f32 %v3973_v39, %v655_v32  ;;  %v646_v60 = vmul.f32 %v3658_v16, %v406_v7  ;;  %v647_v27 = vmul.f32 %v3656_v24, %v407_v42 }
 0x129   : > { %2918 = vmatpush3.bf16.msra.mxu0 %v859_v2  ;;  %2950 = vmatpush3.bf16.msra.mxu1 %v867_v26  ;;  %v413_v2 = vld [vmem:[#allocation2 + $0x458] sm:$0xff]  ;;  %v650_v26 = vmul.f32 %v3611_v6, %v410_v15  ;;  %v799_v54 = vmul.f32 %v3973_v39, %v648_v5 }
 0x12a   : > { %2919 = vmatprep.subr.bf16.mxu0 %v858_v41  ;;  %2951 = vmatprep.subr.bf16.mxu1 %v866_v25  ;;  %v653_v38 = vmul.f32 %v3579_v10, %v413_v2  ;;  %v880_v20 = vpack.c.bf16 %v808_v8, %v807_v29  ;;  %v4577_v10 = vld [vmem:[#allocation21_spill] sm:$0xff]  ;;  %v879_v47 = vpack.c.bf16 %v806_v46, %v805_v34  ;;  %v4578_v46 = vld [vmem:[#allocation35_spill] sm:$0xff] }
 0x12b   : > { %v2103_v8 = vor.u32 %v2102_v35, %v2099_v62  ;;  %v797_v16 = vmul.f32 %v3973_v39, %v646_v60  ;;  %v798_v24 = vmul.f32 %v3973_v39, %v647_v27  ;;  %v403_v34 = vld [vmem:[#allocation2 + $0x408] sm:$0xff] }
 0x12c   : > { %2872 = vmatmul.mubr.bf16.gmra.mxu0 %v4129_v1  ;;  %2904 = vmatmul.mubr.bf16.gmra.mxu1 %v4123_v37  ;;  %v804_v18 = vmul.f32 %v3973_v39, %v653_v38  ;;  %v643_v15 = vmul.f32 %v3713_v13, %v403_v34 }
 0x12d   : > { %2920 = vmatpush3.bf16.msra.mxu0 %v858_v41  ;;  %2952 = vmatpush3.bf16.msra.mxu1 %v866_v25  ;;  %v2104_v29 = vrot.slane %v2103_v8, 4 }
 0x12e   : > { %2921 = vmatprep.subr.bf16.mxu0 %v857_v51  ;;  %2953 = vmatprep.subr.bf16.mxu1 %v865_v21 }
 0x12f   : > { %2923 = vmatprep.mubr.bf16.mxu0 %v3529_v12  ;;  %2955 = vmatprep.mubr.bf16.mxu1 %v3525_v11  ;;  %v4151_v12 = vld [vmem:[%s3407_s27 + $0x70] sm:$0xf]  ;;  %v803_v11 = vmul.f32 %v3973_v39, %v652_v4 }
 0x130   : > { %v2110_v41 = vshrl.u32 %v4151_v12, 16  ;;  %v2106_v25 = vshll.u32 %v4151_v12, 16 }
 0x131   : > { %2922 = vmatpush3.bf16.msra.mxu0 %v857_v51  ;;  %2954 = vmatpush3.bf16.msra.mxu1 %v865_v21  ;;  %v878_v6 = vpack.c.bf16 %v804_v18, %v803_v11  ;;  %v800_v51 = vmul.f32 %v3973_v39, %v649_v57  ;;  %v405_v21 = vld [vmem:[#allocation2 + $0x418] sm:$0xff]  ;;  %v4579_v18 = vld [vmem:[#allocation14_spill] sm:$0xff] }
 0x132   : > { %2971 = vmatprep.subr.bf16.mxu0 %v880_v20  ;;  %3003 = vmatprep.subr.bf16.mxu1 %v880_v20  ;;  %v2108_v3 = vrot.slane %v2106_v25, 5  ;;  %v645_v2 = vmul.f32 %v4545_v0, %v405_v21 }
 0x134   : > { %2924 = vmatmul.mubr.bf16.vlgmr.msra.gmra.mxu0 %v4577_v10  ;;  %2956 = vmatmul.mubr.bf16.vlgmr.msra.gmra.mxu1 %v4571_v33  ;;  %v801_v33 = vmul.f32 %v3973_v39, %v650_v26  ;;  %v2109_v45 = vsel %vm3414_vm2, %v2104_v29, %v2108_v3  ;;  %v4580_v26 = vld [vmem:[#allocation33_spill] sm:$0xff] }
 0x135   : > { %2972 = vmatpush3.bf16.msra.mxu0 %v880_v20  ;;  %3011 = vmatpush3.bf16.msra.mxu1 %v880_v20  ;;  %v402_v20 = vld [vmem:[#allocation2 + $0x400] sm:$0xff] }
 0x136   : > { %2973 = vmatprep.subr.bf16.mxu0 %v879_v47  ;;  %3004 = vmatprep.subr.bf16.mxu1 %v879_v47  ;;  %v877_v43 = vpack.c.bf16 %v802_v59, %v801_v33  ;;  %v642_v0 = vmul.f32 %v3715_v53, %v402_v20 }
 0x137   : > { %2927 = vmatprep.mubr.bf16.mxu0 %v4543_v61  ;;  %2959 = vmatprep.mubr.bf16.mxu1 %v4572_v23  ;;  %v2112_v61 = vrot.slane %v2110_v41, 4  ;;  %v4170_v23 = vld [vmem:[%s3407_s27 + $0x74] sm:$0x1]  ;;  %s4404_s27 = scalar_lea.sflag [#allocation4], %s253_s28 }
 0x138   : > { %v2116_v50 = vshll.u32 %v4170_v23, 16  ;;  %v793_v13 = vmul.f32 %v3973_v39, %v642_v0  ;;  %v2243_v58 = vrot.slane %v4170_v23, 5 }
 0x139   : > { %2974 = vmatpush3.bf16.msra.mxu0 %v879_v47  ;;  %3012 = vmatpush3.bf16.msra.mxu1 %v879_v47  ;;  %v2113_v32 = vor.u32 %v2112_v61, %v2108_v3  ;;  %v794_v47 = vmul.f32 %v3973_v39, %v643_v15 }
 0x13a   : > { %2975 = vmatprep.subr.bf16.mxu0 %v878_v6  ;;  %3005 = vmatprep.subr.bf16.mxu1 %v878_v6  ;;  %v2118_v38 = vrot.slane %v2116_v50, 5 }
 0x13b   : > { %v2114_v4 = vrot.slane %v2113_v32, 4  ;;  %v873_v9 = vpack.c.bf16 %v794_v47, %v793_v13 }
 0x13c   : > { %2928 = vmatmul.mubr.bf16.gmra.mxu0 %v4548_v52  ;;  %2960 = vmatmul.mubr.bf16.gmra.mxu1 %v4573_v49  ;;  %v644_v52 = vmul.f32 %v4544_v30, %v404_v17  ;;  %v876_v49 = vpack.c.bf16 %v800_v51, %v799_v54  ;;  %v796_v30 = vmul.f32 %v3973_v39, %v645_v2 }
 0x13d   : > { %2976 = vmatpush3.bf16.msra.mxu0 %v878_v6  ;;  %3013 = vmatpush3.bf16.msra.mxu1 %v878_v6  ;;  %v2119_v11 = vsel %vm3414_vm2, %v2114_v4, %v2118_v38 }
 0x13e   : > { %2977 = vmatprep.subr.bf16.mxu0 %v877_v43  ;;  %3006 = vmatprep.subr.bf16.mxu1 %v877_v43  ;;  %v2561_v10 = vcombine.low %v2109_v45, %v2119_v11 }
 0x13f   : > { %2931 = vmatprep.mubr.bf16.mxu0 %v4552_v28  ;;  %2963 = vmatprep.mubr.bf16.mxu1 %v4574_v56  ;;  %v875_v28 = vpack.c.bf16 %v798_v24, %v797_v16  ;;  %v795_v56 = vmul.f32 %v3973_v39, %v644_v52  ;;  %v2562_v39 = vrot.slane %v4148_v44, 9 }
 0x141   : > { %2978 = vmatpush3.bf16.msra.mxu0 %v877_v43  ;;  %3014 = vmatpush3.bf16.msra.mxu1 %v877_v43  ;;  %v874_v53 = vpack.c.bf16 %v796_v30, %v795_v56 }
 0x142   : > { %2979 = vmatprep.subr.bf16.mxu0 %v876_v49  ;;  %3007 = vmatprep.subr.bf16.mxu1 %v876_v49 }
 0x144   : > { %2932 = vmatmul.mubr.bf16.gmra.mxu0 %v4578_v46  ;;  %2964 = vmatmul.mubr.bf16.gmra.mxu1 %v4576_v48  ;;  %v2560_v48 = vcombine.low %v4148_v44, %v4151_v12 }
 0x145   : > { %2980 = vmatpush3.bf16.msra.mxu0 %v876_v49  ;;  %3015 = vmatpush3.bf16.msra.mxu1 %v876_v49 }
 0x146   : > { %2981 = vmatprep.subr.bf16.mxu0 %v875_v28  ;;  %3008 = vmatprep.subr.bf16.mxu1 %v875_v28 }
 0x147   : > { %2935 = vmatprep.mubr.bf16.mxu0 %v4579_v18  ;;  %2967 = vmatprep.mubr.bf16.mxu1 %v4129_v1  ;;  %v2240_v1 = vrot.slane %v4151_v12, 5 }
 0x149   : > { %2982 = vmatpush3.bf16.msra.mxu0 %v875_v28  ;;  %3016 = vmatpush3.bf16.msra.mxu1 %v875_v28  ;;  %v2242_v19 = vrot.slane %v2240_v1, 4  ;;  %v2241_v12 = vsel %vm3422_vm5, %v2562_v39, %v2240_v1 }
 0x14a   : > { %2983 = vmatprep.subr.bf16.mxu0 %v874_v53  ;;  %3009 = vmatprep.subr.bf16.mxu1 %v874_v53 }
 0x14c   : > { %2936 = vmatmul.mubr.bf16.gmra.mxu0 %v2560_v48  ;;  %2968 = vmatmul.mubr.bf16.gmra.mxu1 %v2561_v10 }
 0x14d   : > { %2984 = vmatpush3.bf16.msra.mxu0 %v874_v53  ;;  %3017 = vmatpush3.bf16.msra.mxu1 %v874_v53 }
 0x14e   : > { %2985 = vmatprep.subr.bf16.mxu0 %v873_v9  ;;  %3010 = vmatprep.subr.bf16.mxu1 %v873_v9 }
 0x14f   : > { %2987 = vmatprep.mubr.bf16.mxu0 %v4580_v26  ;;  %2995 = vmatprep.mubr.bf16.mxu1 %v3992_v36  ;;  %v2244_v36 = vsel %vm3422_vm5, %v2242_v19, %v2243_v58 }
 0x150   : > { %v2563_v14 = vcombine.low %v2241_v12, %v2244_v36 }
 0x151   : > { %2986 = vmatpush3.bf16.msra.mxu0 %v873_v9  ;;  %3018 = vmatpush3.bf16.msra.mxu1 %v873_v9 }
 0x154   : > { %2988 = vmatmul.mubr.bf16.vlgmr.msra.gmra.mxu0 %v4581_v63  ;;  %2996 = vmatmul.mubr.bf16.vlgmr.msra.gmra.mxu1 %v4018_v22 }
 0x155   : > { %2991 = vmatprep.mubr.bf16.mxu0 %v3937_v31  ;;  %2999 = vmatprep.mubr.bf16.mxu1 %v4123_v37 }
 0x15c   : > { %2992 = vmatmul.mubr.bf16.gmra.mxu0 %v4582_v55  ;;  %3000 = vmatmul.mubr.bf16.gmra.mxu1 %v2563_v14 }
 0x194   : > { %v2733_v44 = vpop.f32.mrf.mxu0  ;;  %v2765_v41 = vpop.f32.mrf.mxu1 }
 0x195   : > { %v1326_v25 = vadd.f32 %v2765_v41, %v2733_v44 }
 0x196   : > { %v1172_v5 = vpop.f32.mrf.mxu0  ;;  %v1317_v6 = vpop.f32.mrf.mxu1 }
 0x197   : > { %v1318_v22 = vadd.f32 %v1317_v6, %v1172_v5 }
 0x198   : > { %v2734_v33 = vpop.f32.mrf.mxu0  ;;  %v2766_v31 = vpop.f32.mrf.mxu1 }
 0x199   : > { %v1329_v59 = vadd.f32 %v2766_v31, %v2734_v33 }
 0x19a   : > { %v1175_v37 = vpop.f32.mrf.mxu0  ;;  %v1320_v57 = vpop.f32.mrf.mxu1 }
 0x19b   : > { %v1321_v7 = vadd.f32 %v1320_v57, %v1175_v37 }
 0x19c   : > { %v2737_v42 = vpop.f32.mrf.mxu0  ;;  %v2769_v62 = vpop.f32.mrf.mxu1 }
 0x19d   : > { %v1342_v40 = vadd.f32 %v2769_v62, %v2737_v42 }
 0x19e   : > { %v1188_v35 = vpop.f32.mrf.mxu0  ;;  %v1333_v3 = vpop.f32.mrf.mxu1 }
 0x19f   : > { %v1334_v61 = vadd.f32 %v1333_v3, %v1188_v35 }
 0x1a0   : > { %v2738_v23 = vpop.f32.mrf.mxu0  ;;  %v2770_v60 = vpop.f32.mrf.mxu1 }
 0x1a1   : > { %v1345_v27 = vadd.f32 %v2770_v60, %v2738_v23 }
 0x1a2   : > { %v1191_v43 = vpop.f32.mrf.mxu0  ;;  %v1336_v54 = vpop.f32.mrf.mxu1 }
 0x1a3   : > { %v1337_v51 = vadd.f32 %v1336_v54, %v1191_v43 }
 0x1a4   : > { %v2741_v17 = vpop.f32.mrf.mxu0  ;;  %v2773_v21 = vpop.f32.mrf.mxu1 }
 0x1a5   : > { %v1358_v8 = vadd.f32 %v2773_v21, %v2741_v17 }
 0x1a6   : > { %v1204_v32 = vpop.f32.mrf.mxu0  ;;  %v1349_v50 = vpop.f32.mrf.mxu1 }
 0x1a7   : > { %v1350_v16 = vadd.f32 %v1349_v50, %v1204_v32 }
 0x1a8   : > { %v2742_v24 = vpop.f32.mrf.mxu0  ;;  %v2774_v52 = vpop.f32.mrf.mxu1 }
 0x1a9   : > { %v1361_v49 = vadd.f32 %v2774_v52, %v2742_v24 }
 0x1aa   : > { %v1207_v2 = vpop.f32.mrf.mxu0  ;;  %v1352_v29 = vpop.f32.mrf.mxu1 }
 0x1ab   : > { %v1353_v4 = vadd.f32 %v1352_v29, %v1207_v2 }
 0x1ac   : > { %v2745_v38 = vpop.f32.mrf.mxu0  ;;  %v2777_v20 = vpop.f32.mrf.mxu1 }
 0x1ad   : > { %v1374_v34 = vadd.f32 %v2777_v20, %v2745_v38 }
 0x1ae   : > { %v1220_v28 = vpop.f32.mrf.mxu0  ;;  %v1365_v56 = vpop.f32.mrf.mxu1 }
 0x1af   : > { %v1366_v46 = vadd.f32 %v1365_v56, %v1220_v28 }
 0x1b0   : > { %v2746_v30 = vpop.f32.mrf.mxu0  ;;  %v2778_v0 = vpop.f32.mrf.mxu1 }
 0x1b1   : > { %v1377_v15 = vadd.f32 %v2778_v0, %v2746_v30 }
 0x1b2   : > { %v1223_v45 = vpop.f32.mrf.mxu0  ;;  %v1368_v11 = vpop.f32.mrf.mxu1 }
 0x1b3   : > { %v4215_v18 = vadd.f32 %v1368_v11, %v1223_v45 }
 0x1b4   : > { %v2797_v48 = vpop.f32.mrf.mxu0  ;;  %v2829_v53 = vpop.f32.mrf.mxu1 }
 0x1b5   : > { %v1578_v10 = vadd.f32 %v2797_v48, %v1326_v25 }
 0x1b6   : > { %v1513_v13 = vpop.f32.mrf.mxu0  ;;  %v1632_v47 = vpop.f32.mrf.mxu1 }
 0x1b7   : > { %v4217_v9 = vadd.f32 %v2829_v53, %v1578_v10  ;;  %v1576_v1 = vadd.f32 %v1513_v13, %v1318_v22 }
 0x1b8   : > { %v2798_v26 = vpop.f32.mrf.mxu0  ;;  %v2830_v39 = vpop.f32.mrf.mxu1 }
 0x1b9   : > { %v4219_v19 = vadd.f32 %v1632_v47, %v1576_v1  ;;  %v1579_v58 = vadd.f32 %v2798_v26, %v1329_v59 }
 0x1ba   : > { %v1516_v63 = vpop.f32.mrf.mxu0  ;;  %v1635_v12 = vpop.f32.mrf.mxu1 }
 0x1bb   : > { %v4221_v36 = vadd.f32 %v2830_v39, %v1579_v58  ;;  %v1577_v14 = vadd.f32 %v1516_v63, %v1321_v7 }
 0x1bc   : > { %v2801_v55 = vpop.f32.mrf.mxu0  ;;  %v2833_v44 = vpop.f32.mrf.mxu1 }
 0x1bd   : > { %v4223_v41 = vadd.f32 %v1635_v12, %v1577_v14  ;;  %v1582_v25 = vadd.f32 %v2801_v55, %v1342_v40 }
 0x1be   : > { %v1529_v5 = vpop.f32.mrf.mxu0  ;;  %v1648_v6 = vpop.f32.mrf.mxu1 }
 0x1bf   : > { %v4225_v33 = vadd.f32 %v2833_v44, %v1582_v25  ;;  %v1580_v22 = vadd.f32 %v1529_v5, %v1334_v61 }
 0x1c0   : > { %v2802_v31 = vpop.f32.mrf.mxu0  ;;  %v2834_v37 = vpop.f32.mrf.mxu1 }
 0x1c1   : > { %v4227_v57 = vadd.f32 %v1648_v6, %v1580_v22  ;;  %v1583_v59 = vadd.f32 %v2802_v31, %v1345_v27 }
 0x1c2   : > { %v1532_v42 = vpop.f32.mrf.mxu0  ;;  %v1651_v62 = vpop.f32.mrf.mxu1 }
 0x1c3   : > { %v4229_v35 = vadd.f32 %v2834_v37, %v1583_v59  ;;  %v1581_v7 = vadd.f32 %v1532_v42, %v1337_v51 }
 0x1c4   : > { %v2805_v3 = vpop.f32.mrf.mxu0  ;;  %v2837_v23 = vpop.f32.mrf.mxu1 }
 0x1c5   : > { %v4231_v60 = vadd.f32 %v1651_v62, %v1581_v7  ;;  %v1586_v40 = vadd.f32 %v2805_v3, %v1358_v8 }
 0x1c6   : > { %v1545_v43 = vpop.f32.mrf.mxu0  ;;  %v1664_v54 = vpop.f32.mrf.mxu1 }
 0x1c7   : > { %v4233_v17 = vadd.f32 %v2837_v23, %v1586_v40  ;;  %v1584_v61 = vadd.f32 %v1545_v43, %v1350_v16 }
 0x1c8   : > { %v2806_v21 = vpop.f32.mrf.mxu0  ;;  %v2838_v32 = vpop.f32.mrf.mxu1 }
 0x1c9   : > { %v4235_v50 = vadd.f32 %v1664_v54, %v1584_v61  ;;  %v1587_v27 = vadd.f32 %v2806_v21, %v1361_v49 }
 0x1ca   : > { %v1548_v24 = vpop.f32.mrf.mxu0  ;;  %v1667_v52 = vpop.f32.mrf.mxu1 }
 0x1cb   : > { %v4237_v2 = vadd.f32 %v2838_v32, %v1587_v27  ;;  %v1585_v51 = vadd.f32 %v1548_v24, %v1353_v4 }
 0x1cc   : > { %v2809_v29 = vpop.f32.mrf.mxu0  ;;  %v2841_v38 = vpop.f32.mrf.mxu1 }
 0x1cd   : > { %v4239_v20 = vadd.f32 %v1667_v52, %v1585_v51  ;;  %v1590_v8 = vadd.f32 %v2809_v29, %v1374_v34 }
 0x1ce   : > { %v1561_v28 = vpop.f32.mrf.mxu0  ;;  %v1680_v56 = vpop.f32.mrf.mxu1 }
 0x1cf   : > { %v4241_v30 = vadd.f32 %v2841_v38, %v1590_v8  ;;  %v1588_v16 = vadd.f32 %v1561_v28, %v1366_v46 }
 0x1d0   : > { %v2810_v0 = vpop.f32.mrf.mxu0  ;;  %v2842_v45 = vpop.f32.mrf.mxu1 }
 0x1d1   : > { %v4243_v11 = vadd.f32 %v1680_v56, %v1588_v16  ;;  %v1591_v49 = vadd.f32 %v2810_v0, %v1377_v15 }
 0x1d2   : > { %v1564_v48 = vpop.f32.mrf.mxu0  ;;  %v1683_v53 = vpop.f32.mrf.mxu1 }
 0x1d3   : > { %v4245_v10 = vadd.f32 %v2842_v45, %v1591_v49  ;;  %v1589_v4 = vadd.f32 %v1564_v48, %v4215_v18 }
 0x1d4   : > { %v2861_v13 = vpop.f32.mrf.mxu0  ;;  %v2893_v47 = vpop.f32.mrf.mxu1 }
 0x1d5   : > { %v4248_v1 = vadd.f32 %v1683_v53, %v1589_v4 }
 0x1d6   : > { %v1773_v34 = vpop.f32.mrf.mxu0  ;;  %v4250_v26 = vpop.f32.mrf.mxu1 }
 0x1d7   : > { %4583 = vst [vmem:[#allocation26_spill] sm:$0xff] %v4248_v1 }
 0x1d8   : > { %v2862_v39 = vpop.f32.mrf.mxu0  ;;  %v4252_v46 = vpop.f32.mrf.mxu1 }
 0x1da   : > { %v1776_v58 = vpop.f32.mrf.mxu0  ;;  %v4254_v63 = vpop.f32.mrf.mxu1 }
 0x1dc   : > { %v2865_v15 = vpop.f32.mrf.mxu0  ;;  %v4256_v12 = vpop.f32.mrf.mxu1 }
 0x1de   : > { %v1789_v14 = vpop.f32.mrf.mxu0  ;;  %v4258_v55 = vpop.f32.mrf.mxu1 }
 0x1e0   : > { %v4260_v18 = vpop.f32.mrf.mxu0  ;;  %v4262_v44 = vpop.f32.mrf.mxu1 }
 0x1e1   : > { %4584 = vst [vmem:[#allocation12_spill] sm:$0xff] %v4262_v44  ;;  %v1838_v44 = vadd.f32 %v2861_v13, %v4217_v9  ;;  %v1842_v9 = vadd.f32 %v2865_v15, %v4225_v33 }
 0x1e2   : > { %v4264_v25 = vpop.f32.mrf.mxu0  ;;  %v4266_v5 = vpop.f32.mrf.mxu1 }
 0x1e3   : > { %4585 = vst [vmem:[#allocation13_spill] sm:$0xff] %v4266_v5 }
 0x1e4   : > { %v2869_v6 = vpop.f32.mrf.mxu0  ;;  %v2901_v22 = vpop.f32.mrf.mxu1 }
 0x1e6   : > { %v1805_v31 = vpop.f32.mrf.mxu0  ;;  %v1930_v37 = vpop.f32.mrf.mxu1 }
 0x1e8   : > { %v2870_v59 = vpop.f32.mrf.mxu0  ;;  %v4268_v42 = vpop.f32.mrf.mxu1 }
 0x1ea   : > { %v1808_v62 = vpop.f32.mrf.mxu0  ;;  %v4270_v7 = vpop.f32.mrf.mxu1 }
 0x1ec   : > { %v2873_v3 = vpop.f32.mrf.mxu0  ;;  %v4272_v23 = vpop.f32.mrf.mxu1 }
 0x1ee   : > { %v4274_v40 = vpop.f32.mrf.mxu0  ;;  %v4276_v43 = vpop.f32.mrf.mxu1 }
 0x1ef   : > { %4586 = vst [vmem:[#allocation31_spill] sm:$0xff] %v4276_v43 }
 0x1f0   : > { %v4278_v54 = vpop.f32.mrf.mxu0  ;;  %v4280_v61 = vpop.f32.mrf.mxu1 }
 0x1f1   : > { %4587 = vst [vmem:[#allocation19_spill] sm:$0xff] %v4280_v61 }
 0x1f2   : > { %v4282_v21 = vpop.f32.mrf.mxu0  ;;  %v4284_v32 = vpop.f32.mrf.mxu1 }
 0x1f3   : > { %4588 = vst [vmem:[#allocation15_spill] sm:$0xff] %v4282_v21  ;;  %4589 = vst [vmem:[#allocation17_spill] sm:$0xff] %v4284_v32  ;;  %v1837_v21 = vadd.f32 %v1776_v58, %v4223_v41  ;;  %v1845_v41 = vadd.f32 %v1808_v62, %v4239_v20  ;;  %v1843_v20 = vadd.f32 %v4260_v18, %v4229_v35 }
 0x1f4   : > { %v2925_v27 = vpop.f32.mrf.mxu0  ;;  %v2957_v24 = vpop.f32.mrf.mxu1  ;;  %v1851_v35 = vadd.f32 %v4278_v54, %v4245_v10 }
 0x1f5   : > { %v1962_v33 = vadd.f32 %v4254_v63, %v1837_v21 }
 0x1f6   : > { %v2017_v52 = vpop.f32.mrf.mxu0  ;;  %v4286_v51 = vpop.f32.mrf.mxu1 }
 0x1f8   : > { %v2926_v29 = vpop.f32.mrf.mxu0  ;;  %v4288_v38 = vpop.f32.mrf.mxu1 }
 0x1f9   : > { %4590 = vst [vmem:[#allocation16_spill] sm:$0xff] %v4288_v38 }
 0x1fa   : > { %v4290_v8 = vpop.f32.mrf.mxu0  ;;  %v4292_v28 = vpop.f32.mrf.mxu1 }
 0x1fb   : > { %4591 = vst [vmem:[#allocation18_spill] sm:$0xff] %v4292_v28 }
 0x1fc   : > { %v4294_v56 = vpop.f32.mrf.mxu0  ;;  %v4296_v16 = vpop.f32.mrf.mxu1 }
 0x1fd   : > { %4592 = vst [vmem:[#allocation9_spill] sm:$0xff] %v4294_v56  ;;  %4593 = vst [vmem:[#allocation10_spill] sm:$0xff] %v4296_v16 }
 0x1fe   : > { %v4298_v0 = vpop.f32.mrf.mxu0  ;;  %v4300_v45 = vpop.f32.mrf.mxu1 }
 0x1ff   : > { %4594 = vst [vmem:[#allocation20_spill] sm:$0xff] %v4298_v0  ;;  %4595 = vst [vmem:[#allocation23_spill] sm:$0xff] %v4300_v45  ;;  %v1846_v0 = vadd.f32 %v2869_v6, %v4233_v17  ;;  %v1836_v45 = vadd.f32 %v1773_v34, %v4219_v19  ;;  %v1840_v17 = vadd.f32 %v1789_v14, %v4227_v57 }
 0x200   : > { %v4302_v49 = vpop.f32.mrf.mxu0  ;;  %v4304_v48 = vpop.f32.mrf.mxu1  ;;  %v1847_v19 = vadd.f32 %v2870_v59, %v4237_v2  ;;  %v1850_v57 = vadd.f32 %v2873_v3, %v4241_v30  ;;  %v1848_v30 = vadd.f32 %v4274_v40, %v4243_v11 }
 0x201   : > { %4596 = vst [vmem:[#allocation25_spill] sm:$0xff] %v4302_v49  ;;  %4597 = vst [vmem:[#allocation28_spill] sm:$0xff] %v4304_v48  ;;  %v1844_v48 = vadd.f32 %v1805_v31, %v4235_v50  ;;  %v1971_v13 = vadd.f32 %v2901_v22, %v1846_v0  ;;  %v1961_v34 = vadd.f32 %v4250_v26, %v1836_v45  ;;  %v4606_v45 = vld [vmem:[#allocation12_spill] sm:$0xff] }
 0x202   : > { %v4306_v53 = vpop.f32.mrf.mxu0  ;;  %v4308_v4 = vpop.f32.mrf.mxu1  ;;  %v1967_v26 = vadd.f32 %v4256_v12, %v1842_v9  ;;  %v1965_v14 = vadd.f32 %v4258_v55, %v1840_v17  ;;  %v1970_v12 = vadd.f32 %v4270_v7, %v1845_v41  ;;  %v1975_v62 = vadd.f32 %v4272_v23, %v1850_v57 }
 0x203   : > { %4598 = vst [vmem:[#allocation27_spill] sm:$0xff] %v4306_v53  ;;  %4599 = vst [vmem:[#allocation30_spill] sm:$0xff] %v4308_v4  ;;  %v1963_v53 = vadd.f32 %v2893_v47, %v1838_v44  ;;  %v1839_v4 = vadd.f32 %v2862_v39, %v4221_v36  ;;  %v1969_v36 = vadd.f32 %v1930_v37, %v1844_v48  ;;  %v4607_v48 = vld [vmem:[#allocation19_spill] sm:$0xff] }
 0x204   : > { %v2933_v32 = vpop.f32.mrf.mxu0  ;;  %v2965_v5 = vpop.f32.mrf.mxu1  ;;  %v2080_v58 = vadd.f32 %v2017_v52, %v1961_v34  ;;  %v1972_v44 = vadd.f32 %v4268_v42, %v1847_v19  ;;  %v4604_v52 = vld [vmem:[#allocation16_spill] sm:$0xff] }
 0x205   : > { %v2082_v50 = vadd.f32 %v2925_v27, %v1963_v53  ;;  %v2090_v47 = vadd.f32 %v2933_v32, %v1971_v13  ;;  %v1964_v39 = vadd.f32 %v4252_v46, %v1839_v4  ;;  %v1841_v46 = vadd.f32 %v4264_v25, %v4231_v60  ;;  %v4601_v32 = vld [vmem:[#allocation31_spill] sm:$0xff]  ;;  %v4602_v27 = vld [vmem:[#allocation26_spill] sm:$0xff] }
 0x206   : > { %v2049_v61 = vpop.f32.mrf.mxu0  ;;  %v2190_v28 = vpop.f32.mrf.mxu1  ;;  %v2221_v18 = vadd.f32 %v4286_v51, %v2080_v58  ;;  %v2081_v60 = vadd.f32 %v4290_v8, %v1962_v33  ;;  %v1973_v7 = vadd.f32 %v4601_v32, %v1848_v30  ;;  %v1976_v53 = vadd.f32 %v4607_v48, %v1851_v35  ;;  %v4608_v4 = vld [vmem:[#allocation18_spill] sm:$0xff]  ;;  %v4612_v33 = vld [vmem:[#allocation17_spill] sm:$0xff] }
 0x207   : > { %v2088_v22 = vadd.f32 %v2049_v61, %v1969_v36  ;;  %v2083_v63 = vadd.f32 %v2926_v29, %v1964_v39  ;;  %v2223_v55 = vadd.f32 %v2957_v24, %v2082_v50  ;;  %v2231_v59 = vadd.f32 %v2965_v5, %v2090_v47  ;;  %v4603_v5 = vld [vmem:[#allocation15_spill] sm:$0xff]  ;;  %v4605_v29 = vld [vmem:[#allocation9_spill] sm:$0xff]  ;;  %v4613_v58 = vld [vmem:[#allocation10_spill] sm:$0xff] }
 0x208   : > { %v2934_v56 = vpop.f32.mrf.mxu0  ;;  %v2966_v16 = vpop.f32.mrf.mxu1  ;;  %v1849_v24 = vadd.f32 %v4603_v5, %v4602_v27  ;;  %v2222_v9 = vadd.f32 %v4608_v4, %v2081_v60  ;;  %v4611_v47 = vld [vmem:[#allocation13_spill] sm:$0xff] }
 0x209   : > { %v2091_v42 = vadd.f32 %v2934_v56, %v1972_v44  ;;  %v2229_v3 = vadd.f32 %v2190_v28, %v2088_v22  ;;  %v2224_v23 = vadd.f32 %v4604_v52, %v2083_v63  ;;  %v2086_v56 = vadd.f32 %v4605_v29, %v1967_v26 }
 0x20a   : > { %v2052_v49 = vpop.f32.mrf.mxu0  ;;  %v4313_v38 = vpop.f32.mrf.mxu1  ;;  %v1966_v39 = vadd.f32 %v4611_v47, %v1841_v46  ;;  %v1974_v57 = vadd.f32 %v4612_v33, %v1849_v24 }
 0x20b   : > { %4600 = vst [vmem:[#allocation24_spill] sm:$0xff] %v4313_v38  ;;  %v2089_v40 = vadd.f32 %v2052_v49, %v1970_v12  ;;  %v2232_v51 = vadd.f32 %v2966_v16, %v2091_v42  ;;  %v1968_v49 = vadd.f32 %v4606_v45, %v1843_v20  ;;  %v4609_v16 = vld [vmem:[#allocation20_spill] sm:$0xff]  ;;  %v2227_v26 = vadd.f32 %v4613_v58, %v2086_v56 }
 0x20c   : > { %v2937_v1 = vpop.f32.mrf.mxu0  ;;  %v4318_v43 = vpop.f32.mrf.mxu1 }
 0x20d   : > { %v2094_v0 = vadd.f32 %v2937_v1, %v1975_v62  ;;  %v2084_v1 = vadd.f32 %v4609_v16, %v1965_v14  ;;  %v4614_v14 = vld [vmem:[#allocation25_spill] sm:$0xff] }
 0x20e   : > { %v2065_v6 = vpop.f32.mrf.mxu0  ;;  %v4324_v38 = vpop.f32.mrf.mxu1  ;;  %v2087_v44 = vadd.f32 %v4614_v14, %v1968_v49 }
 0x20f   : > { %v2092_v36 = vadd.f32 %v2065_v6, %v1973_v7  ;;  %v2235_v6 = vadd.f32 %v4318_v43, %v2094_v0  ;;  %v4618_v7 = vld [vmem:[#allocation30_spill] sm:$0xff] }
 0x210   : > { %v2938_v2 = vpop.f32.mrf.mxu0  ;;  %v4331_v15 = vpop.f32.mrf.mxu1 }
 0x211   : > { %v2095_v30 = vadd.f32 %v2938_v2, %v1976_v53 }
 0x212   : > { %v2068_v31 = vpop.f32.mrf.mxu0  ;;  %v4344_v37 = vpop.f32.mrf.mxu1  ;;  %v4610_v19 = vld [vmem:[#allocation24_spill] sm:$0xff] }
 0x213   : > { %v2230_v34 = vadd.f32 %v4610_v19, %v2089_v40  ;;  %v2093_v60 = vadd.f32 %v2068_v31, %v1974_v57 }
 0x214   : > { %v2989_v25 = vpop.f32.mrf.mxu0  ;;  %v2997_v11 = vpop.f32.mrf.mxu1 }
 0x215   : > { %v2348_v61 = vadd.f32 %v2989_v25, %v2223_v55  ;;  %v2356_v21 = vadd.f32 %v2997_v11, %v2231_v59  ;;  %v4615_v55 = vld [vmem:[#allocation23_spill] sm:$0xff]  ;;  %v2234_v5 = vadd.f32 %v4344_v37, %v2093_v60 }
 0x216   : > { %v2283_v10 = vpop.f32.mrf.mxu0  ;;  %v2315_v54 = vpop.f32.mrf.mxu1  ;;  %v2225_v46 = vadd.f32 %v4615_v55, %v2084_v1  ;;  %v4616_v59 = vld [vmem:[#allocation27_spill] sm:$0xff] }
 0x217   : > { %2364 = vst [vmem:[%s4357_s8 + $0x10] sm:$0xff] %v2348_v61  ;;  %2372 = vst [vmem:[%s4357_s8 + $0x50] sm:$0xff] %v2356_v21  ;;  %v2346_v8 = vadd.f32 %v2283_v10, %v2221_v18  ;;  %v2354_v28 = vadd.f32 %v2315_v54, %v2229_v3  ;;  %v2085_v42 = vadd.f32 %v4616_v59, %v1966_v39  ;;  %v4617_v3 = vld [vmem:[#allocation28_spill] sm:$0xff] }
 0x218   : > { %v2990_v17 = vpop.f32.mrf.mxu0  ;;  %v2998_v13 = vpop.f32.mrf.mxu1  ;;  %v2233_v18 = vadd.f32 %v4324_v38, %v2092_v36  ;;  %v2228_v40 = vadd.f32 %v4617_v3, %v2087_v44  ;;  %v2236_v61 = vadd.f32 %v4331_v15, %v2095_v30 }
 0x219   : > { %2362 = vst [vmem:[%s4357_s8] sm:$0xff] %v2346_v8  ;;  %2370 = vst [vmem:[%s4357_s8 + $0x40] sm:$0xff] %v2354_v28  ;;  %v2349_v41 = vadd.f32 %v2990_v17, %v2224_v23  ;;  %v2357_v50 = vadd.f32 %v2998_v13, %v2232_v51  ;;  %v2226_v27 = vadd.f32 %v4618_v7, %v2085_v42 }
 0x21a   : > { %v2286_v22 = vpop.f32.mrf.mxu0  ;;  %v2318_v20 = vpop.f32.mrf.mxu1 }
 0x21b   : > { %2365 = vst [vmem:[%s4357_s8 + $0x18] sm:$0xff] %v2349_v41  ;;  %2373 = vst [vmem:[%s4357_s8 + $0x58] sm:$0xff] %v2357_v50  ;;  %v2347_v63 = vadd.f32 %v2286_v22, %v2222_v9  ;;  %v2355_v12 = vadd.f32 %v2318_v20, %v2230_v34 }
 0x21c   : > { %v2993_v62 = vpop.f32.mrf.mxu0  ;;  %v3001_v35 = vpop.f32.mrf.mxu1 }
 0x21d   : > { %2363 = vst [vmem:[%s4357_s8 + $0x8] sm:$0xff] %v2347_v63  ;;  %2371 = vst [vmem:[%s4357_s8 + $0x48] sm:$0xff] %v2355_v12  ;;  %v2352_v43 = vadd.f32 %v2993_v62, %v2227_v26  ;;  %v2360_v2 = vadd.f32 %v3001_v35, %v2235_v6 }
 0x21e   : > { %v2299_v25 = vpop.f32.mrf.mxu0  ;;  %v2331_v11 = vpop.f32.mrf.mxu1 }
 0x21f   : > { %2368 = vst [vmem:[%s4357_s8 + $0x30] sm:$0xff] %v2352_v43  ;;  %2376 = vst [vmem:[%s4357_s8 + $0x70] sm:$0xff] %v2360_v2  ;;  %v2350_v21 = vadd.f32 %v2299_v25, %v2225_v46  ;;  %v2358_v32 = vadd.f32 %v2331_v11, %v2233_v18 }
 0x220   : > { %v2994_v38 = vpop.f32.mrf.mxu0  ;;  %v3002_v31 = vpop.f32.mrf.mxu1 }
 0x221   : > { %2366 = vst [vmem:[%s4357_s8 + $0x20] sm:$0xff] %v2350_v21  ;;  %2374 = vst [vmem:[%s4357_s8 + $0x60] sm:$0xff] %v2358_v32  ;;  %v2353_v15 = vadd.f32 %v2994_v38, %v2228_v40  ;;  %v2361_v24 = vadd.f32 %v3002_v31, %v2236_v61 }
 0x222   : > { %v2302_v52 = vpop.f32.mrf.mxu0  ;;  %v2334_v23 = vpop.f32.mrf.mxu1 }
 0x223   : > { %2369 = vst [vmem:[%s4357_s8 + $0x38] sm:$0xff] %v2353_v15  ;;  %2377 = vst [vmem:[%s4357_s8 + $0x78] sm:$0xff] %v2361_v24  ;;  %v2351_v37 = vadd.f32 %v2302_v52, %v2226_v27  ;;  %v2359_v29 = vadd.f32 %v2334_v23, %v2234_v5 }
 0x225   : > { %2367 = vst [vmem:[%s4357_s8 + $0x28] sm:$0xff] %v2351_v37  ;;  %2375 = vst [vmem:[%s4357_s8 + $0x68] sm:$0xff] %v2359_v29 }
 0x226   : > { %3160 = shalt.err (!%p3157_p6)
}
 0x227   : > { %s3161_s28 = scalar_lea.hbm %s4394_s24, 2048  ;;  %s3165_s12 = scalar_lea.hbm %s4459_s4, 8192 }
 0x228   : > { %p3162_p7 = scmp.ne.s32.totalorder %s4394_s24, %s3161_s28  ;;  %p3166_p13 = scmp.lt.s32.totalorder %s4394_s24, %s4459_s4 }
 0x229   : > { %p3167_p10 = scmp.lt.s32.totalorder %s3165_s12, %s3161_s28 }
 0x22a   : > { %p3163_p9 = pnand %p3162_p7, %p3329_p3 }
 0x22b   : > { %p3168_p12 = por %p3167_p10, %p3166_p13 }
 0x22c   : > { %p3164_p11 = pneg %p3163_p9 }
 0x22e   : > { %p3169_p0 = pnand %p3168_p12, %p3164_p11 }
 0x230   : > { %3172 = shalt.err (!%p3169_p0)
}
 0x231   : > { %s3250_s14 = smov 128   ;;  %s3251_s23 = smov 8  }
 0x232   : > { %3025 = dma.vmem_to_hbm [thread:$0]  (%p3329_p3), %s4396_s13, 2048, %s4394_s24, %s4404_s27, %s3250_s14, %s3250_s14, %s3251_s23  }
 0x233 PF: > { %p3037_p1 = scmp.ge.s32.totalorder %s3243_s22, 2  ;;  %s2409_s5 = sand.u32 1, %s3215_s15  }
 0x234   : > { %s2410_s6 = scalar_lea.sflag [#allocation4], %s2409_s5 }
 0x235   : > { %p3032_p2 = pnand %p3037_p1, %p3338_p8 }
 0x237   : > { %p3033_p4 = pneg %p3032_p2 }
 0x239   : > { %3210 = dma.done.wait (%p3033_p4), %s2410_s6, 2048  }
 0x23a   : > { %3212 = vsyncadd (%p3033_p4), %s2410_s6, 4294965248  ;;  %s18_s22 = sadd.s32 1, %s3243_s22   ;;  %s4619_s15 = smov %s3219_s16 }
 0x23b   : > { %p15_p5 = scmp.ge.s32.totalorder %s18_s22, 6   ;;  %s4620_s16 = smov %s3223_s17 }
 0x23c   : > { %s4621_s17 = smov %s3356_s9  ;;  %s4622_s18 = smov %s3235_s20 }
 0x23d   : > { %s4623_s19 = smov %s3239_s21  ;;  %s4624_s20 = smov %s4627_s25 }
 0x23e   : > { %s4625_s21 = smov %s4631_s26  ;;  %17 = sbr.rel (!%p15_p5) target bundleno = 6 (0x6), region = 82 }
 0x243   :  { %2415 = vsyncpa [#allocation3], 1 }
 0x244   :  { %2417 = vsyncpa [#allocation3 + $0x1], 1 }
 0x245   :  { %2418 = vsyncpa [#allocation4], 1 }
 0x246   :  { %2420 = vsyncpa [#allocation4 + $0x1], 1 }

// kernel: tpu_custom_call.1
= control target key start
LH: loop header
LB: loop body
LE: loop exit
PB: predicated region body
PF: predicated region fallthrough
CT: control target
= control target key end

     0   :  { %9 = vsyncpa [#allocation3], 0  ;;  %s4455_s0 = inlined_call_operand.vmem [shape: bf16[2,2,10,18,128], index: 0, kind: input, shape index: {}]   ;;  %s4456_s1 = inlined_call_operand.vmem [shape: f32[2,128,1], index: 1, kind: input, shape index: {}]   ;;  %s4457_s2 = inlined_call_operand.vmem [shape: f32[2,1,128], index: 2, kind: input, shape index: {}]   ;;  %s4458_s3 = inlined_call_operand.hbm [shape: f32[9,128,128], index: 3, kind: input, shape index: {}]   ;;  %s4459_s4 = inlined_call_operand.hbm [shape: f32[2,2,128,128], index: 4, kind: output, shape index: {}]  }
   0x1   :  { %10 = vsyncpa [#allocation4], 0 }
   0x2   :  { %12 = vsyncpa [#allocation4 + $0x1], 0  ;;  %s3277_s15 = smov 0   ;;  %s3279_s16 = smov 0  }
   0x3   :  { %s3281_s17 = smov 0   ;;  %s3283_s18 = smov 0  }
   0x4   :  { %s3285_s19 = smov 0   ;;  %s3287_s20 = smov 0  }
   0x5   :  { %s3289_s21 = smov 0   ;;  %s3291_s22 = smov 0  }
   0x6 LB: > { %s2512_s23 = sadd.s32 4294967295, %s3243_s22   ;;  %s2513_s24 = sadd.s32 4294967294, %s3243_s22   ;;  %s3243_s22 = sphi %s3291_s22, %s18_s22   ;;  %s3239_s21 = sphi %s3289_s21, %s4625_s21   ;;  %s3235_s20 = sphi %s3287_s20, %s4624_s20   ;;  %s3231_s19 = sphi %s3285_s19, %s4623_s19   ;;  %s3227_s18 = sphi %s3283_s18, %s4622_s18   ;;  %s3223_s17 = sphi %s3281_s17, %s4621_s17   ;;  %s3219_s16 = sphi %s3279_s16, %s4620_s16   ;;  %s3215_s15 = sphi %s3277_s15, %s4619_s15  }
   0x7   : > { %s27_s25 = sadd.s32 1, %s3235_s20  ;;  %s30_s26 = sadd.s32 1, %s3239_s21 }
   0x8   : > { %p28_p0 = scmp.ge.s32.totalorder %s27_s25, 2  ;;  %s140_s27 = sadd.s32 1, %s3223_s17 }
   0x9   : > { %p150_p1 = scmp.ne.s32.totalorder %s3223_s17, %s3219_s16  ;;  %p151_p2 = scmp.eq.s32.totalorder %s2512_s23, 3 }
   0xa   : > { %s4627_s25 = smov (%p28_p0, %s27_s25), 0  ;;  %s4629_s26 = smov (!%p28_p0, %s30_s26), %s3239_s21 }
   0xb   : > { %s136_s28 = ssub.s32 %s3235_s20, %s4627_s25  ;;  %p3329_p3 = por %p151_p2, %p150_p1 }
   0xc   : > { %p32_p4 = scmp.ge.s32.totalorder %s4629_s26, 2  ;;  %p156_p5 = scmp.ne.s32.totalorder %s3219_s16, %s3215_s15 }
   0xd   : > { %p157_p6 = scmp.eq.s32.totalorder %s2513_s24, 3  ;;  %p2514_p7 = scmp.ge.s32.totalorder %s3243_s22, 1 }
   0xe   : > { %s4631_s26 = smov (%p32_p4, %s4629_s26), 0  ;;  %p164_p9 = scmp.lt.s32.totalorder %s3243_s22, 5 }
   0xf   : > { %p3338_p8 = por %p157_p6, %p156_p5  ;;  %s135_s5 = ssub.s32 %s3239_s21, %s4631_s26 }
  0x10   : > { %s137_s6 = sor.u32 %s136_s28, %s135_s5  ;;  %p3345_p10 = pnand %p2514_p7, %p164_p9 }
  0x11   : > { %p138_p11 = scmp.eq.s32.totalorder %s137_s6, 0  ;;  %p3349_p12 = scmp.eq.s32.totalorder %s2512_s23, 0 }
  0x12   : > { %p3027_p13 = pneg %p3345_p10  ;;  %s3245_s10 = smov [#allocation2]  }
  0x13   : > { %s3356_s9 = scalar_select %p138_p11, %s3223_s17, %s140_s27  }
  0x14   : > { %s176_s11 = sshll.u32 %s3245_s10, 4  ;;  %p3360_p0 = pnand %p3349_p12, %p3027_p13  ;;  %s177_s11 = int_to_ptr.vmem [resolvable:$true] %s176_s11 }
  0x15   : > { %s3132_s13 = scalar_lea.vmem %s177_s11, 18432  ;;  %p3140_p6 = scmp.lt.s32.totalorder %s177_s11, %s177_s11 }
  0x16   : > { %p3123_p1 = pneg %p3360_p0  ;;  %p3133_p2 = scmp.ne.s32.totalorder %s177_s11, %s3132_s13 }
  0x17   : > { %p3141_p7 = scmp.lt.s32.totalorder %s3132_s13, %s3132_s13 }
  0x18   : > { %p3135_p4 = pnand %p3133_p2, %p3123_p1 }
  0x19   : > { %p3142_p9 = por %p3141_p7, %p3140_p6 }
  0x1a   : > { %p3136_p5 = pneg %p3135_p4 }
  0x1c   : > { %p3143_p11 = pnand %p3142_p9, %p3136_p5 }
  0x1e   : > { %3146 = shalt.err (!%p3143_p11)
}
  0x1f   : > { %s3246_s14 = smov 128   ;;  %s3247_s23 = smov 8  }
  0x20   : > { %3030 = dma.hbm_to_vmem [thread:$0]  (!%p3360_p0), %s4458_s3, 18432, %s177_s11, [#allocation3], %s3246_s14, %s3246_s14, %s3247_s23  }
  0x21   : > { %218 = sbr.rel (%p3345_p10) target bundleno = 563 (0x233), region = 36 }
  0x26   : > { %3206 = dma.done.wait (%p3349_p12), [#allocation3], 18432  }
  0x27   : > { %3208 = vsyncadd (%p3349_p12), [#allocation3], 4294948864  ;;  %p256_p13 = scmp.lt.s32.totalorder %s3231_s19, 1  ;;  %v3248_v0 = vmov 0   ;;  %p258_p10 = scmp.lt.s32.totalorder %s3227_s18, 1  ;;  %v4507_v33 = vmov 0 }
  0x28   : > { %3109 = vset.pattern.permute.xlu1 %v3248_v0  ;;  %3108 = vset.pattern.permute.xlu0 %v3248_v0  ;;  %vm911_vm0 = vsmask.f32 3328  ;;  %vm912_vm1 = vsmask.f32 7440  ;;  %vm1388_vm3 = vcmask 1042432   ;;  %vm1389_vm4 = vcmask 1046532  }
  0x29   : > { %s3379_s28 = scalar_select %p256_p13, %s3231_s19, 1  ;;  %vm3414_vm2 = vmor %vm911_vm0, %vm912_vm1  ;;  %v299_v46 = vld [vmem:[#allocation2 + $0xc8] sm:$0xff] }
  0x2a   : > { %s259_s8 = scalar_select %p258_p10, %s3227_s18, 1  ;;  %v4508_v33 = vsel %vm3414_vm2, 4294967295, %v4507_v33  ;;  %vm3422_vm5 = vmor %vm1388_vm3, %vm1389_vm4 }
  0x2b   : > { %s2570_s5 = sshll.u32 %s3379_s28, 7  ;;  %s3020_s11 = smul.u32 60, %s3379_s28  ;;  %4509 = vst [vmem:[#allocation8_spill] sm:$0xff] %v4508_v33  ;;  %v351_v33 = vld [vmem:[#allocation2 + $0x268] sm:$0xff] }
  0x2c   : > { %s3385_s10 = scalar_lea.vmem %s4456_s1, %s2570_s5  ;;  %s3019_s12 = smul.u32 30, %s259_s8 }
  0x2d   : > { %v432_v1 = vld [vmem:[%s3385_s10 + $0x70] sm:$0xff]  ;;  %v430_v2 = vld [vmem:[%s3385_s10 + $0x60] sm:$0xff]  ;;  %v433_v3 = vld [vmem:[%s3385_s10 + $0x78] sm:$0xff]  ;;  %s3512_s7 = scalar_lea.vmem %s4457_s2, %s3379_s28  ;;  %s253_s28 = sand.u32 1, %s3219_s16  }
  0x2e   : > { %506 = vperm.xlu0 %3108, %v432_v1   ;;  %496 = vperm.xlu1 %3109, %v430_v2   ;;  %v431_v4 = vld [vmem:[%s3385_s10 + $0x68] sm:$0xff]  ;;  %v429_v5 = vld [vmem:[%s3385_s10 + $0x58] sm:$0xff]  ;;  %v428_v6 = vld [vmem:[%s3385_s10 + $0x50] sm:$0xff]  ;;  %s262_s13 = sadd.s32 %s3020_s11, %s3019_s12  ;;  %s2565_s11 = sshll.u32 %s3227_s18, 4 }
  0x2f   : > { %v427_v7 = vld [vmem:[%s3385_s10 + $0x48] sm:$0xff]  ;;  %v426_v8 = vld [vmem:[%s3385_s10 + $0x40] sm:$0xff]  ;;  %v425_v9 = vld [vmem:[%s3385_s10 + $0x38] sm:$0xff]  ;;  %s2520_s14 = sshll.u32 %s262_s13, 2  ;;  %s2566_s12 = sshll.u32 %s3231_s19, 5 }
  0x30   : > { %v424_v10 = vld [vmem:[%s3385_s10 + $0x30] sm:$0xff]  ;;  %v423_v11 = vld [vmem:[%s3385_s10 + $0x28] sm:$0xff]  ;;  %v422_v12 = vld [vmem:[%s3385_s10 + $0x20] sm:$0xff]  ;;  %s3407_s27 = scalar_lea.vmem %s4455_s0, %s2520_s14  ;;  %s2391_s18 = sadd.s32 %s2566_s12, %s2565_s11 }
  0x31   : > { %v421_v13 = vld [vmem:[%s3385_s10 + $0x18] sm:$0xff]  ;;  %v420_v14 = vld [vmem:[%s3385_s10 + $0x10] sm:$0xff]  ;;  %v419_v15 = vld [vmem:[%s3385_s10 + $0x8] sm:$0xff]  ;;  %s2567_s19 = sshll.u32 %s2391_s18, 7  ;;  %s3249_s6 = smov [#allocation5]  }
  0x32   : > { %511 = vperm.xlu0 %3108, %v433_v3   ;;  %501 = vperm.xlu1 %3109, %v431_v4   ;;  %v418_v16 = vld [vmem:[%s3385_s10] sm:$0xff]  ;;  %v883_v27 = vld [vmem:[%s3407_s27 + $0x8] sm:$0x1]  ;;  %v3437_v47 = vld [vmem:[%s3407_s27 + $0xc] sm:$0xf]  ;;  %s2519_s10 = sshll.u32 %s253_s28, 7  ;;  %s4394_s24 = scalar_lea.hbm %s4459_s4, %s2567_s19 }
  0x33   : > { %v881_v17 = vld [vmem:[%s3407_s27] sm:$0xf]  ;;  %v882_v18 = vld [vmem:[%s3407_s27 + $0x4] sm:$0xf]  ;;  %v934_v30 = vshll.u32 %v883_v27, 16  ;;  %v1396_v39 = vrot.slane %v883_v27, 5 }
  0x34   : > { %v915_v19 = vshrl.u32 %v881_v17, 16  ;;  %v918_v20 = vshll.u32 %v881_v17, 16  ;;  %v924_v21 = vshll.u32 %v882_v18, 16  ;;  %v928_v22 = vshrl.u32 %v882_v18, 16  ;;  %v3440_v48 = vld [vmem:[%s3407_s27 + $0x10] sm:$0xf] }
  0x35   : > { %v936_v34 = vrot.slane %v934_v30, 5  ;;  %v2532_v36 = vcombine.low %v881_v17, %v882_v18  ;;  %v2540_v41 = vrot.slane %v881_v17, 9  ;;  %v1393_v42 = vrot.slane %v882_v18, 5  ;;  %v3447_v53 = vld [vmem:[%s3407_s27 + $0x18] sm:$0xf]  ;;  %s4357_s8 = scalar_lea.vmem [#allocation5], %s2519_s10 }
  0x36   : > { %491 = vperm.xlu1 %3109, %v429_v5   ;;  %486 = vperm.xlu0 %3108, %v428_v6   ;;  %v917_v23 = vrot.slane %v915_v19, 4  ;;  %v920_v24 = vrot.slane %v918_v20, 5  ;;  %v926_v25 = vrot.slane %v924_v21, 5  ;;  %v930_v26 = vrot.slane %v928_v22, 4  ;;  %4514 = vst [vmem:[#allocation11_spill] sm:$0xff] %v3447_v53  ;;  %s2394_s13 = sshll.u32 %s4357_s8, 4  ;;  %s4396_s13 = int_to_ptr.vmem [resolvable:$true] %s2394_s13 }
  0x37   : > { %2763 = vmatprep.mubr.bf16.mxu1 %v2532_v36  ;;  %v3428_v43 = vsel %vm3422_vm5, %v2540_v41, %v1393_v42  ;;  %v1395_v44 = vrot.slane %v1393_v42, 4  ;;  %v939_v49 = vshrl.u32 %v3437_v47, 16  ;;  %v942_v50 = vshll.u32 %v3437_v47, 16  ;;  %v3450_v54 = vld [vmem:[%s3407_s27 + $0x1c] sm:$0xf]  ;;  %s3147_s5 = scalar_lea.vmem %s4396_s13, 2048 }
  0x38   : > { %v921_v28 = vor.u32 %v920_v24, %v917_v23  ;;  %v931_v29 = vor.u32 %v930_v26, %v926_v25  ;;  %4512 = vst [vmem:[#allocation9_spill] sm:$0xff] %v3428_v43  ;;  %v948_v51 = vshll.u32 %v3440_v48, 16  ;;  %v952_v52 = vshrl.u32 %v3440_v48, 16  ;;  %v3453_v55 = vld [vmem:[%s3407_s27 + $0x24] sm:$0xf]  ;;  %p3148_p12 = scmp.ne.s32.totalorder %s4396_s13, %s3147_s5 }
  0x39   : > { %v3432_v45 = vsel %vm3422_vm5, %v1395_v44, %v1396_v39  ;;  %4515 = vst [vmem:[#allocation12_spill] sm:$0xff] %v3453_v55  ;;  %v941_v56 = vrot.slane %v939_v49, 4  ;;  %v944_v57 = vrot.slane %v942_v50, 5  ;;  %v3456_v58 = vld [vmem:[%s3407_s27 + $0x28] sm:$0xf]  ;;  %v963_v59 = vshrl.u32 %v3447_v53, 16 }
  0x3a   : > { %481 = vperm.xlu1 %3109, %v427_v7   ;;  %476 = vperm.xlu0 %3108, %v426_v8   ;;  %v922_v31 = vrot.slane %v921_v28, 4  ;;  %v932_v32 = vrot.slane %v931_v29, 4  ;;  %4513 = vst [vmem:[#allocation10_spill] sm:$0xff] %v3432_v45  ;;  %4516 = vst [vmem:[#allocation13_spill] sm:$0xff] %v3456_v58  ;;  %v966_v60 = vshll.u32 %v3447_v53, 16  ;;  %v972_v61 = vshll.u32 %v3450_v54, 16  ;;  %p3149_p0 = pnand %p3148_p12, %p3329_p3 }
  0x3b   : > { %v976_v62 = vshrl.u32 %v3450_v54, 16  ;;  %v950_v63 = vrot.slane %v948_v51, 5  ;;  %v954_v0 = vrot.slane %v952_v52, 4  ;;  %v987_v1 = vshrl.u32 %v3453_v55, 16  ;;  %v3465_v3 = vld [vmem:[%s3407_s27 + $0x14] sm:$0x1] }
  0x3c   : > { %v927_v35 = vsel %vm3414_vm2, %v922_v31, %v926_v25  ;;  %v937_v37 = vsel %vm3414_vm2, %v932_v32, %v936_v34  ;;  %v990_v2 = vshll.u32 %v3453_v55, 16  ;;  %v996_v4 = vshll.u32 %v3456_v58, 16  ;;  %v3477_v19 = vld [vmem:[%s3407_s27 + $0x30] sm:$0xf]  ;;  %v3482_v29 = vld [vmem:[%s3407_s27 + $0x34] sm:$0xf]  ;;  %p3150_p1 = pneg %p3149_p0 }
  0x3d   : > { %v2524_v38 = vcombine.low %v927_v35, %v937_v37  ;;  %v1000_v5 = vshrl.u32 %v3456_v58, 16  ;;  %v945_v6 = vor.u32 %v944_v57, %v941_v56  ;;  %v965_v7 = vrot.slane %v963_v59, 4  ;;  %4519 = vst [vmem:[#allocation16_spill] sm:$0xff] %v3477_v19  ;;  %4520 = vst [vmem:[#allocation17_spill] sm:$0xff] %v3482_v29  ;;  %v3492_v44 = vld [vmem:[%s3407_s27 + $0x38] sm:$0x1] }
  0x3e   : > { %471 = vperm.xlu1 %3109, %v425_v9   ;;  %466 = vperm.xlu0 %3108, %v424_v10   ;;  %v968_v8 = vrot.slane %v966_v60, 5  ;;  %v974_v9 = vrot.slane %v972_v61, 5  ;;  %v978_v10 = vrot.slane %v976_v62, 4  ;;  %v998_v17 = vrot.slane %v996_v4, 5  ;;  %4521 = vst [vmem:[#allocation18_spill] sm:$0xff] %v3492_v44  ;;  %v304_v52 = vld [vmem:[#allocation2 + $0xf0] sm:$0xff] }
  0x3f   : > { %2731 = vmatprep.mubr.bf16.mxu0 %v2524_v38  ;;  %v1002_v18 = vrot.slane %v1000_v5, 4  ;;  %v946_v20 = vrot.slane %v945_v6, 4  ;;  %v1011_v30 = vshrl.u32 %v3477_v19, 16  ;;  %v1014_v31 = vshll.u32 %v3477_v19, 16  ;;  %v288_v59 = vld [vmem:[#allocation2 + $0x70] sm:$0xff]  ;;  %v302_v60 = vld [vmem:[#allocation2 + $0xe0] sm:$0xff] }
  0x40   : > { %v969_v21 = vor.u32 %v968_v8, %v965_v7  ;;  %v979_v22 = vor.u32 %v978_v10, %v974_v9  ;;  %v1020_v41 = vshll.u32 %v3482_v29, 16  ;;  %v1024_v51 = vshrl.u32 %v3482_v29, 16  ;;  %v286_v61 = vld [vmem:[#allocation2 + $0x60] sm:$0xff]  ;;  %v305_v10 = vld [vmem:[#allocation2 + $0xf8] sm:$0xff]  ;;  %v3601_v45 = vld [vmem:[%s3407_s27 + $0x48] sm:$0xf] }
  0x41   : > { %v1003_v28 = vor.u32 %v1002_v18, %v998_v17  ;;  %v951_v32 = vsel %vm3414_vm2, %v946_v20, %v950_v63  ;;  %v1013_v49 = vrot.slane %v1011_v30, 4  ;;  %v1016_v50 = vrot.slane %v1014_v31, 5  ;;  %v289_v20 = vld [vmem:[#allocation2 + $0x78] sm:$0xff]  ;;  %4530 = vst [vmem:[#allocation27_spill] sm:$0xff] %v3601_v45 }
  0x42   : > { %461 = vperm.xlu1 %3109, %v423_v11   ;;  %456 = vperm.xlu0 %3108, %v422_v12   ;;  %v955_v11 = vor.u32 %v954_v0, %v950_v63  ;;  %v958_v12 = vshll.u32 %v3465_v3, 16  ;;  %v970_v34 = vrot.slane %v969_v21, 4  ;;  %v980_v35 = vrot.slane %v979_v22, 4  ;;  %v303_v22 = vld [vmem:[#allocation2 + $0xe8] sm:$0xff] }
  0x43   : > { %v1004_v42 = vrot.slane %v1003_v28, 4  ;;  %v3503_v63 = vcombine.low %v3437_v47, %v3440_v48  ;;  %v1017_v6 = vor.u32 %v1016_v50, %v1013_v49  ;;  %v3520_v7 = vrot.slane %v1020_v41, 5  ;;  %v3569_v50 = vld [vmem:[%s3407_s27 + $0x44] sm:$0x1] }
  0x44   : > { %v956_v24 = vrot.slane %v955_v11, 4  ;;  %v960_v25 = vrot.slane %v958_v12, 5  ;;  %v975_v56 = vsel %vm3414_vm2, %v970_v34, %v974_v9  ;;  %v1026_v8 = vrot.slane %v1024_v51, 4  ;;  %v3523_v9 = vld [vmem:[%s3407_s27 + $0x3c] sm:$0xf]  ;;  %4528 = vst [vmem:[#allocation25_spill] sm:$0xff] %v3569_v50 }
  0x45   : > { %4523 = vst [vmem:[#allocation20_spill] sm:$0xff] %v3523_v9  ;;  %v3529_v12 = vcombine.low %v3447_v53, %v3450_v54  ;;  %v1035_v30 = vshrl.u32 %v3523_v9, 16  ;;  %v1038_v31 = vshll.u32 %v3523_v9, 16 }
  0x46   : > { %451 = vperm.xlu1 %3109, %v421_v13   ;;  %446 = vperm.xlu0 %3108, %v420_v14   ;;  %v3471_v13 = vld [vmem:[%s3407_s27 + $0x20] sm:$0x1]  ;;  %v989_v14 = vrot.slane %v987_v1, 4  ;;  %v961_v37 = vsel %vm3414_vm2, %v956_v24, %v960_v25  ;;  %v1030_v1 = vshll.u32 %v3492_v44, 16  ;;  %v287_v24 = vld [vmem:[#allocation2 + $0x68] sm:$0xff] }
  0x47   : > { %4517 = vst [vmem:[#allocation14_spill] sm:$0xff] %v3471_v13  ;;  %v982_v23 = vshll.u32 %v3471_v13, 16  ;;  %v3499_v62 = vcombine.low %v951_v32, %v961_v37 }
  0x48   : > { %v3551_v28 = vrot.slane %v1030_v1, 5 }
  0x49   : > { %v984_v36 = vrot.slane %v982_v23, 5 }
  0x4a   : > { %441 = vperm.xlu1 %3109, %v419_v15   ;;  %436 = vperm.xlu0 %3108, %v418_v16   ;;  %v992_v15 = vrot.slane %v990_v2, 5  ;;  %v3474_v16 = vld [vmem:[%s3407_s27 + $0x2c] sm:$0x1] }
  0x4b   : > { %4518 = vst [vmem:[#allocation15_spill] sm:$0xff] %v3474_v16  ;;  %v1006_v27 = vshll.u32 %v3474_v16, 16  ;;  %v985_v57 = vsel %vm3414_vm2, %v980_v35, %v984_v36  ;;  %v3559_v35 = vrot.slane %v1017_v6, 4  ;;  %v1027_v36 = vor.u32 %v1026_v8, %v3520_v7  ;;  %v284_v6 = vld [vmem:[#allocation2 + $0x50] sm:$0xff]  ;;  %v285_v8 = vld [vmem:[#allocation2 + $0x58] sm:$0xff] }
  0x4c   : > { %v993_v26 = vor.u32 %v992_v15, %v989_v14  ;;  %v3525_v11 = vcombine.low %v975_v56, %v985_v57  ;;  %v3533_v14 = vcombine.low %v3453_v55, %v3456_v58  ;;  %v3537_v15 = vcombine.low %v3477_v19, %v3482_v29  ;;  %v278_v29 = vld [vmem:[#allocation2 + $0x20] sm:$0xff] }
  0x4d   : > { %v1008_v39 = vrot.slane %v1006_v27, 5 }
  0x4e   : > { %v994_v38 = vrot.slane %v993_v26, 4  ;;  %4524 = vst [vmem:[#allocation21_spill] sm:$0xff] %v3533_v14  ;;  %4525 = vst [vmem:[#allocation22_spill] sm:$0xff] %v3537_v15  ;;  %v3547_v26 = vld [vmem:[%s3512_s7] ss:$0 sm:$0xff]  ;;  %v335_v15 = vld [vmem:[#allocation2 + $0x1e8] sm:$0xff] }
  0x4f   : > { %v1009_v5 = vsel %vm3414_vm2, %v1004_v42, %v1008_v39 }
  0x50   : > { %v999_v0 = vsel %vm3414_vm2, %v994_v38, %v998_v17  ;;  %v3540_v17 = vld [vmem:[%s3407_s27 + $0x40] sm:$0xf] }
  0x51   : > { %4526 = vst [vmem:[#allocation23_spill] sm:$0xff] %v3540_v17  ;;  %v3549_v27 = vcombine.low %v999_v0, %v1009_v5  ;;  %v1044_v37 = vshll.u32 %v3540_v17, 16  ;;  %v1048_v38 = vshrl.u32 %v3540_v17, 16  ;;  %v301_v5 = vld [vmem:[#allocation2 + $0xd8] sm:$0xff] }
  0x53   : > { %4527 = vst [vmem:[#allocation24_spill] sm:$0xff] %v3549_v27 }
  0xa9   : > { %v3514_v2 = vpop.permute.xlu0 %506  ;;  %v3516_v4 = vpop.permute.xlu1 %496 }
  0xaa   : > { %4522 = vst [vmem:[#allocation19_spill] sm:$0xff] %v3514_v2  ;;  %v544_v18 = vmul.f32 %v3514_v2, %v304_v52  ;;  %v528_v21 = vmul.f32 %v3514_v2, %v288_v59  ;;  %v542_v23 = vmul.f32 %v3516_v4, %v302_v60  ;;  %v526_v25 = vmul.f32 %v3516_v4, %v286_v61  ;;  %v300_v59 = vld [vmem:[#allocation2 + $0xd0] sm:$0xff] }
  0xac   : > { %v695_v51 = vmul.f32 %v3547_v26, %v544_v18  ;;  %v679_v52 = vmul.f32 %v3547_v26, %v528_v21  ;;  %v693_v56 = vmul.f32 %v3547_v26, %v542_v23  ;;  %v677_v57 = vmul.f32 %v3547_v26, %v526_v25 }
  0xad   : > { %v3555_v32 = vpop.permute.xlu0 %511  ;;  %v3557_v34 = vpop.permute.xlu1 %501  ;;  %v3585_v21 = vrot.slane %v1038_v31, 5  ;;  %v1054_v23 = vshll.u32 %v3569_v50, 16 }
  0xae   : > { %v545_v39 = vmul.f32 %v3555_v32, %v305_v10  ;;  %v529_v41 = vmul.f32 %v3555_v32, %v289_v20  ;;  %v543_v42 = vmul.f32 %v3557_v34, %v303_v22  ;;  %v527_v49 = vmul.f32 %v3557_v34, %v287_v24 }
  0xaf   : > { %v3583_v20 = vrot.slane %v1035_v30, 4  ;;  %v3587_v22 = vrot.slane %v1044_v37, 5  ;;  %v298_v37 = vld [vmem:[#allocation2 + $0xc0] sm:$0xff] }
  0xb0   : > { %v696_v60 = vmul.f32 %v3547_v26, %v545_v39  ;;  %v680_v61 = vmul.f32 %v3547_v26, %v529_v41  ;;  %v694_v0 = vmul.f32 %v3547_v26, %v543_v42  ;;  %v678_v1 = vmul.f32 %v3547_v26, %v527_v49 }
  0xb1   : > { %v3579_v10 = vpop.permute.xlu1 %491  ;;  %v3581_v18 = vpop.permute.xlu0 %486  ;;  %v3590_v39 = vrot.slane %v1027_v36, 4  ;;  %v3594_v41 = vcombine.low %v3523_v9, %v3540_v17  ;;  %v280_v9 = vld [vmem:[#allocation2 + $0x30] sm:$0xff] }
  0xb2   : > { %v824_v24 = vpack.c.bf16 %v696_v60, %v695_v51  ;;  %v816_v25 = vpack.c.bf16 %v680_v61, %v679_v52  ;;  %v540_v42 = vmul.f32 %v3581_v18, %v300_v59  ;;  %v541_v49 = vmul.f32 %v3579_v10, %v301_v5  ;;  %v282_v52 = vld [vmem:[#allocation2 + $0x40] sm:$0xff]  ;;  %v283_v60 = vld [vmem:[#allocation2 + $0x48] sm:$0xff] }
  0xb3   : > { %4529 = vst [vmem:[#allocation26_spill] sm:$0xff] %v3594_v41  ;;  %v524_v30 = vmul.f32 %v3581_v18, %v284_v6  ;;  %v525_v31 = vmul.f32 %v3579_v10, %v285_v8  ;;  %v823_v36 = vpack.c.bf16 %v694_v0, %v693_v56  ;;  %v815_v51 = vpack.c.bf16 %v678_v1, %v677_v57  ;;  %v3622_v1 = vld [vmem:[%s3407_s27 + $0x4c] sm:$0xf] }
  0xb4   : > { %2715 = vmatprep.subr.bf16.mxu0 %v824_v24  ;;  %2747 = vmatprep.subr.bf16.mxu1 %v816_v25  ;;  %v1023_v59 = vsel %vm3414_vm2, %v3559_v35, %v3520_v7  ;;  %v3607_v61 = vrot.slane %v1048_v38, 4  ;;  %v691_v8 = vmul.f32 %v3547_v26, %v540_v42  ;;  %v692_v56 = vmul.f32 %v3547_v26, %v541_v49  ;;  %v296_v49 = vld [vmem:[#allocation2 + $0xb0] sm:$0xff]  ;;  %v275_v41 = vld [vmem:[#allocation2 + $0x8] sm:$0xff] }
  0xb5   : > { %v3609_v5 = vpop.permute.xlu1 %481  ;;  %v3611_v6 = vpop.permute.xlu0 %476  ;;  %2716 = vmatpush3.bf16.msra.mxu0 %v824_v24  ;;  %2748 = vmatpush3.bf16.msra.mxu1 %v816_v25  ;;  %v675_v57 = vmul.f32 %v3547_v26, %v524_v30  ;;  %v3616_v0 = vrot.slane %v1054_v23, 5  ;;  %v676_v7 = vmul.f32 %v3547_v26, %v525_v31  ;;  %4531 = vst [vmem:[#allocation28_spill] sm:$0xff] %v3622_v1  ;;  %v1059_v24 = vshrl.u32 %v3601_v45, 16  ;;  %v297_v30 = vld [vmem:[#allocation2 + $0xb8] sm:$0xff] }
  0xb6   : > { %2717 = vmatprep.subr.bf16.mxu0 %v823_v36  ;;  %2749 = vmatprep.subr.bf16.mxu1 %v815_v51  ;;  %v538_v35 = vmul.f32 %v3611_v6, %v298_v37  ;;  %v539_v38 = vmul.f32 %v3609_v5, %v299_v46  ;;  %v522_v25 = vmul.f32 %v3611_v6, %v282_v52  ;;  %v281_v52 = vld [vmem:[#allocation2 + $0x38] sm:$0xff] }
  0xb7   : > { %v523_v42 = vmul.f32 %v3609_v5, %v283_v60  ;;  %v1033_v23 = vsel %vm3414_vm2, %v3590_v39, %v3551_v28  ;;  %v1041_v31 = vor.u32 %v3585_v21, %v3583_v20  ;;  %v822_v37 = vpack.c.bf16 %v692_v56, %v691_v8 }
  0xb8   : > { %v814_v46 = vpack.c.bf16 %v676_v7, %v675_v57  ;;  %v689_v50 = vmul.f32 %v3547_v26, %v538_v35  ;;  %v690_v17 = vmul.f32 %v3547_v26, %v539_v38  ;;  %v673_v44 = vmul.f32 %v3547_v26, %v522_v25  ;;  %v294_v7 = vld [vmem:[#allocation2 + $0xa0] sm:$0xff]  ;;  %v295_v35 = vld [vmem:[#allocation2 + $0xa8] sm:$0xff] }
  0xb9   : > { %v3635_v43 = vpop.permute.xlu1 %471  ;;  %v3637_v60 = vpop.permute.xlu0 %466  ;;  %2718 = vmatpush3.bf16.msra.mxu0 %v823_v36  ;;  %2750 = vmatpush3.bf16.msra.mxu1 %v815_v51  ;;  %v674_v28 = vmul.f32 %v3547_v26, %v523_v42  ;;  %v1062_v20 = vshll.u32 %v3601_v45, 16  ;;  %v1068_v21 = vshll.u32 %v3622_v1, 16  ;;  %v1051_v56 = vor.u32 %v3607_v61, %v3587_v22  ;;  %v279_v61 = vld [vmem:[#allocation2 + $0x28] sm:$0xff] }
  0xba   : > { %2719 = vmatprep.subr.bf16.mxu0 %v822_v37  ;;  %2751 = vmatprep.subr.bf16.mxu1 %v814_v46  ;;  %v536_v39 = vmul.f32 %v3637_v60, %v296_v49  ;;  %v537_v8 = vmul.f32 %v3635_v43, %v297_v30  ;;  %v3647_v57 = vrot.slane %v1059_v24, 4  ;;  %v520_v36 = vmul.f32 %v3637_v60, %v280_v9 }
  0xbb   : > { %v521_v51 = vmul.f32 %v3635_v43, %v281_v52  ;;  %v3651_v38 = vcombine.low %v1023_v59, %v1033_v23  ;;  %v1072_v25 = vshrl.u32 %v3622_v1, 16  ;;  %v821_v42 = vpack.c.bf16 %v690_v17, %v689_v50 }
  0xbc   : > { %v813_v19 = vpack.c.bf16 %v674_v28, %v673_v44  ;;  %v687_v49 = vmul.f32 %v3547_v26, %v536_v39  ;;  %v688_v30 = vmul.f32 %v3547_v26, %v537_v8  ;;  %v671_v9 = vmul.f32 %v3547_v26, %v520_v36  ;;  %v292_v39 = vld [vmem:[#allocation2 + $0x90] sm:$0xff]  ;;  %v293_v8 = vld [vmem:[#allocation2 + $0x98] sm:$0xff] }
  0xbd   : > { %4532 = vst [vmem:[#allocation29_spill] sm:$0xff] %v3651_v38  ;;  %v3656_v24 = vpop.permute.xlu1 %461  ;;  %v3658_v16 = vpop.permute.xlu0 %456  ;;  %2720 = vmatpush3.bf16.msra.mxu0 %v822_v37  ;;  %2752 = vmatpush3.bf16.msra.mxu1 %v814_v46  ;;  %v672_v59 = vmul.f32 %v3547_v26, %v521_v51  ;;  %v3662_v23 = vrot.slane %v1041_v31, 4  ;;  %v3664_v44 = vrot.slane %v1062_v20, 5  ;;  %v3668_v52 = vrot.slane %v1051_v56, 4  ;;  %v3675_v31 = vld [vmem:[%s3407_s27 + $0x50] sm:$0x1] }
  0xbe   : > { %2721 = vmatprep.subr.bf16.mxu0 %v821_v42  ;;  %2753 = vmatprep.subr.bf16.mxu1 %v813_v19  ;;  %v534_v17 = vmul.f32 %v3658_v16, %v294_v7  ;;  %v535_v50 = vmul.f32 %v3656_v24, %v295_v35  ;;  %v3670_v28 = vrot.slane %v1068_v21, 5  ;;  %v518_v37 = vmul.f32 %v3658_v16, %v278_v29  ;;  %v276_v35 = vld [vmem:[#allocation2 + $0x10] sm:$0xff]  ;;  %v277_v29 = vld [vmem:[#allocation2 + $0x18] sm:$0xff] }
  0xbf   : > { %v519_v46 = vmul.f32 %v3656_v24, %v279_v61  ;;  %4533 = vst [vmem:[#allocation30_spill] sm:$0xff] %v3675_v31  ;;  %v3677_v20 = vrot.slane %v1072_v25, 4  ;;  %v3681_v36 = vcombine.low %v3601_v45, %v3622_v1  ;;  %v820_v51 = vpack.c.bf16 %v688_v30, %v687_v49  ;;  %v290_v49 = vld [vmem:[#allocation2 + $0x80] sm:$0xff]  ;;  %v291_v1 = vld [vmem:[#allocation2 + $0x88] sm:$0xff] }
  0xc0   : > { %v812_v7 = vpack.c.bf16 %v672_v59, %v671_v9  ;;  %v685_v56 = vmul.f32 %v3547_v26, %v534_v17  ;;  %v686_v21 = vmul.f32 %v3547_v26, %v535_v50  ;;  %v669_v25 = vmul.f32 %v3547_v26, %v518_v37  ;;  %v320_v59 = vld [vmem:[#allocation2 + $0x170] sm:$0xff]  ;;  %v321_v17 = vld [vmem:[#allocation2 + $0x178] sm:$0xff] }
  0xc1   : > { %4534 = vst [vmem:[#allocation31_spill] sm:$0xff] %v3681_v36  ;;  %v3685_v61 = vpop.permute.xlu1 %451  ;;  %v3687_v58 = vpop.permute.xlu0 %446  ;;  %2722 = vmatpush3.bf16.msra.mxu0 %v821_v42  ;;  %2754 = vmatpush3.bf16.msra.mxu1 %v813_v19  ;;  %v670_v45 = vmul.f32 %v3547_v26, %v519_v46  ;;  %v1065_v19 = vor.u32 %v3664_v44, %v3647_v57  ;;  %v1078_v42 = vshll.u32 %v3675_v31, 16  ;;  %v3701_v50 = vld [vmem:[%s3407_s27 + $0x54] sm:$0xf] }
  0xc2   : > { %4535 = vst [vmem:[#allocation32_spill] sm:$0xff] %v3685_v61  ;;  %4536 = vst [vmem:[#allocation33_spill] sm:$0xff] %v3687_v58  ;;  %2723 = vmatprep.subr.bf16.mxu0 %v820_v51  ;;  %2755 = vmatprep.subr.bf16.mxu1 %v812_v7  ;;  %v532_v30 = vmul.f32 %v3687_v58, %v292_v39  ;;  %v533_v9 = vmul.f32 %v3685_v61, %v293_v8  ;;  %v336_v36 = vld [vmem:[#allocation2 + $0x1f0] sm:$0xff] }
  0xc3   : > { %v516_v37 = vmul.f32 %v3687_v58, %v276_v35  ;;  %v517_v46 = vmul.f32 %v3685_v61, %v277_v29  ;;  %v1075_v8 = vor.u32 %v3677_v20, %v3670_v28  ;;  %v819_v57 = vpack.c.bf16 %v686_v21, %v685_v56  ;;  %v274_v35 = vld [vmem:[#allocation2] sm:$0xff]  ;;  %v337_v29 = vld [vmem:[#allocation2 + $0x1f8] sm:$0xff] }
  0xc4   : > { %v811_v44 = vpack.c.bf16 %v670_v45, %v669_v25  ;;  %v683_v31 = vmul.f32 %v3547_v26, %v532_v30  ;;  %v684_v55 = vmul.f32 %v3547_v26, %v533_v9  ;;  %v560_v20 = vmul.f32 %v3514_v2, %v320_v59  ;;  %v318_v30 = vld [vmem:[#allocation2 + $0x160] sm:$0xff] }
  0xc5   : > { %v3713_v13 = vpop.permute.xlu1 %441  ;;  %v3715_v53 = vpop.permute.xlu0 %436  ;;  %2724 = vmatpush3.bf16.msra.mxu0 %v820_v51  ;;  %2756 = vmatpush3.bf16.msra.mxu1 %v812_v7  ;;  %v667_v39 = vmul.f32 %v3547_v26, %v516_v37  ;;  %v668_v61 = vmul.f32 %v3547_v26, %v517_v46  ;;  %v1083_v45 = vshrl.u32 %v3701_v50, 16  ;;  %v576_v25 = vmul.f32 %v3514_v2, %v336_v36  ;;  %v319_v46 = vld [vmem:[#allocation2 + $0x168] sm:$0xff]  ;;  %v334_v58 = vld [vmem:[#allocation2 + $0x1e0] sm:$0xff] }
  0xc6   : > { %2725 = vmatprep.subr.bf16.mxu0 %v819_v57  ;;  %2757 = vmatprep.subr.bf16.mxu1 %v811_v44  ;;  %v530_v56 = vmul.f32 %v3715_v53, %v290_v49  ;;  %v531_v21 = vmul.f32 %v3713_v13, %v291_v1  ;;  %v1086_v51 = vshll.u32 %v3701_v50, 16  ;;  %v514_v7 = vmul.f32 %v3715_v53, %v274_v35 }
  0xc7   : > { %v515_v9 = vmul.f32 %v3713_v13, %v275_v41  ;;  %v561_v37 = vmul.f32 %v3555_v32, %v321_v17  ;;  %v577_v59 = vmul.f32 %v3555_v32, %v337_v29  ;;  %v818_v38 = vpack.c.bf16 %v684_v55, %v683_v31 }
  0xc8   : > { %v810_v49 = vpack.c.bf16 %v668_v61, %v667_v39  ;;  %v681_v1 = vmul.f32 %v3547_v26, %v530_v56  ;;  %v682_v36 = vmul.f32 %v3547_v26, %v531_v21  ;;  %v665_v2 = vmul.f32 %v3547_v26, %v514_v7  ;;  %v316_v61 = vld [vmem:[#allocation2 + $0x150] sm:$0xff] }
  0xc9   : > { %2726 = vmatpush3.bf16.msra.mxu0 %v819_v57  ;;  %2758 = vmatpush3.bf16.msra.mxu1 %v811_v44  ;;  %v666_v35 = vmul.f32 %v3547_v26, %v515_v9  ;;  %v558_v41 = vmul.f32 %v3516_v4, %v318_v30  ;;  %v559_v17 = vmul.f32 %v3557_v34, %v319_v46  ;;  %v3737_v39 = vrot.slane %v1065_v19, 4  ;;  %v317_v9 = vld [vmem:[#allocation2 + $0x158] sm:$0xff]  ;;  %v332_v46 = vld [vmem:[#allocation2 + $0x1d0] sm:$0xff] }
  0xca   : > { %2727 = vmatprep.subr.bf16.mxu0 %v818_v38  ;;  %2759 = vmatprep.subr.bf16.mxu1 %v810_v49  ;;  %v574_v55 = vmul.f32 %v3516_v4, %v334_v58  ;;  %v575_v31 = vmul.f32 %v3557_v34, %v335_v15  ;;  %v3739_v57 = vrot.slane %v1078_v42, 5  ;;  %v3741_v44 = vrot.slane %v1083_v45, 4  ;;  %v3748_v58 = vld [vmem:[%s3407_s27 + $0x58] sm:$0xf] }
  0xcb   : > { %v3743_v29 = vrot.slane %v1086_v51, 5  ;;  %v817_v56 = vpack.c.bf16 %v682_v36, %v681_v1  ;;  %v809_v21 = vpack.c.bf16 %v666_v35, %v665_v2  ;;  %v712_v30 = vmul.f32 %v3547_v26, %v561_v37  ;;  %v333_v45 = vld [vmem:[#allocation2 + $0x1d8] sm:$0xff] }
  0xcc   : > { %v728_v7 = vmul.f32 %v3547_v26, %v577_v59  ;;  %v711_v15 = vmul.f32 %v3547_v26, %v560_v20  ;;  %v727_v19 = vmul.f32 %v3547_v26, %v576_v25  ;;  %v709_v42 = vmul.f32 %v3547_v26, %v558_v41  ;;  %v315_v41 = vld [vmem:[#allocation2 + $0x148] sm:$0xff] }
  0xcd   : > { %2728 = vmatpush3.bf16.msra.mxu0 %v818_v38  ;;  %2760 = vmatpush3.bf16.msra.mxu1 %v810_v49  ;;  %v1076_v51 = vrot.slane %v1075_v8, 4  ;;  %v710_v2 = vmul.f32 %v3547_v26, %v559_v17  ;;  %v725_v37 = vmul.f32 %v3547_v26, %v574_v55  ;;  %v726_v59 = vmul.f32 %v3547_v26, %v575_v31  ;;  %v314_v49 = vld [vmem:[#allocation2 + $0x140] sm:$0xff] }
  0xce   : > { %2729 = vmatprep.subr.bf16.mxu0 %v817_v56  ;;  %2761 = vmatprep.subr.bf16.mxu1 %v809_v21  ;;  %v556_v1 = vmul.f32 %v3581_v18, %v316_v61  ;;  %v557_v38 = vmul.f32 %v3579_v10, %v317_v9  ;;  %v572_v20 = vmul.f32 %v3581_v18, %v332_v46  ;;  %v1092_v25 = vshll.u32 %v3748_v58, 16  ;;  %v330_v61 = vld [vmem:[#allocation2 + $0x1c0] sm:$0xff]  ;;  %v312_v9 = vld [vmem:[#allocation2 + $0x130] sm:$0xff] }
  0xcf   : > { %v832_v36 = vpack.c.bf16 %v712_v30, %v711_v15  ;;  %v840_v35 = vpack.c.bf16 %v728_v7, %v727_v19  ;;  %v573_v8 = vmul.f32 %v3579_v10, %v333_v45  ;;  %v4537_v17 = vsel %vm3414_vm2, %v3668_v52, %v3616_v0  ;;  %v331_v30 = vld [vmem:[#allocation2 + $0x1c8] sm:$0xff]  ;;  %v313_v15 = vld [vmem:[#allocation2 + $0x138] sm:$0xff]  ;;  %v328_v45 = vld [vmem:[#allocation2 + $0x1b0] sm:$0xff] }
  0xd0   : > { %v4538_v55 = vsel %vm3414_vm2, %v3662_v23, %v3587_v22  ;;  %v1071_v7 = vsel %vm3414_vm2, %v3737_v39, %v3670_v28  ;;  %v1081_v0 = vsel %vm3414_vm2, %v1076_v51, %v3739_v57  ;;  %v1089_v52 = vor.u32 %v3743_v29, %v3741_v44  ;;  %v3789_v19 = vld [vmem:[%s3407_s27 + $0x5c] sm:$0x1] }
  0xd1   : > { %v3771_v31 = vcombine.low %v4538_v55, %v4537_v17  ;;  %2730 = vmatpush3.bf16.msra.mxu0 %v817_v56  ;;  %2762 = vmatpush3.bf16.msra.mxu1 %v809_v21  ;;  %v1096_v22 = vshrl.u32 %v3748_v58, 16  ;;  %v831_v23 = vpack.c.bf16 %v710_v2, %v709_v42  ;;  %v839_v56 = vpack.c.bf16 %v726_v59, %v725_v37  ;;  %v329_v51 = vld [vmem:[#allocation2 + $0x1b8] sm:$0xff]  ;;  %v311_v17 = vld [vmem:[#allocation2 + $0x128] sm:$0xff] }
  0xd2   : > { %2779 = vmatprep.subr.bf16.mxu0 %v832_v36  ;;  %2811 = vmatprep.subr.bf16.mxu1 %v840_v35  ;;  %v554_v21 = vmul.f32 %v3611_v6, %v314_v49  ;;  %v707_v46 = vmul.f32 %v3547_v26, %v556_v1  ;;  %v708_v28 = vmul.f32 %v3547_v26, %v557_v38  ;;  %v3797_v37 = vrot.slane %v1092_v25, 5 }
  0xd3   : > { %4539 = vst [vmem:[#allocation34_spill] sm:$0xff] %v3771_v31  ;;  %v723_v39 = vmul.f32 %v3547_v26, %v572_v20  ;;  %v555_v57 = vmul.f32 %v3609_v5, %v315_v41  ;;  %v724_v44 = vmul.f32 %v3547_v26, %v573_v8  ;;  %v570_v29 = vmul.f32 %v3611_v6, %v330_v61  ;;  %v310_v41 = vld [vmem:[#allocation2 + $0x120] sm:$0xff] }
  0xd4   : > { %2732 = vmatmul.mubr.bf16.vlgmr.msra.gmra.mxu0 %v3499_v62  ;;  %2764 = vmatmul.mubr.bf16.vlgmr.msra.gmra.mxu1 %v3503_v63  ;;  %v571_v42 = vmul.f32 %v3609_v5, %v331_v30  ;;  %v552_v2 = vmul.f32 %v3637_v60, %v312_v9  ;;  %v1098_v59 = vrot.slane %v1096_v22, 4  ;;  %v3801_v1 = vcombine.low %v3701_v50, %v3748_v58  ;;  %v327_v9 = vld [vmem:[#allocation2 + $0x1a8] sm:$0xff] }
  0xd5   : > { %2780 = vmatpush3.bf16.msra.mxu0 %v832_v36  ;;  %2812 = vmatpush3.bf16.msra.mxu1 %v840_v35  ;;  %v705_v38 = vmul.f32 %v3547_v26, %v554_v21  ;;  %v553_v20 = vmul.f32 %v3635_v43, %v313_v15  ;;  %v3805_v49 = vcombine.low %v1071_v7, %v1081_v0  ;;  %v1102_v36 = vshll.u32 %v3789_v19, 16  ;;  %v326_v21 = vld [vmem:[#allocation2 + $0x1a0] sm:$0xff] }
  0xd6   : > { %4540 = vst [vmem:[#allocation35_spill] sm:$0xff] %v3801_v1  ;;  %2781 = vmatprep.subr.bf16.mxu0 %v831_v23  ;;  %2813 = vmatprep.subr.bf16.mxu1 %v839_v56  ;;  %v706_v25 = vmul.f32 %v3547_v26, %v555_v57  ;;  %v568_v35 = vmul.f32 %v3637_v60, %v328_v45  ;;  %v3813_v55 = vrot.slane %v1089_v52, 4  ;;  %v2541_v15 = vrot.slane %v3437_v47, 9 }
  0xd7   : > { %4541 = vst [vmem:[#allocation36_spill] sm:$0xff] %v3805_v49  ;;  %2735 = vmatprep.mubr.bf16.mxu0 %v3525_v11  ;;  %2767 = vmatprep.mubr.bf16.mxu1 %v3529_v12  ;;  %v569_v8 = vmul.f32 %v3635_v43, %v329_v51  ;;  %v830_v61 = vpack.c.bf16 %v708_v28, %v707_v46  ;;  %v1400_v45 = vrot.slane %v3440_v48, 5  ;;  %v1403_v52 = vrot.slane %v3465_v3, 5  ;;  %v309_v51 = vld [vmem:[#allocation2 + $0x118] sm:$0xff] }
  0xd8   : > { %v838_v30 = vpack.c.bf16 %v724_v44, %v723_v39  ;;  %v721_v7 = vmul.f32 %v3547_v26, %v570_v29  ;;  %v722_v0 = vmul.f32 %v3547_v26, %v571_v42  ;;  %v703_v22 = vmul.f32 %v3547_v26, %v552_v2  ;;  %v308_v42 = vld [vmem:[#allocation2 + $0x110] sm:$0xff] }
  0xd9   : > { %2782 = vmatpush3.bf16.msra.mxu0 %v831_v23  ;;  %2814 = vmatpush3.bf16.msra.mxu1 %v839_v56  ;;  %v1099_v57 = vor.u32 %v1098_v59, %v3797_v37  ;;  %v704_v46 = vmul.f32 %v3547_v26, %v553_v20  ;;  %v550_v28 = vmul.f32 %v3658_v16, %v310_v41  ;;  %v1104_v2 = vrot.slane %v1102_v36, 5  ;;  %v324_v59 = vld [vmem:[#allocation2 + $0x190] sm:$0xff] }
  0xda   : > { %2783 = vmatprep.subr.bf16.mxu0 %v830_v61  ;;  %2815 = vmatprep.subr.bf16.mxu1 %v838_v30  ;;  %v551_v23 = vmul.f32 %v3656_v24, %v311_v17  ;;  %v829_v56 = vpack.c.bf16 %v706_v25, %v705_v38  ;;  %v719_v39 = vmul.f32 %v3547_v26, %v568_v35  ;;  %v325_v38 = vld [vmem:[#allocation2 + $0x198] sm:$0xff]  ;;  %v1402_v25 = vrot.slane %v1400_v45, 4 }
  0xdb   : > { %v720_v44 = vmul.f32 %v3547_v26, %v569_v8  ;;  %v1095_v47 = vsel %vm3414_vm2, %v3813_v55, %v3797_v37  ;;  %v837_v48 = vpack.c.bf16 %v722_v0, %v721_v7  ;;  %v566_v3 = vmul.f32 %v3658_v16, %v326_v21  ;;  %v4542_v55 = vld [vmem:[#allocation29_spill] sm:$0xff]  ;;  %v4545_v0 = vld [vmem:[#allocation32_spill] sm:$0xff] }
  0xdc   : > { %2736 = vmatmul.mubr.bf16.gmra.mxu0 %v3549_v27  ;;  %2768 = vmatmul.mubr.bf16.gmra.mxu1 %v3533_v14  ;;  %v567_v29 = vmul.f32 %v3656_v24, %v327_v9  ;;  %v1100_v20 = vrot.slane %v1099_v57, 4  ;;  %v3837_v37 = vsel %vm3422_vm5, %v2541_v15, %v1400_v45  ;;  %v1407_v35 = vrot.slane %v3450_v54, 5  ;;  %v306_v9 = vld [vmem:[#allocation2 + $0x100] sm:$0xff]  ;;  %v307_v57 = vld [vmem:[#allocation2 + $0x108] sm:$0xff]  ;;  %v4546_v15 = vld [vmem:[#allocation11_spill] sm:$0xff] }
  0xdd   : > { %2784 = vmatpush3.bf16.msra.mxu0 %v830_v61  ;;  %2816 = vmatpush3.bf16.msra.mxu1 %v838_v30  ;;  %v828_v8 = vpack.c.bf16 %v704_v46, %v703_v22  ;;  %v701_v41 = vmul.f32 %v3547_v26, %v550_v28  ;;  %v702_v17 = vmul.f32 %v3547_v26, %v551_v23  ;;  %v4543_v61 = vld [vmem:[#allocation22_spill] sm:$0xff]  ;;  %v4544_v30 = vld [vmem:[#allocation33_spill] sm:$0xff]  ;;  %v2542_v54 = vrot.slane %v4546_v15, 9  ;;  %v322_v23 = vld [vmem:[#allocation2 + $0x180] sm:$0xff] }
  0xde   : > { %2785 = vmatprep.subr.bf16.mxu0 %v829_v56  ;;  %2817 = vmatprep.subr.bf16.mxu1 %v837_v48  ;;  %v836_v36 = vpack.c.bf16 %v720_v44, %v719_v39  ;;  %v548_v7 = vmul.f32 %v4544_v30, %v308_v42  ;;  %v549_v21 = vmul.f32 %v4545_v0, %v309_v51  ;;  %v323_v39 = vld [vmem:[#allocation2 + $0x188] sm:$0xff]  ;;  %v1409_v51 = vrot.slane %v1407_v35, 4  ;;  %v4547_v15 = vld [vmem:[#allocation14_spill] sm:$0xff] }
  0xdf   : > { %2739 = vmatprep.mubr.bf16.mxu0 %v4542_v55  ;;  %2771 = vmatprep.mubr.bf16.mxu1 %v4543_v61  ;;  %v717_v45 = vmul.f32 %v3547_v26, %v566_v3  ;;  %v718_v22 = vmul.f32 %v3547_v26, %v567_v29  ;;  %v564_v46 = vmul.f32 %v4544_v30, %v324_v59  ;;  %v1410_v55 = vrot.slane %v4547_v15, 5 }
  0xe0   : > { %v565_v28 = vmul.f32 %v4545_v0, %v325_v38  ;;  %v1105_v44 = vsel %vm3414_vm2, %v1100_v20, %v1104_v2  ;;  %v1404_v42 = vsel %vm3422_vm5, %v1402_v25, %v1403_v52  ;;  %v827_v3 = vpack.c.bf16 %v702_v17, %v701_v41  ;;  %v353_v20 = vld [vmem:[#allocation2 + $0x278] sm:$0xff]  ;;  %v4548_v52 = vld [vmem:[#allocation26_spill] sm:$0xff] }
  0xe1   : > { %2786 = vmatpush3.bf16.msra.mxu0 %v829_v56  ;;  %2818 = vmatpush3.bf16.msra.mxu1 %v837_v48  ;;  %v546_v29 = vmul.f32 %v3715_v53, %v306_v9  ;;  %v547_v59 = vmul.f32 %v3713_v13, %v307_v57  ;;  %v699_v38 = vmul.f32 %v3547_v26, %v548_v7  ;;  %v369_v9 = vld [vmem:[#allocation2 + $0x2f8] sm:$0xff] }
  0xe2   : > { %2787 = vmatprep.subr.bf16.mxu0 %v828_v8  ;;  %2819 = vmatprep.subr.bf16.mxu1 %v836_v36  ;;  %v700_v56 = vmul.f32 %v3547_v26, %v549_v21  ;;  %v562_v48 = vmul.f32 %v3715_v53, %v322_v23  ;;  %v563_v2 = vmul.f32 %v3713_v13, %v323_v39  ;;  %v352_v21 = vld [vmem:[#allocation2 + $0x270] sm:$0xff]  ;;  %v4550_v39 = vld [vmem:[#allocation12_spill] sm:$0xff] }
  0xe3   : > { %v835_v25 = vpack.c.bf16 %v718_v22, %v717_v45  ;;  %v715_v41 = vmul.f32 %v3547_v26, %v564_v46  ;;  %v716_v17 = vmul.f32 %v3547_v26, %v565_v28  ;;  %v3866_v7 = vcombine.low %v1095_v47, %v1105_v44  ;;  %v4551_v47 = vld [vmem:[#allocation13_spill] sm:$0xff]  ;;  %v4552_v28 = vld [vmem:[#allocation31_spill] sm:$0xff] }
  0xe4   : > { %2740 = vmatmul.mubr.bf16.gmra.mxu0 %v3771_v31  ;;  %2772 = vmatmul.mubr.bf16.gmra.mxu1 %v4548_v52  ;;  %v1408_v57 = vsel %vm3422_vm5, %v2542_v54, %v1407_v35  ;;  %v1411_v23 = vsel %vm3422_vm5, %v1409_v51, %v1410_v55  ;;  %v2543_v15 = vrot.slane %v4550_v39, 9  ;;  %v697_v45 = vmul.f32 %v3547_v26, %v546_v29  ;;  %v4553_v29 = vld [vmem:[#allocation19_spill] sm:$0xff]  ;;  %v367_v31 = vld [vmem:[#allocation2 + $0x2e8] sm:$0xff] }
  0xe5   : > { %2788 = vmatpush3.bf16.msra.mxu0 %v828_v8  ;;  %2820 = vmatpush3.bf16.msra.mxu1 %v836_v36  ;;  %4549 = vst [vmem:[#allocation22_spill] sm:$0xff] %v3866_v7  ;;  %v698_v22 = vmul.f32 %v3547_v26, %v547_v59  ;;  %v593_v8 = vmul.f32 %v3555_v32, %v353_v20  ;;  %v368_v36 = vld [vmem:[#allocation2 + $0x2f0] sm:$0xff]  ;;  %v1414_v46 = vrot.slane %v4551_v47, 5  ;;  %v350_v20 = vld [vmem:[#allocation2 + $0x260] sm:$0xff] }
  0xe6   : > { %2789 = vmatprep.subr.bf16.mxu0 %v827_v3  ;;  %2821 = vmatprep.subr.bf16.mxu1 %v835_v25  ;;  %v713_v35 = vmul.f32 %v3547_v26, %v562_v48  ;;  %v714_v55 = vmul.f32 %v3547_v26, %v563_v2  ;;  %v609_v54 = vmul.f32 %v3555_v32, %v369_v9  ;;  %v4555_v2 = vld [vmem:[#allocation15_spill] sm:$0xff]  ;;  %v4556_v9 = vld [vmem:[#allocation17_spill] sm:$0xff] }
  0xe7   : > { %2743 = vmatprep.mubr.bf16.mxu0 %v3805_v49  ;;  %2775 = vmatprep.mubr.bf16.mxu1 %v4552_v28  ;;  %v826_v44 = vpack.c.bf16 %v700_v56, %v699_v38  ;;  %v834_v51 = vpack.c.bf16 %v716_v17, %v715_v41  ;;  %v592_v39 = vmul.f32 %v4553_v29, %v352_v21  ;;  %v366_v49 = vld [vmem:[#allocation2 + $0x2e0] sm:$0xff]  ;;  %v1417_v27 = vrot.slane %v4555_v2, 5 }
  0xe8   : > { %v3884_v59 = vcombine.low %v3837_v37, %v1404_v42  ;;  %v608_v47 = vmul.f32 %v4553_v29, %v368_v36  ;;  %v3887_v48 = vcombine.low %v1408_v57, %v1411_v23  ;;  %v1421_v38 = vrot.slane %v4556_v9, 5  ;;  %v348_v42 = vld [vmem:[#allocation2 + $0x250] sm:$0xff]  ;;  %v349_v23 = vld [vmem:[#allocation2 + $0x258] sm:$0xff] }
  0xe9   : > { %2790 = vmatpush3.bf16.msra.mxu0 %v827_v3  ;;  %2822 = vmatpush3.bf16.msra.mxu1 %v835_v25  ;;  %v825_v56 = vpack.c.bf16 %v698_v22, %v697_v45  ;;  %v744_v37 = vmul.f32 %v3547_v26, %v593_v8  ;;  %v1415_v3 = vsel %vm3422_vm5, %v2543_v15, %v1414_v46  ;;  %v1416_v25 = vrot.slane %v1414_v46, 4  ;;  %v4557_v15 = vld [vmem:[#allocation16_spill] sm:$0xff] }
  0xea   : > { %4554 = vst [vmem:[#allocation33_spill] sm:$0xff] %v3887_v48  ;;  %2791 = vmatprep.subr.bf16.mxu0 %v826_v44  ;;  %2823 = vmatprep.subr.bf16.mxu1 %v834_v51  ;;  %v833_v41 = vpack.c.bf16 %v714_v55, %v713_v35  ;;  %v760_v17 = vmul.f32 %v3547_v26, %v609_v54  ;;  %v2544_v36 = vrot.slane %v4557_v15, 9  ;;  %v365_v55 = vld [vmem:[#allocation2 + $0x2d8] sm:$0xff]  ;;  %v1423_v54 = vrot.slane %v1421_v38, 4 }
  0xeb   : > { %v590_v21 = vmul.f32 %v3516_v4, %v350_v20  ;;  %v591_v57 = vmul.f32 %v3557_v34, %v351_v33  ;;  %v743_v45 = vmul.f32 %v3547_v26, %v592_v39  ;;  %v606_v22 = vmul.f32 %v3516_v4, %v366_v49  ;;  %v364_v33 = vld [vmem:[#allocation2 + $0x2d0] sm:$0xff] }
  0xec   : > { %2744 = vmatmul.mubr.bf16.gmra.mxu0 %v3866_v7  ;;  %2776 = vmatmul.mubr.bf16.gmra.mxu1 %v3801_v1  ;;  %v607_v8 = vmul.f32 %v3557_v34, %v367_v31  ;;  %v759_v46 = vmul.f32 %v3547_v26, %v608_v47  ;;  %v588_v35 = vmul.f32 %v3581_v18, %v348_v42  ;;  %v4558_v20 = vld [vmem:[#allocation18_spill] sm:$0xff]  ;;  %v347_v7 = vld [vmem:[#allocation2 + $0x248] sm:$0xff] }
  0xed   : > { %2792 = vmatpush3.bf16.msra.mxu0 %v826_v44  ;;  %2824 = vmatpush3.bf16.msra.mxu1 %v834_v51  ;;  %v1424_v2 = vrot.slane %v4558_v20, 5  ;;  %v848_v39 = vpack.c.bf16 %v744_v37, %v743_v45  ;;  %v589_v49 = vmul.f32 %v3579_v10, %v349_v23  ;;  %v1418_v31 = vsel %vm3422_vm5, %v1416_v25, %v1417_v27  ;;  %v4559_v44 = vld [vmem:[#allocation9_spill] sm:$0xff]  ;;  %v4560_v51 = vld [vmem:[#allocation10_spill] sm:$0xff]  ;;  %v346_v20 = vld [vmem:[#allocation2 + $0x240] sm:$0xff] }
  0xee   : > { %2793 = vmatprep.subr.bf16.mxu0 %v825_v56  ;;  %2825 = vmatprep.subr.bf16.mxu1 %v833_v41  ;;  %v856_v9 = vpack.c.bf16 %v760_v17, %v759_v46  ;;  %v4561_v15 = vcombine.low %v4559_v44, %v4560_v51  ;;  %v741_v47 = vmul.f32 %v3547_v26, %v590_v21  ;;  %v362_v25 = vld [vmem:[#allocation2 + $0x2c0] sm:$0xff]  ;;  %v363_v17 = vld [vmem:[#allocation2 + $0x2c8] sm:$0xff]  ;;  %v344_v51 = vld [vmem:[#allocation2 + $0x230] sm:$0xff] }
  0xef   : > { %2827 = vmatprep.mubr.bf16.mxu1 %v3503_v63  ;;  %v742_v42 = vmul.f32 %v3547_v26, %v591_v57  ;;  %v757_v37 = vmul.f32 %v3547_v26, %v606_v22  ;;  %v758_v23 = vmul.f32 %v3547_v26, %v607_v8  ;;  %v604_v45 = vmul.f32 %v3581_v18, %v364_v33  ;;  %v4562_v46 = vld [vmem:[#allocation20_spill] sm:$0xff] }
  0xf0   : > { %2795 = vmatprep.mubr.bf16.mxu0 %v4561_v15  ;;  %v605_v27 = vmul.f32 %v3579_v10, %v365_v55  ;;  %v739_v63 = vmul.f32 %v3547_v26, %v588_v35  ;;  %v1422_v21 = vsel %vm3422_vm5, %v2544_v36, %v1421_v38  ;;  %v1425_v57 = vsel %vm3422_vm5, %v1423_v54, %v1424_v2  ;;  %v360_v15 = vld [vmem:[#allocation2 + $0x2b0] sm:$0xff] }
  0xf1   : > { %2794 = vmatpush3.bf16.msra.mxu0 %v825_v56  ;;  %2826 = vmatpush3.bf16.msra.mxu1 %v833_v41  ;;  %v2545_v22 = vrot.slane %v4562_v46, 9  ;;  %v740_v8 = vmul.f32 %v3547_v26, %v589_v49  ;;  %v586_v33 = vmul.f32 %v3611_v6, %v346_v20  ;;  %v587_v55 = vmul.f32 %v3609_v5, %v347_v7  ;;  %v4563_v56 = vld [vmem:[#allocation23_spill] sm:$0xff]  ;;  %v343_v46 = vld [vmem:[#allocation2 + $0x228] sm:$0xff] }
  0xf2   : > { %2843 = vmatprep.subr.bf16.mxu0 %v848_v39  ;;  %2875 = vmatprep.subr.bf16.mxu1 %v856_v9  ;;  %v1428_v41 = vrot.slane %v4563_v56, 5  ;;  %v847_v44 = vpack.c.bf16 %v742_v42, %v741_v47  ;;  %v3929_v35 = vcombine.low %v1415_v3, %v1418_v31  ;;  %v602_v38 = vmul.f32 %v3611_v6, %v362_v25  ;;  %v345_v7 = vld [vmem:[#allocation2 + $0x238] sm:$0xff]  ;;  %v4565_v42 = vld [vmem:[#allocation25_spill] sm:$0xff]  ;;  %v4566_v25 = vld [vmem:[#allocation28_spill] sm:$0xff] }
  0xf3   : > { %v603_v36 = vmul.f32 %v3609_v5, %v363_v17  ;;  %v855_v54 = vpack.c.bf16 %v758_v23, %v757_v37  ;;  %v755_v2 = vmul.f32 %v3547_v26, %v604_v45  ;;  %v756_v49 = vmul.f32 %v3547_v26, %v605_v27  ;;  %v361_v3 = vld [vmem:[#allocation2 + $0x2b8] sm:$0xff]  ;;  %v342_v27 = vld [vmem:[#allocation2 + $0x220] sm:$0xff] }
  0xf4   : > { %4564 = vst [vmem:[#allocation32_spill] sm:$0xff] %v3929_v35  ;;  %2796 = vmatmul.mubr.bf16.vlgmr.msra.gmra.mxu0 %v3884_v59  ;;  %2828 = vmatmul.mubr.bf16.vlgmr.msra.gmra.mxu1 %v3529_v12  ;;  %v3937_v31 = vcombine.low %v1422_v21, %v1425_v57  ;;  %v3941_v47 = vsel %vm3422_vm5, %v2545_v22, %v1428_v41  ;;  %v1431_v20 = vrot.slane %v4565_v42, 5  ;;  %v1435_v37 = vrot.slane %v4566_v25, 5  ;;  %v358_v22 = vld [vmem:[#allocation2 + $0x2a0] sm:$0xff]  ;;  %v4567_v56 = vld [vmem:[#allocation27_spill] sm:$0xff]  ;;  %v359_v42 = vld [vmem:[#allocation2 + $0x2a8] sm:$0xff] }
  0xf5   : > { %2844 = vmatpush3.bf16.msra.mxu0 %v848_v39  ;;  %2876 = vmatpush3.bf16.msra.mxu1 %v856_v9  ;;  %v846_v23 = vpack.c.bf16 %v740_v8, %v739_v63  ;;  %v737_v45 = vmul.f32 %v3547_v26, %v586_v33  ;;  %v738_v39 = vmul.f32 %v3547_v26, %v587_v55  ;;  %v1430_v9 = vrot.slane %v1428_v41, 4 }
  0xf6   : > { %2845 = vmatprep.subr.bf16.mxu0 %v847_v44  ;;  %2877 = vmatprep.subr.bf16.mxu1 %v855_v54  ;;  %v753_v17 = vmul.f32 %v3547_v26, %v602_v38  ;;  %v754_v21 = vmul.f32 %v3547_v26, %v603_v36  ;;  %v584_v57 = vmul.f32 %v3637_v60, %v344_v51  ;;  %v2546_v63 = vrot.slane %v4567_v56, 9  ;;  %v4568_v36 = vld [vmem:[#allocation30_spill] sm:$0xff] }
  0xf7   : > { %2799 = vmatprep.mubr.bf16.mxu0 %v3887_v48  ;;  %2831 = vmatprep.mubr.bf16.mxu1 %v3533_v14  ;;  %v854_v8 = vpack.c.bf16 %v756_v49, %v755_v2  ;;  %v585_v33 = vmul.f32 %v3635_v43, %v345_v7  ;;  %v600_v55 = vmul.f32 %v3637_v60, %v360_v15  ;;  %v1437_v25 = vrot.slane %v1435_v37, 4  ;;  %v340_v56 = vld [vmem:[#allocation2 + $0x210] sm:$0xff] }
  0xf8   : > { %v601_v41 = vmul.f32 %v3635_v43, %v361_v3  ;;  %v582_v38 = vmul.f32 %v3658_v16, %v342_v27  ;;  %v1438_v14 = vrot.slane %v4568_v36, 5  ;;  %v1442_v51 = vrot.slane %v3748_v58, 5 }
  0xf9   : > { %2846 = vmatpush3.bf16.msra.mxu0 %v847_v44  ;;  %2878 = vmatpush3.bf16.msra.mxu1 %v855_v54  ;;  %v1432_v2 = vsel %vm3422_vm5, %v1430_v9, %v1431_v20  ;;  %v583_v49 = vmul.f32 %v3656_v24, %v343_v46  ;;  %v598_v7 = vmul.f32 %v3658_v16, %v358_v22  ;;  %v2547_v15 = vrot.slane %v3701_v50, 9  ;;  %v341_v46 = vld [vmem:[#allocation2 + $0x218] sm:$0xff]  ;;  %v356_v50 = vld [vmem:[#allocation2 + $0x290] sm:$0xff] }
  0xfa   : > { %2847 = vmatprep.subr.bf16.mxu0 %v846_v23  ;;  %2879 = vmatprep.subr.bf16.mxu1 %v854_v8  ;;  %v845_v44 = vpack.c.bf16 %v738_v39, %v737_v45  ;;  %v853_v54 = vpack.c.bf16 %v754_v21, %v753_v17  ;;  %v735_v3 = vmul.f32 %v3547_v26, %v584_v57  ;;  %v1445_v45 = vrot.slane %v3789_v19, 5  ;;  %v3973_v39 = vld [vmem:[%s3512_s7] ss:$0 sm:$0xff]  ;;  %v357_v21 = vld [vmem:[#allocation2 + $0x298] sm:$0xff]  ;;  %s3151_s7 = sshll.u32 %s3249_s6, 4  ;;  %s3152_s7 = int_to_ptr.vmem [resolvable:$false] %s3151_s7 }
  0xfb   : > { %v599_v27 = vmul.f32 %v3656_v24, %v359_v42  ;;  %v736_v58 = vmul.f32 %v3547_v26, %v585_v33  ;;  %v751_v20 = vmul.f32 %v3547_v26, %v600_v55  ;;  %v752_v9 = vmul.f32 %v3547_v26, %v601_v41  ;;  %s3153_s10 = scalar_lea.vmem %s3152_s7, 4096  ;;  %p3154_p2 = scmp.lt.s32.totalorder %s4396_s13, %s3152_s7 }
  0xfc   : > { %2800 = vmatmul.mubr.bf16.gmra.mxu0 %v3929_v35  ;;  %2832 = vmatmul.mubr.bf16.gmra.mxu1 %v4543_v61  ;;  %v733_v17 = vmul.f32 %v3973_v39, %v582_v38  ;;  %v1436_v57 = vsel %vm3422_vm5, %v2546_v63, %v1435_v37  ;;  %v1439_v22 = vsel %vm3422_vm5, %v1437_v25, %v1438_v14  ;;  %v1444_v33 = vrot.slane %v1442_v51, 4  ;;  %v338_v14 = vld [vmem:[#allocation2 + $0x200] sm:$0xff]  ;;  %v339_v25 = vld [vmem:[#allocation2 + $0x208] sm:$0xff]  ;;  %p3155_p4 = scmp.lt.s32.totalorder %s3153_s10, %s3147_s5 }
  0xfd   : > { %2848 = vmatpush3.bf16.msra.mxu0 %v846_v23  ;;  %2880 = vmatpush3.bf16.msra.mxu1 %v854_v8  ;;  %v734_v26 = vmul.f32 %v3973_v39, %v583_v49  ;;  %v749_v19 = vmul.f32 %v3973_v39, %v598_v7  ;;  %v580_v23 = vmul.f32 %v4544_v30, %v340_v56 }
  0xfe   : > { %2849 = vmatprep.subr.bf16.mxu0 %v845_v44  ;;  %2881 = vmatprep.subr.bf16.mxu1 %v853_v54  ;;  %v750_v8 = vmul.f32 %v3973_v39, %v599_v27  ;;  %v581_v37 = vmul.f32 %v4545_v0, %v341_v46  ;;  %v596_v63 = vmul.f32 %v4544_v30, %v356_v50  ;;  %v355_v27 = vld [vmem:[#allocation2 + $0x288] sm:$0xff]  ;;  %p3156_p5 = por %p3155_p4, %p3154_p2 }
  0xff   : > { %2803 = vmatprep.mubr.bf16.mxu0 %v3937_v31  ;;  %2835 = vmatprep.mubr.bf16.mxu1 %v4548_v52  ;;  %v844_v55 = vpack.c.bf16 %v736_v58, %v735_v3  ;;  %v852_v41 = vpack.c.bf16 %v752_v9, %v751_v20  ;;  %v3989_v42 = vcombine.low %v3941_v47, %v1432_v2  ;;  %v354_v3 = vld [vmem:[#allocation2 + $0x280] sm:$0xff]  ;;  %v385_v9 = vld [vmem:[#allocation2 + $0x378] sm:$0xff] }
 0x100   : > { %v597_v38 = vmul.f32 %v4545_v0, %v357_v21  ;;  %v3992_v36 = vcombine.low %v1436_v57, %v1439_v22  ;;  %v1443_v49 = vsel %vm3422_vm5, %v2547_v15, %v1442_v51  ;;  %v1446_v7 = vsel %vm3422_vm5, %v1444_v33, %v1445_v45  ;;  %v4000_v2 = vld [vmem:[%s3407_s27 + $0x60] sm:$0xf]  ;;  %v4003_v58 = vld [vmem:[%s3407_s27 + $0x64] sm:$0xf]  ;;  %v401_v21 = vld [vmem:[#allocation2 + $0x3f8] sm:$0xff]  ;;  %p3157_p6 = pnand %p3156_p5, %p3150_p1 }
 0x101   : > { %4569 = vst [vmem:[#allocation11_spill] sm:$0xff] %v3989_v42  ;;  %2850 = vmatpush3.bf16.msra.mxu0 %v845_v44  ;;  %2882 = vmatpush3.bf16.msra.mxu1 %v853_v54  ;;  %v843_v56 = vpack.c.bf16 %v734_v26, %v733_v17  ;;  %v731_v47 = vmul.f32 %v3973_v39, %v580_v23  ;;  %v384_v17 = vld [vmem:[#allocation2 + $0x370] sm:$0xff] }
 0x102   : > { %2851 = vmatprep.subr.bf16.mxu0 %v844_v55  ;;  %2883 = vmatprep.subr.bf16.mxu1 %v852_v41  ;;  %v578_v44 = vmul.f32 %v3715_v53, %v338_v14  ;;  %v851_v54 = vpack.c.bf16 %v750_v8, %v749_v19  ;;  %v732_v20 = vmul.f32 %v3973_v39, %v581_v37  ;;  %v400_v19 = vld [vmem:[#allocation2 + $0x3f0] sm:$0xff]  ;;  %v383_v14 = vld [vmem:[#allocation2 + $0x368] sm:$0xff] }
 0x103   : > { %v747_v51 = vmul.f32 %v3973_v39, %v596_v63  ;;  %v579_v15 = vmul.f32 %v3713_v13, %v339_v25  ;;  %v748_v46 = vmul.f32 %v3973_v39, %v597_v38  ;;  %v594_v50 = vmul.f32 %v3715_v53, %v354_v3  ;;  %v382_v63 = vld [vmem:[#allocation2 + $0x360] sm:$0xff]  ;;  %v399_v3 = vld [vmem:[#allocation2 + $0x3e8] sm:$0xff] }
 0x104   : > { %2804 = vmatmul.mubr.bf16.gmra.mxu0 %v3989_v42  ;;  %2836 = vmatmul.mubr.bf16.gmra.mxu1 %v4552_v28  ;;  %v595_v45 = vmul.f32 %v3713_v13, %v355_v27  ;;  %v4016_v57 = vcombine.low %v4000_v2, %v4003_v58  ;;  %v4018_v22 = vcombine.low %v1443_v49, %v1446_v7  ;;  %v398_v7 = vld [vmem:[#allocation2 + $0x3e0] sm:$0xff] }
 0x105   : > { %2852 = vmatpush3.bf16.msra.mxu0 %v844_v55  ;;  %2884 = vmatpush3.bf16.msra.mxu1 %v852_v41  ;;  %v729_v33 = vmul.f32 %v3973_v39, %v578_v44  ;;  %v625_v26 = vmul.f32 %v3555_v32, %v385_v9  ;;  %v730_v23 = vmul.f32 %v3973_v39, %v579_v15 }
 0x106   : > { %4570 = vst [vmem:[#allocation14_spill] sm:$0xff] %v4016_v57  ;;  %2853 = vmatprep.subr.bf16.mxu0 %v843_v56  ;;  %2885 = vmatprep.subr.bf16.mxu1 %v851_v54  ;;  %v624_v8 = vmul.f32 %v4553_v29, %v384_v17  ;;  %v641_v37 = vmul.f32 %v3555_v32, %v401_v21  ;;  %v396_v17 = vld [vmem:[#allocation2 + $0x3d0] sm:$0xff]  ;;  %v397_v21 = vld [vmem:[#allocation2 + $0x3d8] sm:$0xff] }
 0x107   : > { %2807 = vmatprep.mubr.bf16.mxu0 %v3992_v36  ;;  %2839 = vmatprep.mubr.bf16.mxu1 %v3801_v1  ;;  %v842_v55 = vpack.c.bf16 %v732_v20, %v731_v47  ;;  %v850_v41 = vpack.c.bf16 %v748_v46, %v747_v51  ;;  %v745_v38 = vmul.f32 %v3973_v39, %v594_v50  ;;  %v380_v46 = vld [vmem:[#allocation2 + $0x350] sm:$0xff]  ;;  %v381_v50 = vld [vmem:[#allocation2 + $0x358] sm:$0xff] }
 0x108   : > { %v746_v25 = vmul.f32 %v3973_v39, %v595_v45  ;;  %v640_v49 = vmul.f32 %v4553_v29, %v400_v19  ;;  %v776_v27 = vmul.f32 %v3973_v39, %v625_v26  ;;  %v622_v44 = vmul.f32 %v3516_v4, %v382_v63 }
 0x109   : > { %2854 = vmatpush3.bf16.msra.mxu0 %v843_v56  ;;  %2886 = vmatpush3.bf16.msra.mxu1 %v851_v54  ;;  %v623_v15 = vmul.f32 %v3557_v34, %v383_v14  ;;  %v841_v47 = vpack.c.bf16 %v730_v23, %v729_v33  ;;  %v775_v20 = vmul.f32 %v3973_v39, %v624_v8  ;;  %v378_v23 = vld [vmem:[#allocation2 + $0x340] sm:$0xff]  ;;  %v379_v8 = vld [vmem:[#allocation2 + $0x348] sm:$0xff] }
 0x10a   : > { %2855 = vmatprep.subr.bf16.mxu0 %v842_v55  ;;  %2887 = vmatprep.subr.bf16.mxu1 %v850_v41  ;;  %v792_v51 = vmul.f32 %v3973_v39, %v641_v37  ;;  %v849_v56 = vpack.c.bf16 %v746_v25, %v745_v38  ;;  %v638_v54 = vmul.f32 %v3516_v4, %v398_v7 }
 0x10b   : > { %v639_v9 = vmul.f32 %v3557_v34, %v399_v3  ;;  %v791_v45 = vmul.f32 %v3973_v39, %v640_v49  ;;  %v864_v33 = vpack.c.bf16 %v776_v27, %v775_v20  ;;  %v773_v26 = vmul.f32 %v3973_v39, %v622_v44 }
 0x10c   : > { %2808 = vmatmul.mubr.bf16.gmra.mxu0 %v4018_v22  ;;  %2840 = vmatmul.mubr.bf16.gmra.mxu1 %v4016_v57  ;;  %v774_v19 = vmul.f32 %v3973_v39, %v623_v15  ;;  %v620_v63 = vmul.f32 %v3581_v18, %v380_v46  ;;  %v621_v14 = vmul.f32 %v3579_v10, %v381_v50  ;;  %v1712_v44 = vshrl.u32 %v4000_v2, 16  ;;  %v377_v50 = vld [vmem:[#allocation2 + $0x338] sm:$0xff] }
 0x10d   : > { %2856 = vmatpush3.bf16.msra.mxu0 %v842_v55  ;;  %2888 = vmatpush3.bf16.msra.mxu1 %v850_v41  ;;  %v872_v37 = vpack.c.bf16 %v792_v51, %v791_v45  ;;  %v394_v55 = vld [vmem:[#allocation2 + $0x3c0] sm:$0xff]  ;;  %v395_v41 = vld [vmem:[#allocation2 + $0x3c8] sm:$0xff]  ;;  %v789_v38 = vmul.f32 %v3973_v39, %v638_v54  ;;  %v790_v25 = vmul.f32 %v3973_v39, %v639_v9  ;;  %v376_v54 = vld [vmem:[#allocation2 + $0x330] sm:$0xff] }
 0x10e   : > { %2857 = vmatprep.subr.bf16.mxu0 %v841_v47  ;;  %2889 = vmatprep.subr.bf16.mxu1 %v849_v56  ;;  %v636_v49 = vmul.f32 %v3581_v18, %v396_v17  ;;  %v637_v7 = vmul.f32 %v3579_v10, %v397_v21  ;;  %v634_v3 = vmul.f32 %v3611_v6, %v394_v55  ;;  %v392_v45 = vld [vmem:[#allocation2 + $0x3b0] sm:$0xff]  ;;  %v393_v17 = vld [vmem:[#allocation2 + $0x3b8] sm:$0xff]  ;;  %v1725_v21 = vshrl.u32 %v4003_v58, 16 }
 0x10f   : > { %2859 = vmatprep.mubr.bf16.mxu0 %v3499_v62  ;;  %2891 = vmatprep.mubr.bf16.mxu1 %v3884_v59  ;;  %v618_v62 = vmul.f32 %v3611_v6, %v378_v23  ;;  %v619_v59 = vmul.f32 %v3609_v5, %v379_v8  ;;  %v635_v27 = vmul.f32 %v3609_v5, %v395_v41  ;;  %v374_v23 = vld [vmem:[#allocation2 + $0x320] sm:$0xff]  ;;  %v375_v8 = vld [vmem:[#allocation2 + $0x328] sm:$0xff] }
 0x110   : > { %v863_v15 = vpack.c.bf16 %v774_v19, %v773_v26  ;;  %v771_v20 = vmul.f32 %v3973_v39, %v620_v63  ;;  %v772_v51 = vmul.f32 %v3973_v39, %v621_v14  ;;  %v787_v9 = vmul.f32 %v3973_v39, %v636_v49 }
 0x111   : > { %2858 = vmatpush3.bf16.msra.mxu0 %v841_v47  ;;  %2890 = vmatpush3.bf16.msra.mxu1 %v849_v56  ;;  %v1715_v47 = vshll.u32 %v4000_v2, 16  ;;  %v871_v56 = vpack.c.bf16 %v790_v25, %v789_v38  ;;  %v788_v46 = vmul.f32 %v3973_v39, %v637_v7  ;;  %v769_v26 = vmul.f32 %v3973_v39, %v618_v62  ;;  %v4070_v38 = vld [vmem:[%s3407_s27 + $0x68] sm:$0x1] }
 0x112   : > { %2907 = vmatprep.subr.bf16.mxu0 %v864_v33  ;;  %2939 = vmatprep.subr.bf16.mxu1 %v872_v37  ;;  %v770_v19 = vmul.f32 %v3973_v39, %v619_v59  ;;  %v1721_v63 = vshll.u32 %v4003_v58, 16  ;;  %v785_v14 = vmul.f32 %v3973_v39, %v634_v3  ;;  %v786_v55 = vmul.f32 %v3973_v39, %v635_v27 }
 0x113   : > { %v616_v41 = vmul.f32 %v3637_v60, %v376_v54  ;;  %v632_v25 = vmul.f32 %v3637_v60, %v392_v45  ;;  %v633_v49 = vmul.f32 %v3635_v43, %v393_v17  ;;  %v1714_v7 = vrot.slane %v1712_v44, 4  ;;  %v390_v54 = vld [vmem:[#allocation2 + $0x3a0] sm:$0xff]  ;;  %v373_v17 = vld [vmem:[#allocation2 + $0x318] sm:$0xff] }
 0x114   : > { %2860 = vmatmul.mubr.bf16.vlgmr.msra.gmra.mxu0 %v3525_v11  ;;  %2892 = vmatmul.mubr.bf16.vlgmr.msra.gmra.mxu1 %v3887_v48  ;;  %v862_v62 = vpack.c.bf16 %v772_v51, %v771_v20  ;;  %v870_v59 = vpack.c.bf16 %v788_v46, %v787_v9  ;;  %v614_v3 = vmul.f32 %v3658_v16, %v374_v23  ;;  %v391_v48 = vld [vmem:[#allocation2 + $0x3a8] sm:$0xff]  ;;  %v1717_v57 = vrot.slane %v1715_v47, 5  ;;  %v372_v51 = vld [vmem:[#allocation2 + $0x310] sm:$0xff] }
 0x115   : > { %2908 = vmatpush3.bf16.msra.mxu0 %v864_v33  ;;  %2940 = vmatpush3.bf16.msra.mxu1 %v872_v37  ;;  %v4571_v33 = vld [vmem:[#allocation24_spill] sm:$0xff]  ;;  %v617_v37 = vmul.f32 %v3635_v43, %v377_v50  ;;  %v615_v27 = vmul.f32 %v3656_v24, %v375_v8  ;;  %v4079_v1 = vrot.slane %v1721_v63, 5  ;;  %v1731_v50 = vshll.u32 %v4070_v38, 16  ;;  %v4572_v23 = vld [vmem:[#allocation29_spill] sm:$0xff]  ;;  %v389_v8 = vld [vmem:[#allocation2 + $0x398] sm:$0xff] }
 0x116   : > { %2909 = vmatprep.subr.bf16.mxu0 %v863_v15  ;;  %2941 = vmatprep.subr.bf16.mxu1 %v871_v56  ;;  %v861_v45 = vpack.c.bf16 %v770_v19, %v769_v26  ;;  %v869_v44 = vpack.c.bf16 %v786_v55, %v785_v14  ;;  %v767_v20 = vmul.f32 %v3973_v39, %v616_v41  ;;  %v1855_v9 = vrot.slane %v4003_v58, 5 }
 0x117   : > { %2863 = vmatprep.mubr.bf16.mxu0 %v4571_v33  ;;  %2895 = vmatprep.mubr.bf16.mxu1 %v3929_v35  ;;  %v1727_v35 = vrot.slane %v1725_v21, 4  ;;  %v768_v46 = vmul.f32 %v3973_v39, %v617_v37  ;;  %v784_v47 = vmul.f32 %v3973_v39, %v633_v49  ;;  %v388_v21 = vld [vmem:[#allocation2 + $0x390] sm:$0xff]  ;;  %v765_v26 = vmul.f32 %v3973_v39, %v614_v3 }
 0x118   : > { %v766_v19 = vmul.f32 %v3973_v39, %v615_v27  ;;  %v631_v58 = vmul.f32 %v3656_v24, %v391_v48  ;;  %v612_v63 = vmul.f32 %v4544_v30, %v372_v51  ;;  %v1718_v14 = vor.u32 %v1717_v57, %v1714_v7  ;;  %v4573_v49 = vld [vmem:[#allocation34_spill] sm:$0xff]  ;;  %v371_v51 = vld [vmem:[#allocation2 + $0x308] sm:$0xff] }
 0x119   : > { %2910 = vmatpush3.bf16.msra.mxu0 %v863_v15  ;;  %2942 = vmatpush3.bf16.msra.mxu1 %v871_v56  ;;  %v783_v15 = vmul.f32 %v3973_v39, %v632_v25  ;;  %v630_v56 = vmul.f32 %v3658_v16, %v390_v54  ;;  %v1728_v55 = vor.u32 %v1727_v35, %v4079_v1  ;;  %v2558_v25 = vrot.slane %v4000_v2, 9  ;;  %v370_v54 = vld [vmem:[#allocation2 + $0x300] sm:$0xff] }
 0x11a   : > { %2911 = vmatprep.subr.bf16.mxu0 %v862_v62  ;;  %2943 = vmatprep.subr.bf16.mxu1 %v870_v59  ;;  %v613_v41 = vmul.f32 %v4545_v0, %v373_v17  ;;  %v628_v37 = vmul.f32 %v4544_v30, %v388_v21  ;;  %v629_v48 = vmul.f32 %v4545_v0, %v389_v8  ;;  %v1858_v57 = vrot.slane %v4070_v38, 5  ;;  %v386_v8 = vld [vmem:[#allocation2 + $0x380] sm:$0xff] }
 0x11b   : > { %v860_v7 = vpack.c.bf16 %v768_v46, %v767_v20  ;;  %v868_v35 = vpack.c.bf16 %v784_v47, %v783_v15  ;;  %v781_v3 = vmul.f32 %v3973_v39, %v630_v56  ;;  %v782_v27 = vmul.f32 %v3973_v39, %v631_v58  ;;  %v4574_v56 = vld [vmem:[#allocation36_spill] sm:$0xff] }
 0x11c   : > { %2864 = vmatmul.mubr.bf16.gmra.mxu0 %v4572_v23  ;;  %2896 = vmatmul.mubr.bf16.gmra.mxu1 %v3937_v31  ;;  %v859_v2 = vpack.c.bf16 %v766_v19, %v765_v26  ;;  %v763_v17 = vmul.f32 %v3973_v39, %v612_v63  ;;  %v1719_v21 = vrot.slane %v1718_v14, 4  ;;  %v764_v38 = vmul.f32 %v3973_v39, %v613_v41 }
 0x11d   : > { %2912 = vmatpush3.bf16.msra.mxu0 %v862_v62  ;;  %2944 = vmatpush3.bf16.msra.mxu1 %v870_v59  ;;  %v1733_v62 = vrot.slane %v1731_v50, 5  ;;  %v1857_v59 = vrot.slane %v1855_v9, 4  ;;  %v387_v50 = vld [vmem:[#allocation2 + $0x388] sm:$0xff]  ;;  %v779_v20 = vmul.f32 %v3973_v39, %v628_v37  ;;  %v1856_v46 = vsel %vm3422_vm5, %v2558_v25, %v1855_v9 }
 0x11e   : > { %2913 = vmatprep.subr.bf16.mxu0 %v861_v45  ;;  %2945 = vmatprep.subr.bf16.mxu1 %v869_v44  ;;  %v780_v15 = vmul.f32 %v3973_v39, %v629_v48  ;;  %v611_v47 = vmul.f32 %v3713_v13, %v371_v51  ;;  %v867_v26 = vpack.c.bf16 %v782_v27, %v781_v3  ;;  %v4576_v48 = vld [vmem:[#allocation22_spill] sm:$0xff]  ;;  %v414_v3 = vld [vmem:[#allocation2 + $0x460] sm:$0xff]  ;;  %v415_v27 = vld [vmem:[#allocation2 + $0x468] sm:$0xff] }
 0x11f   : > { %2867 = vmatprep.mubr.bf16.mxu0 %v4573_v49  ;;  %2899 = vmatprep.mubr.bf16.mxu1 %v3989_v42  ;;  %v1729_v42 = vrot.slane %v1728_v55, 4  ;;  %v626_v19 = vmul.f32 %v3715_v53, %v386_v8  ;;  %v627_v58 = vmul.f32 %v3713_v13, %v387_v50  ;;  %v1724_v63 = vsel %vm3414_vm2, %v1719_v21, %v4079_v1  ;;  %v417_v55 = vld [vmem:[#allocation2 + $0x478] sm:$0xff]  ;;  %v412_v50 = vld [vmem:[#allocation2 + $0x450] sm:$0xff] }
 0x120   : > { %v858_v41 = vpack.c.bf16 %v764_v38, %v763_v17  ;;  %v866_v25 = vpack.c.bf16 %v780_v15, %v779_v20  ;;  %v654_v17 = vmul.f32 %v3516_v4, %v414_v3  ;;  %v652_v4 = vmul.f32 %v3581_v18, %v412_v50  ;;  %v410_v15 = vld [vmem:[#allocation2 + $0x440] sm:$0xff] }
 0x121   : > { %2914 = vmatpush3.bf16.msra.mxu0 %v861_v45  ;;  %2946 = vmatpush3.bf16.msra.mxu1 %v869_v44  ;;  %v1859_v45 = vsel %vm3422_vm5, %v1857_v59, %v1858_v57  ;;  %v610_v44 = vmul.f32 %v3715_v53, %v370_v54  ;;  %v1734_v14 = vsel %vm3414_vm2, %v1729_v42, %v1733_v62 }
 0x122   : > { %2915 = vmatprep.subr.bf16.mxu0 %v860_v7  ;;  %2947 = vmatprep.subr.bf16.mxu1 %v868_v35  ;;  %v4123_v37 = vcombine.low %v1856_v46, %v1859_v45  ;;  %v762_v57 = vmul.f32 %v3973_v39, %v611_v47  ;;  %v4129_v1 = vcombine.low %v1724_v63, %v1734_v14  ;;  %v411_v45 = vld [vmem:[#allocation2 + $0x448] sm:$0xff]  ;;  %v409_v63 = vld [vmem:[#allocation2 + $0x438] sm:$0xff] }
 0x123   : > { %v761_v59 = vmul.f32 %v3973_v39, %v610_v44  ;;  %v777_v42 = vmul.f32 %v3973_v39, %v626_v19  ;;  %v778_v62 = vmul.f32 %v3973_v39, %v627_v58  ;;  %v4148_v44 = vld [vmem:[%s3407_s27 + $0x6c] sm:$0xf]  ;;  %v651_v19 = vmul.f32 %v3609_v5, %v411_v45  ;;  %v408_v58 = vld [vmem:[#allocation2 + $0x430] sm:$0xff] }
 0x124   : > { %2868 = vmatmul.mubr.bf16.gmra.mxu0 %v4574_v56  ;;  %2900 = vmatmul.mubr.bf16.gmra.mxu1 %v3992_v36  ;;  %v2097_v14 = vshrl.u32 %v4148_v44, 16  ;;  %v648_v5 = vmul.f32 %v3637_v60, %v408_v58 }
 0x125   : > { %2916 = vmatpush3.bf16.msra.mxu0 %v860_v7  ;;  %2948 = vmatpush3.bf16.msra.mxu1 %v868_v35  ;;  %v416_v7 = vld [vmem:[#allocation2 + $0x470] sm:$0xff]  ;;  %v657_v35 = vmul.f32 %v3555_v32, %v417_v55  ;;  %v857_v51 = vpack.c.bf16 %v762_v57, %v761_v59  ;;  %v865_v21 = vpack.c.bf16 %v778_v62, %v777_v42  ;;  %v2100_v55 = vshll.u32 %v4148_v44, 16  ;;  %v407_v42 = vld [vmem:[#allocation2 + $0x428] sm:$0xff] }
 0x126   : > { %2917 = vmatprep.subr.bf16.mxu0 %v859_v2  ;;  %2949 = vmatprep.subr.bf16.mxu1 %v867_v26  ;;  %v656_v54 = vmul.f32 %v4553_v29, %v416_v7  ;;  %v655_v32 = vmul.f32 %v3557_v34, %v415_v27  ;;  %v805_v34 = vmul.f32 %v3973_v39, %v654_v17  ;;  %v406_v7 = vld [vmem:[#allocation2 + $0x420] sm:$0xff]  ;;  %v2099_v62 = vrot.slane %v2097_v14, 4  ;;  %v404_v17 = vld [vmem:[#allocation2 + $0x410] sm:$0xff] }
 0x127   : > { %2871 = vmatprep.mubr.bf16.mxu0 %v4576_v48  ;;  %2903 = vmatprep.mubr.bf16.mxu1 %v4018_v22  ;;  %v808_v8 = vmul.f32 %v3973_v39, %v657_v35  ;;  %v802_v59 = vmul.f32 %v3973_v39, %v651_v19  ;;  %v649_v57 = vmul.f32 %v3635_v43, %v409_v63  ;;  %v2102_v35 = vrot.slane %v2100_v55, 5  ;;  %v4581_v63 = vld [vmem:[#allocation32_spill] sm:$0xff]  ;;  %v4582_v55 = vld [vmem:[#allocation11_spill] sm:$0xff] }
 0x128   : > { %v807_v29 = vmul.f32 %v3973_v39, %v656_v54  ;;  %v806_v46 = vmul.f32 %v3973_v39, %v655_v32  ;;  %v646_v60 = vmul.f32 %v3658_v16, %v406_v7  ;;  %v647_v27 = vmul.f32 %v3656_v24, %v407_v42 }
 0x129   : > { %2918 = vmatpush3.bf16.msra.mxu0 %v859_v2  ;;  %2950 = vmatpush3.bf16.msra.mxu1 %v867_v26  ;;  %v413_v2 = vld [vmem:[#allocation2 + $0x458] sm:$0xff]  ;;  %v650_v26 = vmul.f32 %v3611_v6, %v410_v15  ;;  %v799_v54 = vmul.f32 %v3973_v39, %v648_v5 }
 0x12a   : > { %2919 = vmatprep.subr.bf16.mxu0 %v858_v41  ;;  %2951 = vmatprep.subr.bf16.mxu1 %v866_v25  ;;  %v653_v38 = vmul.f32 %v3579_v10, %v413_v2  ;;  %v880_v20 = vpack.c.bf16 %v808_v8, %v807_v29  ;;  %v4577_v10 = vld [vmem:[#allocation21_spill] sm:$0xff]  ;;  %v879_v47 = vpack.c.bf16 %v806_v46, %v805_v34  ;;  %v4578_v46 = vld [vmem:[#allocation35_spill] sm:$0xff] }
 0x12b   : > { %v2103_v8 = vor.u32 %v2102_v35, %v2099_v62  ;;  %v797_v16 = vmul.f32 %v3973_v39, %v646_v60  ;;  %v798_v24 = vmul.f32 %v3973_v39, %v647_v27  ;;  %v403_v34 = vld [vmem:[#allocation2 + $0x408] sm:$0xff] }
 0x12c   : > { %2872 = vmatmul.mubr.bf16.gmra.mxu0 %v4129_v1  ;;  %2904 = vmatmul.mubr.bf16.gmra.mxu1 %v4123_v37  ;;  %v804_v18 = vmul.f32 %v3973_v39, %v653_v38  ;;  %v643_v15 = vmul.f32 %v3713_v13, %v403_v34 }
 0x12d   : > { %2920 = vmatpush3.bf16.msra.mxu0 %v858_v41  ;;  %2952 = vmatpush3.bf16.msra.mxu1 %v866_v25  ;;  %v2104_v29 = vrot.slane %v2103_v8, 4 }
 0x12e   : > { %2921 = vmatprep.subr.bf16.mxu0 %v857_v51  ;;  %2953 = vmatprep.subr.bf16.mxu1 %v865_v21 }
 0x12f   : > { %2923 = vmatprep.mubr.bf16.mxu0 %v3529_v12  ;;  %2955 = vmatprep.mubr.bf16.mxu1 %v3525_v11  ;;  %v4151_v12 = vld [vmem:[%s3407_s27 + $0x70] sm:$0xf]  ;;  %v803_v11 = vmul.f32 %v3973_v39, %v652_v4 }
 0x130   : > { %v2110_v41 = vshrl.u32 %v4151_v12, 16  ;;  %v2106_v25 = vshll.u32 %v4151_v12, 16 }
 0x131   : > { %2922 = vmatpush3.bf16.msra.mxu0 %v857_v51  ;;  %2954 = vmatpush3.bf16.msra.mxu1 %v865_v21  ;;  %v878_v6 = vpack.c.bf16 %v804_v18, %v803_v11  ;;  %v800_v51 = vmul.f32 %v3973_v39, %v649_v57  ;;  %v405_v21 = vld [vmem:[#allocation2 + $0x418] sm:$0xff]  ;;  %v4579_v18 = vld [vmem:[#allocation14_spill] sm:$0xff] }
 0x132   : > { %2971 = vmatprep.subr.bf16.mxu0 %v880_v20  ;;  %3003 = vmatprep.subr.bf16.mxu1 %v880_v20  ;;  %v2108_v3 = vrot.slane %v2106_v25, 5  ;;  %v645_v2 = vmul.f32 %v4545_v0, %v405_v21 }
 0x134   : > { %2924 = vmatmul.mubr.bf16.vlgmr.msra.gmra.mxu0 %v4577_v10  ;;  %2956 = vmatmul.mubr.bf16.vlgmr.msra.gmra.mxu1 %v4571_v33  ;;  %v801_v33 = vmul.f32 %v3973_v39, %v650_v26  ;;  %v2109_v45 = vsel %vm3414_vm2, %v2104_v29, %v2108_v3  ;;  %v4580_v26 = vld [vmem:[#allocation33_spill] sm:$0xff] }
 0x135   : > { %2972 = vmatpush3.bf16.msra.mxu0 %v880_v20  ;;  %3011 = vmatpush3.bf16.msra.mxu1 %v880_v20  ;;  %v402_v20 = vld [vmem:[#allocation2 + $0x400] sm:$0xff] }
 0x136   : > { %2973 = vmatprep.subr.bf16.mxu0 %v879_v47  ;;  %3004 = vmatprep.subr.bf16.mxu1 %v879_v47  ;;  %v877_v43 = vpack.c.bf16 %v802_v59, %v801_v33  ;;  %v642_v0 = vmul.f32 %v3715_v53, %v402_v20 }
 0x137   : > { %2927 = vmatprep.mubr.bf16.mxu0 %v4543_v61  ;;  %2959 = vmatprep.mubr.bf16.mxu1 %v4572_v23  ;;  %v2112_v61 = vrot.slane %v2110_v41, 4  ;;  %v4170_v23 = vld [vmem:[%s3407_s27 + $0x74] sm:$0x1]  ;;  %s4404_s27 = scalar_lea.sflag [#allocation4], %s253_s28 }
 0x138   : > { %v2116_v50 = vshll.u32 %v4170_v23, 16  ;;  %v793_v13 = vmul.f32 %v3973_v39, %v642_v0  ;;  %v2243_v58 = vrot.slane %v4170_v23, 5 }
 0x139   : > { %2974 = vmatpush3.bf16.msra.mxu0 %v879_v47  ;;  %3012 = vmatpush3.bf16.msra.mxu1 %v879_v47  ;;  %v2113_v32 = vor.u32 %v2112_v61, %v2108_v3  ;;  %v794_v47 = vmul.f32 %v3973_v39, %v643_v15 }
 0x13a   : > { %2975 = vmatprep.subr.bf16.mxu0 %v878_v6  ;;  %3005 = vmatprep.subr.bf16.mxu1 %v878_v6  ;;  %v2118_v38 = vrot.slane %v2116_v50, 5 }
 0x13b   : > { %v2114_v4 = vrot.slane %v2113_v32, 4  ;;  %v873_v9 = vpack.c.bf16 %v794_v47, %v793_v13 }
 0x13c   : > { %2928 = vmatmul.mubr.bf16.gmra.mxu0 %v4548_v52  ;;  %2960 = vmatmul.mubr.bf16.gmra.mxu1 %v4573_v49  ;;  %v644_v52 = vmul.f32 %v4544_v30, %v404_v17  ;;  %v876_v49 = vpack.c.bf16 %v800_v51, %v799_v54  ;;  %v796_v30 = vmul.f32 %v3973_v39, %v645_v2 }
 0x13d   : > { %2976 = vmatpush3.bf16.msra.mxu0 %v878_v6  ;;  %3013 = vmatpush3.bf16.msra.mxu1 %v878_v6  ;;  %v2119_v11 = vsel %vm3414_vm2, %v2114_v4, %v2118_v38 }
 0x13e   : > { %2977 = vmatprep.subr.bf16.mxu0 %v877_v43  ;;  %3006 = vmatprep.subr.bf16.mxu1 %v877_v43  ;;  %v2561_v10 = vcombine.low %v2109_v45, %v2119_v11 }
 0x13f   : > { %2931 = vmatprep.mubr.bf16.mxu0 %v4552_v28  ;;  %2963 = vmatprep.mubr.bf16.mxu1 %v4574_v56  ;;  %v875_v28 = vpack.c.bf16 %v798_v24, %v797_v16  ;;  %v795_v56 = vmul.f32 %v3973_v39, %v644_v52  ;;  %v2562_v39 = vrot.slane %v4148_v44, 9 }
 0x141   : > { %2978 = vmatpush3.bf16.msra.mxu0 %v877_v43  ;;  %3014 = vmatpush3.bf16.msra.mxu1 %v877_v43  ;;  %v874_v53 = vpack.c.bf16 %v796_v30, %v795_v56 }
 0x142   : > { %2979 = vmatprep.subr.bf16.mxu0 %v876_v49  ;;  %3007 = vmatprep.subr.bf16.mxu1 %v876_v49 }
 0x144   : > { %2932 = vmatmul.mubr.bf16.gmra.mxu0 %v4578_v46  ;;  %2964 = vmatmul.mubr.bf16.gmra.mxu1 %v4576_v48  ;;  %v2560_v48 = vcombine.low %v4148_v44, %v4151_v12 }
 0x145   : > { %2980 = vmatpush3.bf16.msra.mxu0 %v876_v49  ;;  %3015 = vmatpush3.bf16.msra.mxu1 %v876_v49 }
 0x146   : > { %2981 = vmatprep.subr.bf16.mxu0 %v875_v28  ;;  %3008 = vmatprep.subr.bf16.mxu1 %v875_v28 }
 0x147   : > { %2935 = vmatprep.mubr.bf16.mxu0 %v4579_v18  ;;  %2967 = vmatprep.mubr.bf16.mxu1 %v4129_v1  ;;  %v2240_v1 = vrot.slane %v4151_v12, 5 }
 0x149   : > { %2982 = vmatpush3.bf16.msra.mxu0 %v875_v28  ;;  %3016 = vmatpush3.bf16.msra.mxu1 %v875_v28  ;;  %v2242_v19 = vrot.slane %v2240_v1, 4  ;;  %v2241_v12 = vsel %vm3422_vm5, %v2562_v39, %v2240_v1 }
 0x14a   : > { %2983 = vmatprep.subr.bf16.mxu0 %v874_v53  ;;  %3009 = vmatprep.subr.bf16.mxu1 %v874_v53 }
 0x14c   : > { %2936 = vmatmul.mubr.bf16.gmra.mxu0 %v2560_v48  ;;  %2968 = vmatmul.mubr.bf16.gmra.mxu1 %v2561_v10 }
 0x14d   : > { %2984 = vmatpush3.bf16.msra.mxu0 %v874_v53  ;;  %3017 = vmatpush3.bf16.msra.mxu1 %v874_v53 }
 0x14e   : > { %2985 = vmatprep.subr.bf16.mxu0 %v873_v9  ;;  %3010 = vmatprep.subr.bf16.mxu1 %v873_v9 }
 0x14f   : > { %2987 = vmatprep.mubr.bf16.mxu0 %v4580_v26  ;;  %2995 = vmatprep.mubr.bf16.mxu1 %v3992_v36  ;;  %v2244_v36 = vsel %vm3422_vm5, %v2242_v19, %v2243_v58 }
 0x150   : > { %v2563_v14 = vcombine.low %v2241_v12, %v2244_v36 }
 0x151   : > { %2986 = vmatpush3.bf16.msra.mxu0 %v873_v9  ;;  %3018 = vmatpush3.bf16.msra.mxu1 %v873_v9 }
 0x154   : > { %2988 = vmatmul.mubr.bf16.vlgmr.msra.gmra.mxu0 %v4581_v63  ;;  %2996 = vmatmul.mubr.bf16.vlgmr.msra.gmra.mxu1 %v4018_v22 }
 0x155   : > { %2991 = vmatprep.mubr.bf16.mxu0 %v3937_v31  ;;  %2999 = vmatprep.mubr.bf16.mxu1 %v4123_v37 }
 0x15c   : > { %2992 = vmatmul.mubr.bf16.gmra.mxu0 %v4582_v55  ;;  %3000 = vmatmul.mubr.bf16.gmra.mxu1 %v2563_v14 }
 0x194   : > { %v2733_v44 = vpop.f32.mrf.mxu0  ;;  %v2765_v41 = vpop.f32.mrf.mxu1 }
 0x195   : > { %v1326_v25 = vadd.f32 %v2765_v41, %v2733_v44 }
 0x196   : > { %v1172_v5 = vpop.f32.mrf.mxu0  ;;  %v1317_v6 = vpop.f32.mrf.mxu1 }
 0x197   : > { %v1318_v22 = vadd.f32 %v1317_v6, %v1172_v5 }
 0x198   : > { %v2734_v33 = vpop.f32.mrf.mxu0  ;;  %v2766_v31 = vpop.f32.mrf.mxu1 }
 0x199   : > { %v1329_v59 = vadd.f32 %v2766_v31, %v2734_v33 }
 0x19a   : > { %v1175_v37 = vpop.f32.mrf.mxu0  ;;  %v1320_v57 = vpop.f32.mrf.mxu1 }
 0x19b   : > { %v1321_v7 = vadd.f32 %v1320_v57, %v1175_v37 }
 0x19c   : > { %v2737_v42 = vpop.f32.mrf.mxu0  ;;  %v2769_v62 = vpop.f32.mrf.mxu1 }
 0x19d   : > { %v1342_v40 = vadd.f32 %v2769_v62, %v2737_v42 }
 0x19e   : > { %v1188_v35 = vpop.f32.mrf.mxu0  ;;  %v1333_v3 = vpop.f32.mrf.mxu1 }
 0x19f   : > { %v1334_v61 = vadd.f32 %v1333_v3, %v1188_v35 }
 0x1a0   : > { %v2738_v23 = vpop.f32.mrf.mxu0  ;;  %v2770_v60 = vpop.f32.mrf.mxu1 }
 0x1a1   : > { %v1345_v27 = vadd.f32 %v2770_v60, %v2738_v23 }
 0x1a2   : > { %v1191_v43 = vpop.f32.mrf.mxu0  ;;  %v1336_v54 = vpop.f32.mrf.mxu1 }
 0x1a3   : > { %v1337_v51 = vadd.f32 %v1336_v54, %v1191_v43 }
 0x1a4   : > { %v2741_v17 = vpop.f32.mrf.mxu0  ;;  %v2773_v21 = vpop.f32.mrf.mxu1 }
 0x1a5   : > { %v1358_v8 = vadd.f32 %v2773_v21, %v2741_v17 }
 0x1a6   : > { %v1204_v32 = vpop.f32.mrf.mxu0  ;;  %v1349_v50 = vpop.f32.mrf.mxu1 }
 0x1a7   : > { %v1350_v16 = vadd.f32 %v1349_v50, %v1204_v32 }
 0x1a8   : > { %v2742_v24 = vpop.f32.mrf.mxu0  ;;  %v2774_v52 = vpop.f32.mrf.mxu1 }
 0x1a9   : > { %v1361_v49 = vadd.f32 %v2774_v52, %v2742_v24 }
 0x1aa   : > { %v1207_v2 = vpop.f32.mrf.mxu0  ;;  %v1352_v29 = vpop.f32.mrf.mxu1 }
 0x1ab   : > { %v1353_v4 = vadd.f32 %v1352_v29, %v1207_v2 }
 0x1ac   : > { %v2745_v38 = vpop.f32.mrf.mxu0  ;;  %v2777_v20 = vpop.f32.mrf.mxu1 }
 0x1ad   : > { %v1374_v34 = vadd.f32 %v2777_v20, %v2745_v38 }
 0x1ae   : > { %v1220_v28 = vpop.f32.mrf.mxu0  ;;  %v1365_v56 = vpop.f32.mrf.mxu1 }
 0x1af   : > { %v1366_v46 = vadd.f32 %v1365_v56, %v1220_v28 }
 0x1b0   : > { %v2746_v30 = vpop.f32.mrf.mxu0  ;;  %v2778_v0 = vpop.f32.mrf.mxu1 }
 0x1b1   : > { %v1377_v15 = vadd.f32 %v2778_v0, %v2746_v30 }
 0x1b2   : > { %v1223_v45 = vpop.f32.mrf.mxu0  ;;  %v1368_v11 = vpop.f32.mrf.mxu1 }
 0x1b3   : > { %v4215_v18 = vadd.f32 %v1368_v11, %v1223_v45 }
 0x1b4   : > { %v2797_v48 = vpop.f32.mrf.mxu0  ;;  %v2829_v53 = vpop.f32.mrf.mxu1 }
 0x1b5   : > { %v1578_v10 = vadd.f32 %v2797_v48, %v1326_v25 }
 0x1b6   : > { %v1513_v13 = vpop.f32.mrf.mxu0  ;;  %v1632_v47 = vpop.f32.mrf.mxu1 }
 0x1b7   : > { %v4217_v9 = vadd.f32 %v2829_v53, %v1578_v10  ;;  %v1576_v1 = vadd.f32 %v1513_v13, %v1318_v22 }
 0x1b8   : > { %v2798_v26 = vpop.f32.mrf.mxu0  ;;  %v2830_v39 = vpop.f32.mrf.mxu1 }
 0x1b9   : > { %v4219_v19 = vadd.f32 %v1632_v47, %v1576_v1  ;;  %v1579_v58 = vadd.f32 %v2798_v26, %v1329_v59 }
 0x1ba   : > { %v1516_v63 = vpop.f32.mrf.mxu0  ;;  %v1635_v12 = vpop.f32.mrf.mxu1 }
 0x1bb   : > { %v4221_v36 = vadd.f32 %v2830_v39, %v1579_v58  ;;  %v1577_v14 = vadd.f32 %v1516_v63, %v1321_v7 }
 0x1bc   : > { %v2801_v55 = vpop.f32.mrf.mxu0  ;;  %v2833_v44 = vpop.f32.mrf.mxu1 }
 0x1bd   : > { %v4223_v41 = vadd.f32 %v1635_v12, %v1577_v14  ;;  %v1582_v25 = vadd.f32 %v2801_v55, %v1342_v40 }
 0x1be   : > { %v1529_v5 = vpop.f32.mrf.mxu0  ;;  %v1648_v6 = vpop.f32.mrf.mxu1 }
 0x1bf   : > { %v4225_v33 = vadd.f32 %v2833_v44, %v1582_v25  ;;  %v1580_v22 = vadd.f32 %v1529_v5, %v1334_v61 }
 0x1c0   : > { %v2802_v31 = vpop.f32.mrf.mxu0  ;;  %v2834_v37 = vpop.f32.mrf.mxu1 }
 0x1c1   : > { %v4227_v57 = vadd.f32 %v1648_v6, %v1580_v22  ;;  %v1583_v59 = vadd.f32 %v2802_v31, %v1345_v27 }
 0x1c2   : > { %v1532_v42 = vpop.f32.mrf.mxu0  ;;  %v1651_v62 = vpop.f32.mrf.mxu1 }
 0x1c3   : > { %v4229_v35 = vadd.f32 %v2834_v37, %v1583_v59  ;;  %v1581_v7 = vadd.f32 %v1532_v42, %v1337_v51 }
 0x1c4   : > { %v2805_v3 = vpop.f32.mrf.mxu0  ;;  %v2837_v23 = vpop.f32.mrf.mxu1 }
 0x1c5   : > { %v4231_v60 = vadd.f32 %v1651_v62, %v1581_v7  ;;  %v1586_v40 = vadd.f32 %v2805_v3, %v1358_v8 }
 0x1c6   : > { %v1545_v43 = vpop.f32.mrf.mxu0  ;;  %v1664_v54 = vpop.f32.mrf.mxu1 }
 0x1c7   : > { %v4233_v17 = vadd.f32 %v2837_v23, %v1586_v40  ;;  %v1584_v61 = vadd.f32 %v1545_v43, %v1350_v16 }
 0x1c8   : > { %v2806_v21 = vpop.f32.mrf.mxu0  ;;  %v2838_v32 = vpop.f32.mrf.mxu1 }
 0x1c9   : > { %v4235_v50 = vadd.f32 %v1664_v54, %v1584_v61  ;;  %v1587_v27 = vadd.f32 %v2806_v21, %v1361_v49 }
 0x1ca   : > { %v1548_v24 = vpop.f32.mrf.mxu0  ;;  %v1667_v52 = vpop.f32.mrf.mxu1 }
 0x1cb   : > { %v4237_v2 = vadd.f32 %v2838_v32, %v1587_v27  ;;  %v1585_v51 = vadd.f32 %v1548_v24, %v1353_v4 }
 0x1cc   : > { %v2809_v29 = vpop.f32.mrf.mxu0  ;;  %v2841_v38 = vpop.f32.mrf.mxu1 }
 0x1cd   : > { %v4239_v20 = vadd.f32 %v1667_v52, %v1585_v51  ;;  %v1590_v8 = vadd.f32 %v2809_v29, %v1374_v34 }
 0x1ce   : > { %v1561_v28 = vpop.f32.mrf.mxu0  ;;  %v1680_v56 = vpop.f32.mrf.mxu1 }
 0x1cf   : > { %v4241_v30 = vadd.f32 %v2841_v38, %v1590_v8  ;;  %v1588_v16 = vadd.f32 %v1561_v28, %v1366_v46 }
 0x1d0   : > { %v2810_v0 = vpop.f32.mrf.mxu0  ;;  %v2842_v45 = vpop.f32.mrf.mxu1 }
 0x1d1   : > { %v4243_v11 = vadd.f32 %v1680_v56, %v1588_v16  ;;  %v1591_v49 = vadd.f32 %v2810_v0, %v1377_v15 }
 0x1d2   : > { %v1564_v48 = vpop.f32.mrf.mxu0  ;;  %v1683_v53 = vpop.f32.mrf.mxu1 }
 0x1d3   : > { %v4245_v10 = vadd.f32 %v2842_v45, %v1591_v49  ;;  %v1589_v4 = vadd.f32 %v1564_v48, %v4215_v18 }
 0x1d4   : > { %v2861_v13 = vpop.f32.mrf.mxu0  ;;  %v2893_v47 = vpop.f32.mrf.mxu1 }
 0x1d5   : > { %v4248_v1 = vadd.f32 %v1683_v53, %v1589_v4 }
 0x1d6   : > { %v1773_v34 = vpop.f32.mrf.mxu0  ;;  %v4250_v26 = vpop.f32.mrf.mxu1 }
 0x1d7   : > { %4583 = vst [vmem:[#allocation26_spill] sm:$0xff] %v4248_v1 }
 0x1d8   : > { %v2862_v39 = vpop.f32.mrf.mxu0  ;;  %v4252_v46 = vpop.f32.mrf.mxu1 }
 0x1da   : > { %v1776_v58 = vpop.f32.mrf.mxu0  ;;  %v4254_v63 = vpop.f32.mrf.mxu1 }
 0x1dc   : > { %v2865_v15 = vpop.f32.mrf.mxu0  ;;  %v4256_v12 = vpop.f32.mrf.mxu1 }
 0x1de   : > { %v1789_v14 = vpop.f32.mrf.mxu0  ;;  %v4258_v55 = vpop.f32.mrf.mxu1 }
 0x1e0   : > { %v4260_v18 = vpop.f32.mrf.mxu0  ;;  %v4262_v44 = vpop.f32.mrf.mxu1 }
 0x1e1   : > { %4584 = vst [vmem:[#allocation12_spill] sm:$0xff] %v4262_v44  ;;  %v1838_v44 = vadd.f32 %v2861_v13, %v4217_v9  ;;  %v1842_v9 = vadd.f32 %v2865_v15, %v4225_v33 }
 0x1e2   : > { %v4264_v25 = vpop.f32.mrf.mxu0  ;;  %v4266_v5 = vpop.f32.mrf.mxu1 }
 0x1e3   : > { %4585 = vst [vmem:[#allocation13_spill] sm:$0xff] %v4266_v5 }
 0x1e4   : > { %v2869_v6 = vpop.f32.mrf.mxu0  ;;  %v2901_v22 = vpop.f32.mrf.mxu1 }
 0x1e6   : > { %v1805_v31 = vpop.f32.mrf.mxu0  ;;  %v1930_v37 = vpop.f32.mrf.mxu1 }
 0x1e8   : > { %v2870_v59 = vpop.f32.mrf.mxu0  ;;  %v4268_v42 = vpop.f32.mrf.mxu1 }
 0x1ea   : > { %v1808_v62 = vpop.f32.mrf.mxu0  ;;  %v4270_v7 = vpop.f32.mrf.mxu1 }
 0x1ec   : > { %v2873_v3 = vpop.f32.mrf.mxu0  ;;  %v4272_v23 = vpop.f32.mrf.mxu1 }
 0x1ee   : > { %v4274_v40 = vpop.f32.mrf.mxu0  ;;  %v4276_v43 = vpop.f32.mrf.mxu1 }
 0x1ef   : > { %4586 = vst [vmem:[#allocation31_spill] sm:$0xff] %v4276_v43 }
 0x1f0   : > { %v4278_v54 = vpop.f32.mrf.mxu0  ;;  %v4280_v61 = vpop.f32.mrf.mxu1 }
 0x1f1   : > { %4587 = vst [vmem:[#allocation19_spill] sm:$0xff] %v4280_v61 }
 0x1f2   : > { %v4282_v21 = vpop.f32.mrf.mxu0  ;;  %v4284_v32 = vpop.f32.mrf.mxu1 }
 0x1f3   : > { %4588 = vst [vmem:[#allocation15_spill] sm:$0xff] %v4282_v21  ;;  %4589 = vst [vmem:[#allocation17_spill] sm:$0xff] %v4284_v32  ;;  %v1837_v21 = vadd.f32 %v1776_v58, %v4223_v41  ;;  %v1845_v41 = vadd.f32 %v1808_v62, %v4239_v20  ;;  %v1843_v20 = vadd.f32 %v4260_v18, %v4229_v35 }
 0x1f4   : > { %v2925_v27 = vpop.f32.mrf.mxu0  ;;  %v2957_v24 = vpop.f32.mrf.mxu1  ;;  %v1851_v35 = vadd.f32 %v4278_v54, %v4245_v10 }
 0x1f5   : > { %v1962_v33 = vadd.f32 %v4254_v63, %v1837_v21 }
 0x1f6   : > { %v2017_v52 = vpop.f32.mrf.mxu0  ;;  %v4286_v51 = vpop.f32.mrf.mxu1 }
 0x1f8   : > { %v2926_v29 = vpop.f32.mrf.mxu0  ;;  %v4288_v38 = vpop.f32.mrf.mxu1 }
 0x1f9   : > { %4590 = vst [vmem:[#allocation16_spill] sm:$0xff] %v4288_v38 }
 0x1fa   : > { %v4290_v8 = vpop.f32.mrf.mxu0  ;;  %v4292_v28 = vpop.f32.mrf.mxu1 }
 0x1fb   : > { %4591 = vst [vmem:[#allocation18_spill] sm:$0xff] %v4292_v28 }
 0x1fc   : > { %v4294_v56 = vpop.f32.mrf.mxu0  ;;  %v4296_v16 = vpop.f32.mrf.mxu1 }
 0x1fd   : > { %4592 = vst [vmem:[#allocation9_spill] sm:$0xff] %v4294_v56  ;;  %4593 = vst [vmem:[#allocation10_spill] sm:$0xff] %v4296_v16 }
 0x1fe   : > { %v4298_v0 = vpop.f32.mrf.mxu0  ;;  %v4300_v45 = vpop.f32.mrf.mxu1 }
 0x1ff   : > { %4594 = vst [vmem:[#allocation20_spill] sm:$0xff] %v4298_v0  ;;  %4595 = vst [vmem:[#allocation23_spill] sm:$0xff] %v4300_v45  ;;  %v1846_v0 = vadd.f32 %v2869_v6, %v4233_v17  ;;  %v1836_v45 = vadd.f32 %v1773_v34, %v4219_v19  ;;  %v1840_v17 = vadd.f32 %v1789_v14, %v4227_v57 }
 0x200   : > { %v4302_v49 = vpop.f32.mrf.mxu0  ;;  %v4304_v48 = vpop.f32.mrf.mxu1  ;;  %v1847_v19 = vadd.f32 %v2870_v59, %v4237_v2  ;;  %v1850_v57 = vadd.f32 %v2873_v3, %v4241_v30  ;;  %v1848_v30 = vadd.f32 %v4274_v40, %v4243_v11 }
 0x201   : > { %4596 = vst [vmem:[#allocation25_spill] sm:$0xff] %v4302_v49  ;;  %4597 = vst [vmem:[#allocation28_spill] sm:$0xff] %v4304_v48  ;;  %v1844_v48 = vadd.f32 %v1805_v31, %v4235_v50  ;;  %v1971_v13 = vadd.f32 %v2901_v22, %v1846_v0  ;;  %v1961_v34 = vadd.f32 %v4250_v26, %v1836_v45  ;;  %v4606_v45 = vld [vmem:[#allocation12_spill] sm:$0xff] }
 0x202   : > { %v4306_v53 = vpop.f32.mrf.mxu0  ;;  %v4308_v4 = vpop.f32.mrf.mxu1  ;;  %v1967_v26 = vadd.f32 %v4256_v12, %v1842_v9  ;;  %v1965_v14 = vadd.f32 %v4258_v55, %v1840_v17  ;;  %v1970_v12 = vadd.f32 %v4270_v7, %v1845_v41  ;;  %v1975_v62 = vadd.f32 %v4272_v23, %v1850_v57 }
 0x203   : > { %4598 = vst [vmem:[#allocation27_spill] sm:$0xff] %v4306_v53  ;;  %4599 = vst [vmem:[#allocation30_spill] sm:$0xff] %v4308_v4  ;;  %v1963_v53 = vadd.f32 %v2893_v47, %v1838_v44  ;;  %v1839_v4 = vadd.f32 %v2862_v39, %v4221_v36  ;;  %v1969_v36 = vadd.f32 %v1930_v37, %v1844_v48  ;;  %v4607_v48 = vld [vmem:[#allocation19_spill] sm:$0xff] }
 0x204   : > { %v2933_v32 = vpop.f32.mrf.mxu0  ;;  %v2965_v5 = vpop.f32.mrf.mxu1  ;;  %v2080_v58 = vadd.f32 %v2017_v52, %v1961_v34  ;;  %v1972_v44 = vadd.f32 %v4268_v42, %v1847_v19  ;;  %v4604_v52 = vld [vmem:[#allocation16_spill] sm:$0xff] }
 0x205   : > { %v2082_v50 = vadd.f32 %v2925_v27, %v1963_v53  ;;  %v2090_v47 = vadd.f32 %v2933_v32, %v1971_v13  ;;  %v1964_v39 = vadd.f32 %v4252_v46, %v1839_v4  ;;  %v1841_v46 = vadd.f32 %v4264_v25, %v4231_v60  ;;  %v4601_v32 = vld [vmem:[#allocation31_spill] sm:$0xff]  ;;  %v4602_v27 = vld [vmem:[#allocation26_spill] sm:$0xff] }
 0x206   : > { %v2049_v61 = vpop.f32.mrf.mxu0  ;;  %v2190_v28 = vpop.f32.mrf.mxu1  ;;  %v2221_v18 = vadd.f32 %v4286_v51, %v2080_v58  ;;  %v2081_v60 = vadd.f32 %v4290_v8, %v1962_v33  ;;  %v1973_v7 = vadd.f32 %v4601_v32, %v1848_v30  ;;  %v1976_v53 = vadd.f32 %v4607_v48, %v1851_v35  ;;  %v4608_v4 = vld [vmem:[#allocation18_spill] sm:$0xff]  ;;  %v4612_v33 = vld [vmem:[#allocation17_spill] sm:$0xff] }
 0x207   : > { %v2088_v22 = vadd.f32 %v2049_v61, %v1969_v36  ;;  %v2083_v63 = vadd.f32 %v2926_v29, %v1964_v39  ;;  %v2223_v55 = vadd.f32 %v2957_v24, %v2082_v50  ;;  %v2231_v59 = vadd.f32 %v2965_v5, %v2090_v47  ;;  %v4603_v5 = vld [vmem:[#allocation15_spill] sm:$0xff]  ;;  %v4605_v29 = vld [vmem:[#allocation9_spill] sm:$0xff]  ;;  %v4613_v58 = vld [vmem:[#allocation10_spill] sm:$0xff] }
 0x208   : > { %v2934_v56 = vpop.f32.mrf.mxu0  ;;  %v2966_v16 = vpop.f32.mrf.mxu1  ;;  %v1849_v24 = vadd.f32 %v4603_v5, %v4602_v27  ;;  %v2222_v9 = vadd.f32 %v4608_v4, %v2081_v60  ;;  %v4611_v47 = vld [vmem:[#allocation13_spill] sm:$0xff] }
 0x209   : > { %v2091_v42 = vadd.f32 %v2934_v56, %v1972_v44  ;;  %v2229_v3 = vadd.f32 %v2190_v28, %v2088_v22  ;;  %v2224_v23 = vadd.f32 %v4604_v52, %v2083_v63  ;;  %v2086_v56 = vadd.f32 %v4605_v29, %v1967_v26 }
 0x20a   : > { %v2052_v49 = vpop.f32.mrf.mxu0  ;;  %v4313_v38 = vpop.f32.mrf.mxu1  ;;  %v1966_v39 = vadd.f32 %v4611_v47, %v1841_v46  ;;  %v1974_v57 = vadd.f32 %v4612_v33, %v1849_v24 }
 0x20b   : > { %4600 = vst [vmem:[#allocation24_spill] sm:$0xff] %v4313_v38  ;;  %v2089_v40 = vadd.f32 %v2052_v49, %v1970_v12  ;;  %v2232_v51 = vadd.f32 %v2966_v16, %v2091_v42  ;;  %v1968_v49 = vadd.f32 %v4606_v45, %v1843_v20  ;;  %v4609_v16 = vld [vmem:[#allocation20_spill] sm:$0xff]  ;;  %v2227_v26 = vadd.f32 %v4613_v58, %v2086_v56 }
 0x20c   : > { %v2937_v1 = vpop.f32.mrf.mxu0  ;;  %v4318_v43 = vpop.f32.mrf.mxu1 }
 0x20d   : > { %v2094_v0 = vadd.f32 %v2937_v1, %v1975_v62  ;;  %v2084_v1 = vadd.f32 %v4609_v16, %v1965_v14  ;;  %v4614_v14 = vld [vmem:[#allocation25_spill] sm:$0xff] }
 0x20e   : > { %v2065_v6 = vpop.f32.mrf.mxu0  ;;  %v4324_v38 = vpop.f32.mrf.mxu1  ;;  %v2087_v44 = vadd.f32 %v4614_v14, %v1968_v49 }
 0x20f   : > { %v2092_v36 = vadd.f32 %v2065_v6, %v1973_v7  ;;  %v2235_v6 = vadd.f32 %v4318_v43, %v2094_v0  ;;  %v4618_v7 = vld [vmem:[#allocation30_spill] sm:$0xff] }
 0x210   : > { %v2938_v2 = vpop.f32.mrf.mxu0  ;;  %v4331_v15 = vpop.f32.mrf.mxu1 }
 0x211   : > { %v2095_v30 = vadd.f32 %v2938_v2, %v1976_v53 }
 0x212   : > { %v2068_v31 = vpop.f32.mrf.mxu0  ;;  %v4344_v37 = vpop.f32.mrf.mxu1  ;;  %v4610_v19 = vld [vmem:[#allocation24_spill] sm:$0xff] }
 0x213   : > { %v2230_v34 = vadd.f32 %v4610_v19, %v2089_v40  ;;  %v2093_v60 = vadd.f32 %v2068_v31, %v1974_v57 }
 0x214   : > { %v2989_v25 = vpop.f32.mrf.mxu0  ;;  %v2997_v11 = vpop.f32.mrf.mxu1 }
 0x215   : > { %v2348_v61 = vadd.f32 %v2989_v25, %v2223_v55  ;;  %v2356_v21 = vadd.f32 %v2997_v11, %v2231_v59  ;;  %v4615_v55 = vld [vmem:[#allocation23_spill] sm:$0xff]  ;;  %v2234_v5 = vadd.f32 %v4344_v37, %v2093_v60 }
 0x216   : > { %v2283_v10 = vpop.f32.mrf.mxu0  ;;  %v2315_v54 = vpop.f32.mrf.mxu1  ;;  %v2225_v46 = vadd.f32 %v4615_v55, %v2084_v1  ;;  %v4616_v59 = vld [vmem:[#allocation27_spill] sm:$0xff] }
 0x217   : > { %2364 = vst [vmem:[%s4357_s8 + $0x10] sm:$0xff] %v2348_v61  ;;  %2372 = vst [vmem:[%s4357_s8 + $0x50] sm:$0xff] %v2356_v21  ;;  %v2346_v8 = vadd.f32 %v2283_v10, %v2221_v18  ;;  %v2354_v28 = vadd.f32 %v2315_v54, %v2229_v3  ;;  %v2085_v42 = vadd.f32 %v4616_v59, %v1966_v39  ;;  %v4617_v3 = vld [vmem:[#allocation28_spill] sm:$0xff] }
 0x218   : > { %v2990_v17 = vpop.f32.mrf.mxu0  ;;  %v2998_v13 = vpop.f32.mrf.mxu1  ;;  %v2233_v18 = vadd.f32 %v4324_v38, %v2092_v36  ;;  %v2228_v40 = vadd.f32 %v4617_v3, %v2087_v44  ;;  %v2236_v61 = vadd.f32 %v4331_v15, %v2095_v30 }
 0x219   : > { %2362 = vst [vmem:[%s4357_s8] sm:$0xff] %v2346_v8  ;;  %2370 = vst [vmem:[%s4357_s8 + $0x40] sm:$0xff] %v2354_v28  ;;  %v2349_v41 = vadd.f32 %v2990_v17, %v2224_v23  ;;  %v2357_v50 = vadd.f32 %v2998_v13, %v2232_v51  ;;  %v2226_v27 = vadd.f32 %v4618_v7, %v2085_v42 }
 0x21a   : > { %v2286_v22 = vpop.f32.mrf.mxu0  ;;  %v2318_v20 = vpop.f32.mrf.mxu1 }
 0x21b   : > { %2365 = vst [vmem:[%s4357_s8 + $0x18] sm:$0xff] %v2349_v41  ;;  %2373 = vst [vmem:[%s4357_s8 + $0x58] sm:$0xff] %v2357_v50  ;;  %v2347_v63 = vadd.f32 %v2286_v22, %v2222_v9  ;;  %v2355_v12 = vadd.f32 %v2318_v20, %v2230_v34 }
 0x21c   : > { %v2993_v62 = vpop.f32.mrf.mxu0  ;;  %v3001_v35 = vpop.f32.mrf.mxu1 }
 0x21d   : > { %2363 = vst [vmem:[%s4357_s8 + $0x8] sm:$0xff] %v2347_v63  ;;  %2371 = vst [vmem:[%s4357_s8 + $0x48] sm:$0xff] %v2355_v12  ;;  %v2352_v43 = vadd.f32 %v2993_v62, %v2227_v26  ;;  %v2360_v2 = vadd.f32 %v3001_v35, %v2235_v6 }
 0x21e   : > { %v2299_v25 = vpop.f32.mrf.mxu0  ;;  %v2331_v11 = vpop.f32.mrf.mxu1 }
 0x21f   : > { %2368 = vst [vmem:[%s4357_s8 + $0x30] sm:$0xff] %v2352_v43  ;;  %2376 = vst [vmem:[%s4357_s8 + $0x70] sm:$0xff] %v2360_v2  ;;  %v2350_v21 = vadd.f32 %v2299_v25, %v2225_v46  ;;  %v2358_v32 = vadd.f32 %v2331_v11, %v2233_v18 }
 0x220   : > { %v2994_v38 = vpop.f32.mrf.mxu0  ;;  %v3002_v31 = vpop.f32.mrf.mxu1 }
 0x221   : > { %2366 = vst [vmem:[%s4357_s8 + $0x20] sm:$0xff] %v2350_v21  ;;  %2374 = vst [vmem:[%s4357_s8 + $0x60] sm:$0xff] %v2358_v32  ;;  %v2353_v15 = vadd.f32 %v2994_v38, %v2228_v40  ;;  %v2361_v24 = vadd.f32 %v3002_v31, %v2236_v61 }
 0x222   : > { %v2302_v52 = vpop.f32.mrf.mxu0  ;;  %v2334_v23 = vpop.f32.mrf.mxu1 }
 0x223   : > { %2369 = vst [vmem:[%s4357_s8 + $0x38] sm:$0xff] %v2353_v15  ;;  %2377 = vst [vmem:[%s4357_s8 + $0x78] sm:$0xff] %v2361_v24  ;;  %v2351_v37 = vadd.f32 %v2302_v52, %v2226_v27  ;;  %v2359_v29 = vadd.f32 %v2334_v23, %v2234_v5 }
 0x225   : > { %2367 = vst [vmem:[%s4357_s8 + $0x28] sm:$0xff] %v2351_v37  ;;  %2375 = vst [vmem:[%s4357_s8 + $0x68] sm:$0xff] %v2359_v29 }
 0x226   : > { %3160 = shalt.err (!%p3157_p6)
}
 0x227   : > { %s3161_s28 = scalar_lea.hbm %s4394_s24, 2048  ;;  %s3165_s12 = scalar_lea.hbm %s4459_s4, 8192 }
 0x228   : > { %p3162_p7 = scmp.ne.s32.totalorder %s4394_s24, %s3161_s28  ;;  %p3166_p13 = scmp.lt.s32.totalorder %s4394_s24, %s4459_s4 }
 0x229   : > { %p3167_p10 = scmp.lt.s32.totalorder %s3165_s12, %s3161_s28 }
 0x22a   : > { %p3163_p9 = pnand %p3162_p7, %p3329_p3 }
 0x22b   : > { %p3168_p12 = por %p3167_p10, %p3166_p13 }
 0x22c   : > { %p3164_p11 = pneg %p3163_p9 }
 0x22e   : > { %p3169_p0 = pnand %p3168_p12, %p3164_p11 }
 0x230   : > { %3172 = shalt.err (!%p3169_p0)
}
 0x231   : > { %s3250_s14 = smov 128   ;;  %s3251_s23 = smov 8  }
 0x232   : > { %3025 = dma.vmem_to_hbm [thread:$0]  (%p3329_p3), %s4396_s13, 2048, %s4394_s24, %s4404_s27, %s3250_s14, %s3250_s14, %s3251_s23  }
 0x233 PF: > { %p3037_p1 = scmp.ge.s32.totalorder %s3243_s22, 2  ;;  %s2409_s5 = sand.u32 1, %s3215_s15  }
 0x234   : > { %s2410_s6 = scalar_lea.sflag [#allocation4], %s2409_s5 }
 0x235   : > { %p3032_p2 = pnand %p3037_p1, %p3338_p8 }
 0x237   : > { %p3033_p4 = pneg %p3032_p2 }
 0x239   : > { %3210 = dma.done.wait (%p3033_p4), %s2410_s6, 2048  }
 0x23a   : > { %3212 = vsyncadd (%p3033_p4), %s2410_s6, 4294965248  ;;  %s18_s22 = sadd.s32 1, %s3243_s22   ;;  %s4619_s15 = smov %s3219_s16 }
 0x23b   : > { %p15_p5 = scmp.ge.s32.totalorder %s18_s22, 6   ;;  %s4620_s16 = smov %s3223_s17 }
 0x23c   : > { %s4621_s17 = smov %s3356_s9  ;;  %s4622_s18 = smov %s3235_s20 }
 0x23d   : > { %s4623_s19 = smov %s3239_s21  ;;  %s4624_s20 = smov %s4627_s25 }
 0x23e   : > { %s4625_s21 = smov %s4631_s26  ;;  %17 = sbr.rel (!%p15_p5) target bundleno = 6 (0x6), region = 82 }
 0x243   :  { %2415 = vsyncpa [#allocation3], 1 }
 0x244   :  { %2417 = vsyncpa [#allocation3 + $0x1], 1 }
 0x245   :  { %2418 = vsyncpa [#allocation4], 1 }
 0x246   :  { %2420 = vsyncpa [#allocation4 + $0x1], 1 }

</bundles_post_ra>
